<compile_context>
chip_gen: v5e
topology: v5e:2x2
jax: 0.10.0
libtpu: 0.0.40
codegen_flags: <defaults>
</compile_context>

<pallas_src>
import jax
import jax.numpy as jnp
from jax.experimental import pallas as pl
from jax.experimental.pallas import tpu as pltpu

# ---------------- model sizes (small, synthetic) ----------------
VOCAB = 64
EMB = 32
HID = 32
BATCH = 4
SRC_LEN = 8
TGT_LEN = 8            # decoder consumes tgt[:, :-1] -> TGT_LEN-1 steps

V_PAD = 128            # pad vocab to a full lane width for the logits store

_VMEM = pl.BlockSpec(memory_space=pltpu.MemorySpace.VMEM)


def seq2seq_kernel(src_ref, tgt_ref,
                   enc_tab_ref, enc_whh_ref,
                   dec_tab_ref, dec_whh_ref,
                   w_attn_c_ref, w_attn_h_ref, w_out_ref,
                   out_ref,
                   ctx_scr, dech_scr):
    f32 = jnp.float32
    bf16 = jnp.bfloat16
    B, S = src_ref.shape                       # (4, 8)
    T = tgt_ref.shape[1]                       # 7
    H = enc_whh_ref.shape[0]                   # 32
    G = 4 * H                                  # 128
    V_TAB = enc_tab_ref.shape[0]               # 64
    V_OUT = w_out_ref.shape[1]                 # 128

    def token_gates(ids_ref, tab_ref, n):
        # Fused embedding lookup + hoisted input projection (+ folded bias) as
        # ONE batched matmul: one_hot(ids) @ (emb @ W_ih + b) == emb[ids] @ W_ih + b.
        ids = ids_ref[...]                                               # (B, n) i32
        iota = jax.lax.broadcasted_iota(jnp.int32, (B, n, V_TAB), 2)
        one_hot = (ids[:, :, None] == iota).astype(f32)                  # (B, n, V)
        g = jnp.dot(one_hot.reshape(B * n, V_TAB), tab_ref[...],
                    preferred_element_type=f32)                          # (B*n, 4H)
        return g.reshape(B, n, G)                                        # (B, n, 4H)

    def lstm_cell(gate_in, h, c, w_hh_bf):
        # Bias already folded into gate_in; g-gate columns pre-scaled by 2 so a
        # single full-width sigmoid covers all four gates (tanh(z)=2*sigmoid(2z)-1).
        gates = gate_in + jnp.dot(h.astype(bf16), w_hh_bf,
                                  preferred_element_type=f32)            # (B, 4H) f32
        act = jax.nn.sigmoid(gates)                                      # one EUP pass
        i_g = act[:, 0:H]
        f_g = act[:, H:2 * H]
        g_g = 2.0 * act[:, 2 * H:3 * H] - 1.0                            # == tanh(z_g)
        o_g = act[:, 3 * H:4 * H]
        c_new = f_g * c + i_g * g_g
        h_new = o_g * jnp.tanh(c_new)
        return h_new, c_new

    # Batched (hoisted) input projections for all time steps at once.
    enc_gates = token_gates(src_ref, enc_tab_ref, S)                     # (B, S, 4H)
    dec_gates = token_gates(tgt_ref, dec_tab_ref, T)                     # (B, T, 4H)
    enc_whh = enc_whh_ref[...]                                           # bf16 (H, 4H)
    dec_whh = dec_whh_ref[...]                                           # bf16 (H, 4H)

    # ---------------- encoder recurrence (fully unrolled, S = 8) -------------
    h = jnp.zeros((B, H), f32)
    c = jnp.zeros((B, H), f32)
    for t in range(S):
        h, c = lstm_cell(enc_gates[:, t, :], h, c, enc_whh)
        ctx_scr[:, t, :] = h                 # (B, S, H) scratch, bounds live ranges

    # ---------------- decoder recurrence (fully unrolled, T = 7) -------------
    for t in range(T):
        h, c = lstm_cell(dec_gates[:, t, :], h, c, dec_whh)
        dech_scr[:, t, :] = h                # (B, T, H) scratch

    contexts = ctx_scr[...]                                              # (B, S, H) f32
    dec_h = dech_scr[...]                                                # (B, T, H) f32

    # ---------------- Luong (dot) attention, batched over B on the MXU -------
    scores = jnp.einsum('bth,bsh->bts',
                        dec_h.astype(bf16), contexts.astype(bf16),
                        preferred_element_type=f32)                      # (B, T, S)
    scores = scores - jnp.max(scores, axis=-1, keepdims=True)
    p = jnp.exp(scores)
    p = p * pl.reciprocal(jnp.sum(p, axis=-1, keepdims=True), approx=True)
    ctx_vec = jnp.einsum('bts,bsh->bth',
                         p.astype(bf16), contexts.astype(bf16),
                         preferred_element_type=f32)                     # (B, T, H)

    # Attention combine: concat([ctx, h]) @ W_attn as two matmuls (no lane concat).
    attn_h = jnp.tanh(
        jnp.dot(ctx_vec.reshape(B * T, H).astype(bf16), w_attn_c_ref[...],
                preferred_element_type=f32)
        + jnp.dot(dec_h.reshape(B * T, H).astype(bf16), w_attn_h_ref[...],
                  preferred_element_type=f32))                           # (B*T, H) f32

    # Vocab projection: one matmul, lane-dense (128-wide) store in (B, T, V) layout.
    logits = jnp.dot(attn_h.astype(bf16), w_out_ref[...],
                     preferred_element_type=f32)                         # (B*T, V_OUT)
    out_ref[...] = logits.reshape(B, T, V_OUT)


def prepare_params(params):
    """Param-only preprocessing, done ONCE (hoisted out of the per-call path)."""
    H = HID

    def fold_table(w_ih, b):
        # emb @ W_ih + b, then scale the "g" gate columns by 2 for the
        # tanh(z) = 2*sigmoid(2z) - 1 trick.
        tab = jnp.dot(params["emb"], w_ih) + b                   # (VOCAB, 4H) f32
        return tab.at[:, 2 * H:3 * H].multiply(2.0)

    def scale_whh(w_hh):
        return w_hh.at[:, 2 * H:3 * H].multiply(2.0).astype(jnp.bfloat16)

    enc_tab = fold_table(params["enc_w_ih"], params["enc_b"])    # f32
    dec_tab = fold_table(params["dec_w_ih"], params["dec_b"])    # f32
    enc_whh = scale_whh(params["enc_w_hh"])                      # bf16
    dec_whh = scale_whh(params["dec_w_hh"])                      # bf16
    w_attn_c = params["w_attn"][:H, :].astype(jnp.bfloat16)      # context half
    w_attn_h = params["w_attn"][H:, :].astype(jnp.bfloat16)      # hidden half
    w_out = jnp.pad(params["w_out"],
                    ((0, 0), (0, V_PAD - VOCAB))).astype(jnp.bfloat16)   # (H, 128)
    return (enc_tab, enc_whh, dec_tab, dec_whh, w_attn_c, w_attn_h, w_out)


def seq2seq_forward(src_ids, tgt_ids, prepped):
    enc_tab, enc_whh, dec_tab, dec_whh, w_attn_c, w_attn_h, w_out = prepped
    src = src_ids.astype(jnp.int32)                              # (B, S)
    tgt_in = tgt_ids[:, :-1].astype(jnp.int32)                   # teacher forcing (B, T)
    B, S = src.shape
    T = tgt_in.shape[1]

    out = pl.pallas_call(
        seq2seq_kernel,
        out_shape=jax.ShapeDtypeStruct((B, T, V_PAD), jnp.float32),
        in_specs=[_VMEM] * 9,
        out_specs=_VMEM,
        scratch_shapes=[
            pltpu.VMEM((B, S, HID), jnp.float32),    # encoder contexts
            pltpu.VMEM((B, T, HID), jnp.float32),    # decoder hidden states
        ],
    )(src, tgt_in,
      enc_tab, enc_whh, dec_tab, dec_whh,
      w_attn_c, w_attn_h, w_out)

    # Strip vocab padding: (B, Tdec, V)
    return out[:, :, :VOCAB]


def init_params(key):
    ks = jax.random.split(key, 8)
    s = 0.1
    return {
        "emb":      jax.random.normal(ks[0], (VOCAB, EMB), jnp.float32) * s,
        "enc_w_ih": jax.random.normal(ks[1], (EMB, 4 * HID), jnp.float32) * s,
        "enc_w_hh": jax.random.normal(ks[2], (HID, 4 * HID), jnp.float32) * s,
        "enc_b":    jnp.zeros((1, 4 * HID), jnp.float32),
        "dec_w_ih": jax.random.normal(ks[3], (EMB, 4 * HID), jnp.float32) * s,
        "dec_w_hh": jax.random.normal(ks[4], (HID, 4 * HID), jnp.float32) * s,
        "dec_b":    jnp.zeros((1, 4 * HID), jnp.float32),
        "w_attn":   jax.random.normal(ks[5], (2 * HID, HID), jnp.float32) * s,
        "w_out":    jax.random.normal(ks[6], (HID, VOCAB), jnp.float32) * s,
    }


if __name__ == "__main__":
    key = jax.random.PRNGKey(0)
    pkey, skey, tkey = jax.random.split(key, 3)
    params = init_params(pkey)

    src_ids = jax.random.randint(skey, (BATCH, SRC_LEN), 0, VOCAB)
    tgt_ids = jax.random.randint(tkey, (BATCH, TGT_LEN), 0, VOCAB)

    # One-time param preprocessing (embedding fold, bias fold, g-scale, bf16 casts).
    prepped = jax.block_until_ready(prepare_params(params))

    fwd = jax.jit(seq2seq_forward)
    outputs = jax.block_until_ready(fwd(src_ids, tgt_ids, prepped))

    assert outputs.shape == (BATCH, TGT_LEN - 1, VOCAB), outputs.shape
    assert bool(jnp.all(jnp.isfinite(outputs)))
    print("KERNEL_OK")
</pallas_src>

<mosaic_0001>
module attributes {stable_mosaic.version = 11 : i64} {
  func.func @seq2seq_kernel(%arg0: memref<4x8xi32, #tpu.memory_space<vmem>>, %arg1: memref<4x7xi32, #tpu.memory_space<vmem>>, %arg2: memref<64x128xf32, #tpu.memory_space<vmem>>, %arg3: memref<32x128xbf16, #tpu.memory_space<vmem>>, %arg4: memref<64x128xf32, #tpu.memory_space<vmem>>, %arg5: memref<32x128xbf16, #tpu.memory_space<vmem>>, %arg6: memref<32x32xbf16, #tpu.memory_space<vmem>>, %arg7: memref<32x32xbf16, #tpu.memory_space<vmem>>, %arg8: memref<32x128xbf16, #tpu.memory_space<vmem>>, %arg9: memref<4x7x128xf32, #tpu.memory_space<vmem>>, %arg10: memref<4x8x32xf32, #tpu.memory_space<vmem>>, %arg11: memref<4x7x32xf32, #tpu.memory_space<vmem>>) attributes {dimension_semantics = [], scalar_prefetch = 0 : i64, scratch_operands = 2 : i64, tpu.core_type = #tpu.core_type<tc>} {
    %c0 = arith.constant 0 : index
    %c0_0 = arith.constant 0 : index
    %0 = vector.load %arg0[%c0, %c0_0] : memref<4x8xi32, #tpu.memory_space<vmem>>, vector<4x8xi32>
    %1 = tpu.iota {dimensions = array<i32: 2>} : vector<4x8x64xi32>
    %2 = vector.shape_cast %0 : vector<4x8xi32> to vector<4x8x1xi32>
    %3 = vector.broadcast %2 : vector<4x8x1xi32> to vector<4x8x64xi32>
    %4 = arith.cmpi eq, %3, %1 : vector<4x8x64xi32>
    %5 = arith.extui %4 : vector<4x8x64xi1> to vector<4x8x64xi32>
    %6 = arith.sitofp %5 : vector<4x8x64xi32> to vector<4x8x64xf32>
    %7 = vector.shape_cast %6 : vector<4x8x64xf32> to vector<32x64xf32>
    %c0_1 = arith.constant 0 : index
    %c0_2 = arith.constant 0 : index
    %8 = vector.load %arg2[%c0_1, %c0_2] : memref<64x128xf32, #tpu.memory_space<vmem>>, vector<64x128xf32>
    %cst = arith.constant dense<0.000000e+00> : vector<32x128xf32>
    %9 = tpu.matmul %7, %8, %cst {dimension_numbers = #tpu.dot_dimension_numbers<[1], [0], [0], [1], [0, 0, 1, 1], [], []>} : vector<32x64xf32>, vector<64x128xf32>, vector<32x128xf32> -> vector<32x128xf32>
    %10 = vector.shape_cast %9 : vector<32x128xf32> to vector<4x8x128xf32>
    %c0_3 = arith.constant 0 : index
    %c0_4 = arith.constant 0 : index
    %11 = vector.load %arg1[%c0_3, %c0_4] : memref<4x7xi32, #tpu.memory_space<vmem>>, vector<4x7xi32>
    %12 = tpu.iota {dimensions = array<i32: 2>} : vector<4x7x64xi32>
    %13 = vector.shape_cast %11 : vector<4x7xi32> to vector<4x7x1xi32>
    %14 = vector.broadcast %13 : vector<4x7x1xi32> to vector<4x7x64xi32>
    %15 = arith.cmpi eq, %14, %12 : vector<4x7x64xi32>
    %16 = arith.extui %15 : vector<4x7x64xi1> to vector<4x7x64xi32>
    %17 = arith.sitofp %16 : vector<4x7x64xi32> to vector<4x7x64xf32>
    %18 = vector.shape_cast %17 : vector<4x7x64xf32> to vector<28x64xf32>
    %c0_5 = arith.constant 0 : index
    %c0_6 = arith.constant 0 : index
    %19 = vector.load %arg4[%c0_5, %c0_6] : memref<64x128xf32, #tpu.memory_space<vmem>>, vector<64x128xf32>
    %cst_7 = arith.constant dense<0.000000e+00> : vector<28x128xf32>
    %20 = tpu.matmul %18, %19, %cst_7 {dimension_numbers = #tpu.dot_dimension_numbers<[1], [0], [0], [1], [0, 0, 1, 1], [], []>} : vector<28x64xf32>, vector<64x128xf32>, vector<28x128xf32> -> vector<28x128xf32>
    %21 = vector.shape_cast %20 : vector<28x128xf32> to vector<4x7x128xf32>
    %c0_8 = arith.constant 0 : index
    %c0_9 = arith.constant 0 : index
    %22 = vector.load %arg3[%c0_8, %c0_9] : memref<32x128xbf16, #tpu.memory_space<vmem>>, vector<32x128xbf16>
    %c0_10 = arith.constant 0 : index
    %c0_11 = arith.constant 0 : index
    %23 = vector.load %arg5[%c0_10, %c0_11] : memref<32x128xbf16, #tpu.memory_space<vmem>>, vector<32x128xbf16>
    %cst_12 = arith.constant 0.000000e+00 : f32
    %24 = vector.broadcast %cst_12 : f32 to vector<4x32xf32>
    %cst_13 = arith.constant 0.000000e+00 : f32
    %25 = vector.broadcast %cst_13 : f32 to vector<4x32xf32>
    %26 = vector.extract_strided_slice %10 {offsets = [0, 0, 0], sizes = [4, 1, 128], strides = [1, 1, 1]} : vector<4x8x128xf32> to vector<4x1x128xf32>
    %27 = vector.shape_cast %26 : vector<4x1x128xf32> to vector<4x128xf32>
    %28 = arith.truncf %24 : vector<4x32xf32> to vector<4x32xbf16>
    %cst_14 = arith.constant dense<0.000000e+00> : vector<4x128xf32>
    %29 = tpu.matmul %28, %22, %cst_14 {dimension_numbers = #tpu.dot_dimension_numbers<[1], [0], [0], [1], [0, 0, 1, 1], [], []>} : vector<4x32xbf16>, vector<32x128xbf16>, vector<4x128xf32> -> vector<4x128xf32>
    %30 = arith.addf %27, %29 : vector<4x128xf32>
    %31 = arith.negf %30 : vector<4x128xf32>
    %32 = math.exp %31 : vector<4x128xf32>
    %cst_15 = arith.constant 1.000000e+00 : f32
    %33 = vector.broadcast %cst_15 : f32 to vector<4x128xf32>
    %34 = arith.addf %33, %32 : vector<4x128xf32>
    %35 = arith.divf %33, %34 : vector<4x128xf32>
    %36 = vector.extract_strided_slice %35 {offsets = [0, 0], sizes = [4, 32], strides = [1, 1]} : vector<4x128xf32> to vector<4x32xf32>
    %37 = vector.extract_strided_slice %35 {offsets = [0, 32], sizes = [4, 32], strides = [1, 1]} : vector<4x128xf32> to vector<4x32xf32>
    %38 = vector.extract_strided_slice %35 {offsets = [0, 64], sizes = [4, 32], strides = [1, 1]} : vector<4x128xf32> to vector<4x32xf32>
    %cst_16 = arith.constant 2.000000e+00 : f32
    %39 = vector.broadcast %cst_16 : f32 to vector<4x32xf32>
    %40 = arith.mulf %39, %38 : vector<4x32xf32>
    %cst_17 = arith.constant 1.000000e+00 : f32
    %41 = vector.broadcast %cst_17 : f32 to vector<4x32xf32>
    %42 = arith.subf %40, %41 : vector<4x32xf32>
    %43 = vector.extract_strided_slice %35 {offsets = [0, 96], sizes = [4, 32], strides = [1, 1]} : vector<4x128xf32> to vector<4x32xf32>
    %44 = arith.mulf %37, %25 : vector<4x32xf32>
    %45 = arith.mulf %36, %42 : vector<4x32xf32>
    %46 = arith.addf %44, %45 : vector<4x32xf32>
    %47 = math.tanh %46 : vector<4x32xf32>
    %48 = arith.mulf %43, %47 : vector<4x32xf32>
    %c0_18 = arith.constant 0 : index
    %c0_19 = arith.constant 0 : index
    %c0_20 = arith.constant 0 : index
    %49 = vector.load %arg10[%c0_18, %c0_19, %c0_20] : memref<4x8x32xf32, #tpu.memory_space<vmem>>, vector<4x1x32xf32>
    %50 = vector.shape_cast %49 : vector<4x1x32xf32> to vector<4x32xf32>
    %51 = vector.shape_cast %48 : vector<4x32xf32> to vector<4x1x32xf32>
    tpu.vector_store %arg10[%c0_18, %c0_19, %c0_20], %51 {strides = array<i32>} : memref<4x8x32xf32, #tpu.memory_space<vmem>>, vector<4x1x32xf32>,
    %52 = vector.extract_strided_slice %10 {offsets = [0, 1, 0], sizes = [4, 1, 128], strides = [1, 1, 1]} : vector<4x8x128xf32> to vector<4x1x128xf32>
    %53 = vector.shape_cast %52 : vector<4x1x128xf32> to vector<4x128xf32>
    %54 = arith.truncf %48 : vector<4x32xf32> to vector<4x32xbf16>
    %cst_21 = arith.constant dense<0.000000e+00> : vector<4x128xf32>
    %55 = tpu.matmul %54, %22, %cst_21 {dimension_numbers = #tpu.dot_dimension_numbers<[1], [0], [0], [1], [0, 0, 1, 1], [], []>} : vector<4x32xbf16>, vector<32x128xbf16>, vector<4x128xf32> -> vector<4x128xf32>
    %56 = arith.addf %53, %55 : vector<4x128xf32>
    %57 = arith.negf %56 : vector<4x128xf32>
    %58 = math.exp %57 : vector<4x128xf32>
    %cst_22 = arith.constant 1.000000e+00 : f32
    %59 = vector.broadcast %cst_22 : f32 to vector<4x128xf32>
    %60 = arith.addf %59, %58 : vector<4x128xf32>
    %61 = arith.divf %59, %60 : vector<4x128xf32>
    %62 = vector.extract_strided_slice %61 {offsets = [0, 0], sizes = [4, 32], strides = [1, 1]} : vector<4x128xf32> to vector<4x32xf32>
    %63 = vector.extract_strided_slice %61 {offsets = [0, 32], sizes = [4, 32], strides = [1, 1]} : vector<4x128xf32> to vector<4x32xf32>
    %64 = vector.extract_strided_slice %61 {offsets = [0, 64], sizes = [4, 32], strides = [1, 1]} : vector<4x128xf32> to vector<4x32xf32>
    %cst_23 = arith.constant 2.000000e+00 : f32
    %65 = vector.broadcast %cst_23 : f32 to vector<4x32xf32>
    %66 = arith.mulf %65, %64 : vector<4x32xf32>
    %cst_24 = arith.constant 1.000000e+00 : f32
    %67 = vector.broadcast %cst_24 : f32 to vector<4x32xf32>
    %68 = arith.subf %66, %67 : vector<4x32xf32>
    %69 = vector.extract_strided_slice %61 {offsets = [0, 96], sizes = [4, 32], strides = [1, 1]} : vector<4x128xf32> to vector<4x32xf32>
    %70 = arith.mulf %63, %46 : vector<4x32xf32>
    %71 = arith.mulf %62, %68 : vector<4x32xf32>
    %72 = arith.addf %70, %71 : vector<4x32xf32>
    %73 = math.tanh %72 : vector<4x32xf32>
    %74 = arith.mulf %69, %73 : vector<4x32xf32>
    %c0_25 = arith.constant 0 : index
    %c1 = arith.constant 1 : index
    %c0_26 = arith.constant 0 : index
    %75 = vector.load %arg10[%c0_25, %c1, %c0_26] : memref<4x8x32xf32, #tpu.memory_space<vmem>>, vector<4x1x32xf32>
    %76 = vector.shape_cast %75 : vector<4x1x32xf32> to vector<4x32xf32>
    %77 = vector.shape_cast %74 : vector<4x32xf32> to vector<4x1x32xf32>
    tpu.vector_store %arg10[%c0_25, %c1, %c0_26], %77 {strides = array<i32>} : memref<4x8x32xf32, #tpu.memory_space<vmem>>, vector<4x1x32xf32>,
    %78 = vector.extract_strided_slice %10 {offsets = [0, 2, 0], sizes = [4, 1, 128], strides = [1, 1, 1]} : vector<4x8x128xf32> to vector<4x1x128xf32>
    %79 = vector.shape_cast %78 : vector<4x1x128xf32> to vector<4x128xf32>
    %80 = arith.truncf %74 : vector<4x32xf32> to vector<4x32xbf16>
    %cst_27 = arith.constant dense<0.000000e+00> : vector<4x128xf32>
    %81 = tpu.matmul %80, %22, %cst_27 {dimension_numbers = #tpu.dot_dimension_numbers<[1], [0], [0], [1], [0, 0, 1, 1], [], []>} : vector<4x32xbf16>, vector<32x128xbf16>, vector<4x128xf32> -> vector<4x128xf32>
    %82 = arith.addf %79, %81 : vector<4x128xf32>
    %83 = arith.negf %82 : vector<4x128xf32>
    %84 = math.exp %83 : vector<4x128xf32>
    %cst_28 = arith.constant 1.000000e+00 : f32
    %85 = vector.broadcast %cst_28 : f32 to vector<4x128xf32>
    %86 = arith.addf %85, %84 : vector<4x128xf32>
    %87 = arith.divf %85, %86 : vector<4x128xf32>
    %88 = vector.extract_strided_slice %87 {offsets = [0, 0], sizes = [4, 32], strides = [1, 1]} : vector<4x128xf32> to vector<4x32xf32>
    %89 = vector.extract_strided_slice %87 {offsets = [0, 32], sizes = [4, 32], strides = [1, 1]} : vector<4x128xf32> to vector<4x32xf32>
    %90 = vector.extract_strided_slice %87 {offsets = [0, 64], sizes = [4, 32], strides = [1, 1]} : vector<4x128xf32> to vector<4x32xf32>
    %cst_29 = arith.constant 2.000000e+00 : f32
    %91 = vector.broadcast %cst_29 : f32 to vector<4x32xf32>
    %92 = arith.mulf %91, %90 : vector<4x32xf32>
    %cst_30 = arith.constant 1.000000e+00 : f32
    %93 = vector.broadcast %cst_30 : f32 to vector<4x32xf32>
    %94 = arith.subf %92, %93 : vector<4x32xf32>
    %95 = vector.extract_strided_slice %87 {offsets = [0, 96], sizes = [4, 32], strides = [1, 1]} : vector<4x128xf32> to vector<4x32xf32>
    %96 = arith.mulf %89, %72 : vector<4x32xf32>
    %97 = arith.mulf %88, %94 : vector<4x32xf32>
    %98 = arith.addf %96, %97 : vector<4x32xf32>
    %99 = math.tanh %98 : vector<4x32xf32>
    %100 = arith.mulf %95, %99 : vector<4x32xf32>
    %c0_31 = arith.constant 0 : index
    %c2 = arith.constant 2 : index
    %c0_32 = arith.constant 0 : index
    %101 = vector.load %arg10[%c0_31, %c2, %c0_32] : memref<4x8x32xf32, #tpu.memory_space<vmem>>, vector<4x1x32xf32>
    %102 = vector.shape_cast %101 : vector<4x1x32xf32> to vector<4x32xf32>
    %103 = vector.shape_cast %100 : vector<4x32xf32> to vector<4x1x32xf32>
    tpu.vector_store %arg10[%c0_31, %c2, %c0_32], %103 {strides = array<i32>} : memref<4x8x32xf32, #tpu.memory_space<vmem>>, vector<4x1x32xf32>,
    %104 = vector.extract_strided_slice %10 {offsets = [0, 3, 0], sizes = [4, 1, 128], strides = [1, 1, 1]} : vector<4x8x128xf32> to vector<4x1x128xf32>
    %105 = vector.shape_cast %104 : vector<4x1x128xf32> to vector<4x128xf32>
    %106 = arith.truncf %100 : vector<4x32xf32> to vector<4x32xbf16>
    %cst_33 = arith.constant dense<0.000000e+00> : vector<4x128xf32>
    %107 = tpu.matmul %106, %22, %cst_33 {dimension_numbers = #tpu.dot_dimension_numbers<[1], [0], [0], [1], [0, 0, 1, 1], [], []>} : vector<4x32xbf16>, vector<32x128xbf16>, vector<4x128xf32> -> vector<4x128xf32>
    %108 = arith.addf %105, %107 : vector<4x128xf32>
    %109 = arith.negf %108 : vector<4x128xf32>
    %110 = math.exp %109 : vector<4x128xf32>
    %cst_34 = arith.constant 1.000000e+00 : f32
    %111 = vector.broadcast %cst_34 : f32 to vector<4x128xf32>
    %112 = arith.addf %111, %110 : vector<4x128xf32>
    %113 = arith.divf %111, %112 : vector<4x128xf32>
    %114 = vector.extract_strided_slice %113 {offsets = [0, 0], sizes = [4, 32], strides = [1, 1]} : vector<4x128xf32> to vector<4x32xf32>
    %115 = vector.extract_strided_slice %113 {offsets = [0, 32], sizes = [4, 32], strides = [1, 1]} : vector<4x128xf32> to vector<4x32xf32>
    %116 = vector.extract_strided_slice %113 {offsets = [0, 64], sizes = [4, 32], strides = [1, 1]} : vector<4x128xf32> to vector<4x32xf32>
    %cst_35 = arith.constant 2.000000e+00 : f32
    %117 = vector.broadcast %cst_35 : f32 to vector<4x32xf32>
    %118 = arith.mulf %117, %116 : vector<4x32xf32>
    %cst_36 = arith.constant 1.000000e+00 : f32
    %119 = vector.broadcast %cst_36 : f32 to vector<4x32xf32>
    %120 = arith.subf %118, %119 : vector<4x32xf32>
    %121 = vector.extract_strided_slice %113 {offsets = [0, 96], sizes = [4, 32], strides = [1, 1]} : vector<4x128xf32> to vector<4x32xf32>
    %122 = arith.mulf %115, %98 : vector<4x32xf32>
    %123 = arith.mulf %114, %120 : vector<4x32xf32>
    %124 = arith.addf %122, %123 : vector<4x32xf32>
    %125 = math.tanh %124 : vector<4x32xf32>
    %126 = arith.mulf %121, %125 : vector<4x32xf32>
    %c0_37 = arith.constant 0 : index
    %c3 = arith.constant 3 : index
    %c0_38 = arith.constant 0 : index
    %127 = vector.load %arg10[%c0_37, %c3, %c0_38] : memref<4x8x32xf32, #tpu.memory_space<vmem>>, vector<4x1x32xf32>
    %128 = vector.shape_cast %127 : vector<4x1x32xf32> to vector<4x32xf32>
    %129 = vector.shape_cast %126 : vector<4x32xf32> to vector<4x1x32xf32>
    tpu.vector_store %arg10[%c0_37, %c3, %c0_38], %129 {strides = array<i32>} : memref<4x8x32xf32, #tpu.memory_space<vmem>>, vector<4x1x32xf32>,
    %130 = vector.extract_strided_slice %10 {offsets = [0, 4, 0], sizes = [4, 1, 128], strides = [1, 1, 1]} : vector<4x8x128xf32> to vector<4x1x128xf32>
    %131 = vector.shape_cast %130 : vector<4x1x128xf32> to vector<4x128xf32>
    %132 = arith.truncf %126 : vector<4x32xf32> to vector<4x32xbf16>
    %cst_39 = arith.constant dense<0.000000e+00> : vector<4x128xf32>
    %133 = tpu.matmul %132, %22, %cst_39 {dimension_numbers = #tpu.dot_dimension_numbers<[1], [0], [0], [1], [0, 0, 1, 1], [], []>} : vector<4x32xbf16>, vector<32x128xbf16>, vector<4x128xf32> -> vector<4x128xf32>
    %134 = arith.addf %131, %133 : vector<4x128xf32>
    %135 = arith.negf %134 : vector<4x128xf32>
    %136 = math.exp %135 : vector<4x128xf32>
    %cst_40 = arith.constant 1.000000e+00 : f32
    %137 = vector.broadcast %cst_40 : f32 to vector<4x128xf32>
    %138 = arith.addf %137, %136 : vector<4x128xf32>
    %139 = arith.divf %137, %138 : vector<4x128xf32>
    %140 = vector.extract_strided_slice %139 {offsets = [0, 0], sizes = [4, 32], strides = [1, 1]} : vector<4x128xf32> to vector<4x32xf32>
    %141 = vector.extract_strided_slice %139 {offsets = [0, 32], sizes = [4, 32], strides = [1, 1]} : vector<4x128xf32> to vector<4x32xf32>
    %142 = vector.extract_strided_slice %139 {offsets = [0, 64], sizes = [4, 32], strides = [1, 1]} : vector<4x128xf32> to vector<4x32xf32>
    %cst_41 = arith.constant 2.000000e+00 : f32
    %143 = vector.broadcast %cst_41 : f32 to vector<4x32xf32>
    %144 = arith.mulf %143, %142 : vector<4x32xf32>
    %cst_42 = arith.constant 1.000000e+00 : f32
    %145 = vector.broadcast %cst_42 : f32 to vector<4x32xf32>
    %146 = arith.subf %144, %145 : vector<4x32xf32>
    %147 = vector.extract_strided_slice %139 {offsets = [0, 96], sizes = [4, 32], strides = [1, 1]} : vector<4x128xf32> to vector<4x32xf32>
    %148 = arith.mulf %141, %124 : vector<4x32xf32>
    %149 = arith.mulf %140, %146 : vector<4x32xf32>
    %150 = arith.addf %148, %149 : vector<4x32xf32>
    %151 = math.tanh %150 : vector<4x32xf32>
    %152 = arith.mulf %147, %151 : vector<4x32xf32>
    %c0_43 = arith.constant 0 : index
    %c4 = arith.constant 4 : index
    %c0_44 = arith.constant 0 : index
    %153 = vector.load %arg10[%c0_43, %c4, %c0_44] : memref<4x8x32xf32, #tpu.memory_space<vmem>>, vector<4x1x32xf32>
    %154 = vector.shape_cast %153 : vector<4x1x32xf32> to vector<4x32xf32>
    %155 = vector.shape_cast %152 : vector<4x32xf32> to vector<4x1x32xf32>
    tpu.vector_store %arg10[%c0_43, %c4, %c0_44], %155 {strides = array<i32>} : memref<4x8x32xf32, #tpu.memory_space<vmem>>, vector<4x1x32xf32>,
    %156 = vector.extract_strided_slice %10 {offsets = [0, 5, 0], sizes = [4, 1, 128], strides = [1, 1, 1]} : vector<4x8x128xf32> to vector<4x1x128xf32>
    %157 = vector.shape_cast %156 : vector<4x1x128xf32> to vector<4x128xf32>
    %158 = arith.truncf %152 : vector<4x32xf32> to vector<4x32xbf16>
    %cst_45 = arith.constant dense<0.000000e+00> : vector<4x128xf32>
    %159 = tpu.matmul %158, %22, %cst_45 {dimension_numbers = #tpu.dot_dimension_numbers<[1], [0], [0], [1], [0, 0, 1, 1], [], []>} : vector<4x32xbf16>, vector<32x128xbf16>, vector<4x128xf32> -> vector<4x128xf32>
    %160 = arith.addf %157, %159 : vector<4x128xf32>
    %161 = arith.negf %160 : vector<4x128xf32>
    %162 = math.exp %161 : vector<4x128xf32>
    %cst_46 = arith.constant 1.000000e+00 : f32
    %163 = vector.broadcast %cst_46 : f32 to vector<4x128xf32>
    %164 = arith.addf %163, %162 : vector<4x128xf32>
    %165 = arith.divf %163, %164 : vector<4x128xf32>
    %166 = vector.extract_strided_slice %165 {offsets = [0, 0], sizes = [4, 32], strides = [1, 1]} : vector<4x128xf32> to vector<4x32xf32>
    %167 = vector.extract_strided_slice %165 {offsets = [0, 32], sizes = [4, 32], strides = [1, 1]} : vector<4x128xf32> to vector<4x32xf32>
    %168 = vector.extract_strided_slice %165 {offsets = [0, 64], sizes = [4, 32], strides = [1, 1]} : vector<4x128xf32> to vector<4x32xf32>
    %cst_47 = arith.constant 2.000000e+00 : f32
    %169 = vector.broadcast %cst_47 : f32 to vector<4x32xf32>
    %170 = arith.mulf %169, %168 : vector<4x32xf32>
    %cst_48 = arith.constant 1.000000e+00 : f32
    %171 = vector.broadcast %cst_48 : f32 to vector<4x32xf32>
    %172 = arith.subf %170, %171 : vector<4x32xf32>
    %173 = vector.extract_strided_slice %165 {offsets = [0, 96], sizes = [4, 32], strides = [1, 1]} : vector<4x128xf32> to vector<4x32xf32>
    %174 = arith.mulf %167, %150 : vector<4x32xf32>
    %175 = arith.mulf %166, %172 : vector<4x32xf32>
    %176 = arith.addf %174, %175 : vector<4x32xf32>
    %177 = math.tanh %176 : vector<4x32xf32>
    %178 = arith.mulf %173, %177 : vector<4x32xf32>
    %c0_49 = arith.constant 0 : index
    %c5 = arith.constant 5 : index
    %c0_50 = arith.constant 0 : index
    %179 = vector.load %arg10[%c0_49, %c5, %c0_50] : memref<4x8x32xf32, #tpu.memory_space<vmem>>, vector<4x1x32xf32>
    %180 = vector.shape_cast %179 : vector<4x1x32xf32> to vector<4x32xf32>
    %181 = vector.shape_cast %178 : vector<4x32xf32> to vector<4x1x32xf32>
    tpu.vector_store %arg10[%c0_49, %c5, %c0_50], %181 {strides = array<i32>} : memref<4x8x32xf32, #tpu.memory_space<vmem>>, vector<4x1x32xf32>,
    %182 = vector.extract_strided_slice %10 {offsets = [0, 6, 0], sizes = [4, 1, 128], strides = [1, 1, 1]} : vector<4x8x128xf32> to vector<4x1x128xf32>
    %183 = vector.shape_cast %182 : vector<4x1x128xf32> to vector<4x128xf32>
    %184 = arith.truncf %178 : vector<4x32xf32> to vector<4x32xbf16>
    %cst_51 = arith.constant dense<0.000000e+00> : vector<4x128xf32>
    %185 = tpu.matmul %184, %22, %cst_51 {dimension_numbers = #tpu.dot_dimension_numbers<[1], [0], [0], [1], [0, 0, 1, 1], [], []>} : vector<4x32xbf16>, vector<32x128xbf16>, vector<4x128xf32> -> vector<4x128xf32>
    %186 = arith.addf %183, %185 : vector<4x128xf32>
    %187 = arith.negf %186 : vector<4x128xf32>
    %188 = math.exp %187 : vector<4x128xf32>
    %cst_52 = arith.constant 1.000000e+00 : f32
    %189 = vector.broadcast %cst_52 : f32 to vector<4x128xf32>
    %190 = arith.addf %189, %188 : vector<4x128xf32>
    %191 = arith.divf %189, %190 : vector<4x128xf32>
    %192 = vector.extract_strided_slice %191 {offsets = [0, 0], sizes = [4, 32], strides = [1, 1]} : vector<4x128xf32> to vector<4x32xf32>
    %193 = vector.extract_strided_slice %191 {offsets = [0, 32], sizes = [4, 32], strides = [1, 1]} : vector<4x128xf32> to vector<4x32xf32>
    %194 = vector.extract_strided_slice %191 {offsets = [0, 64], sizes = [4, 32], strides = [1, 1]} : vector<4x128xf32> to vector<4x32xf32>
    %cst_53 = arith.constant 2.000000e+00 : f32
    %195 = vector.broadcast %cst_53 : f32 to vector<4x32xf32>
    %196 = arith.mulf %195, %194 : vector<4x32xf32>
    %cst_54 = arith.constant 1.000000e+00 : f32
    %197 = vector.broadcast %cst_54 : f32 to vector<4x32xf32>
    %198 = arith.subf %196, %197 : vector<4x32xf32>
    %199 = vector.extract_strided_slice %191 {offsets = [0, 96], sizes = [4, 32], strides = [1, 1]} : vector<4x128xf32> to vector<4x32xf32>
    %200 = arith.mulf %193, %176 : vector<4x32xf32>
    %201 = arith.mulf %192, %198 : vector<4x32xf32>
    %202 = arith.addf %200, %201 : vector<4x32xf32>
    %203 = math.tanh %202 : vector<4x32xf32>
    %204 = arith.mulf %199, %203 : vector<4x32xf32>
    %c0_55 = arith.constant 0 : index
    %c6 = arith.constant 6 : index
    %c0_56 = arith.constant 0 : index
    %205 = vector.load %arg10[%c0_55, %c6, %c0_56] : memref<4x8x32xf32, #tpu.memory_space<vmem>>, vector<4x1x32xf32>
    %206 = vector.shape_cast %205 : vector<4x1x32xf32> to vector<4x32xf32>
    %207 = vector.shape_cast %204 : vector<4x32xf32> to vector<4x1x32xf32>
    tpu.vector_store %arg10[%c0_55, %c6, %c0_56], %207 {strides = array<i32>} : memref<4x8x32xf32, #tpu.memory_space<vmem>>, vector<4x1x32xf32>,
    %208 = vector.extract_strided_slice %10 {offsets = [0, 7, 0], sizes = [4, 1, 128], strides = [1, 1, 1]} : vector<4x8x128xf32> to vector<4x1x128xf32>
    %209 = vector.shape_cast %208 : vector<4x1x128xf32> to vector<4x128xf32>
    %210 = arith.truncf %204 : vector<4x32xf32> to vector<4x32xbf16>
    %cst_57 = arith.constant dense<0.000000e+00> : vector<4x128xf32>
    %211 = tpu.matmul %210, %22, %cst_57 {dimension_numbers = #tpu.dot_dimension_numbers<[1], [0], [0], [1], [0, 0, 1, 1], [], []>} : vector<4x32xbf16>, vector<32x128xbf16>, vector<4x128xf32> -> vector<4x128xf32>
    %212 = arith.addf %209, %211 : vector<4x128xf32>
    %213 = arith.negf %212 : vector<4x128xf32>
    %214 = math.exp %213 : vector<4x128xf32>
    %cst_58 = arith.constant 1.000000e+00 : f32
    %215 = vector.broadcast %cst_58 : f32 to vector<4x128xf32>
    %216 = arith.addf %215, %214 : vector<4x128xf32>
    %217 = arith.divf %215, %216 : vector<4x128xf32>
    %218 = vector.extract_strided_slice %217 {offsets = [0, 0], sizes = [4, 32], strides = [1, 1]} : vector<4x128xf32> to vector<4x32xf32>
    %219 = vector.extract_strided_slice %217 {offsets = [0, 32], sizes = [4, 32], strides = [1, 1]} : vector<4x128xf32> to vector<4x32xf32>
    %220 = vector.extract_strided_slice %217 {offsets = [0, 64], sizes = [4, 32], strides = [1, 1]} : vector<4x128xf32> to vector<4x32xf32>
    %cst_59 = arith.constant 2.000000e+00 : f32
    %221 = vector.broadcast %cst_59 : f32 to vector<4x32xf32>
    %222 = arith.mulf %221, %220 : vector<4x32xf32>
    %cst_60 = arith.constant 1.000000e+00 : f32
    %223 = vector.broadcast %cst_60 : f32 to vector<4x32xf32>
    %224 = arith.subf %222, %223 : vector<4x32xf32>
    %225 = vector.extract_strided_slice %217 {offsets = [0, 96], sizes = [4, 32], strides = [1, 1]} : vector<4x128xf32> to vector<4x32xf32>
    %226 = arith.mulf %219, %202 : vector<4x32xf32>
    %227 = arith.mulf %218, %224 : vector<4x32xf32>
    %228 = arith.addf %226, %227 : vector<4x32xf32>
    %229 = math.tanh %228 : vector<4x32xf32>
    %230 = arith.mulf %225, %229 : vector<4x32xf32>
    %c0_61 = arith.constant 0 : index
    %c7 = arith.constant 7 : index
    %c0_62 = arith.constant 0 : index
    %231 = vector.load %arg10[%c0_61, %c7, %c0_62] : memref<4x8x32xf32, #tpu.memory_space<vmem>>, vector<4x1x32xf32>
    %232 = vector.shape_cast %231 : vector<4x1x32xf32> to vector<4x32xf32>
    %233 = vector.shape_cast %230 : vector<4x32xf32> to vector<4x1x32xf32>
    tpu.vector_store %arg10[%c0_61, %c7, %c0_62], %233 {strides = array<i32>} : memref<4x8x32xf32, #tpu.memory_space<vmem>>, vector<4x1x32xf32>,
    %234 = vector.extract_strided_slice %21 {offsets = [0, 0, 0], sizes = [4, 1, 128], strides = [1, 1, 1]} : vector<4x7x128xf32> to vector<4x1x128xf32>
    %235 = vector.shape_cast %234 : vector<4x1x128xf32> to vector<4x128xf32>
    %236 = arith.truncf %230 : vector<4x32xf32> to vector<4x32xbf16>
    %cst_63 = arith.constant dense<0.000000e+00> : vector<4x128xf32>
    %237 = tpu.matmul %236, %23, %cst_63 {dimension_numbers = #tpu.dot_dimension_numbers<[1], [0], [0], [1], [0, 0, 1, 1], [], []>} : vector<4x32xbf16>, vector<32x128xbf16>, vector<4x128xf32> -> vector<4x128xf32>
    %238 = arith.addf %235, %237 : vector<4x128xf32>
    %239 = arith.negf %238 : vector<4x128xf32>
    %240 = math.exp %239 : vector<4x128xf32>
    %cst_64 = arith.constant 1.000000e+00 : f32
    %241 = vector.broadcast %cst_64 : f32 to vector<4x128xf32>
    %242 = arith.addf %241, %240 : vector<4x128xf32>
    %243 = arith.divf %241, %242 : vector<4x128xf32>
    %244 = vector.extract_strided_slice %243 {offsets = [0, 0], sizes = [4, 32], strides = [1, 1]} : vector<4x128xf32> to vector<4x32xf32>
    %245 = vector.extract_strided_slice %243 {offsets = [0, 32], sizes = [4, 32], strides = [1, 1]} : vector<4x128xf32> to vector<4x32xf32>
    %246 = vector.extract_strided_slice %243 {offsets = [0, 64], sizes = [4, 32], strides = [1, 1]} : vector<4x128xf32> to vector<4x32xf32>
    %cst_65 = arith.constant 2.000000e+00 : f32
    %247 = vector.broadcast %cst_65 : f32 to vector<4x32xf32>
    %248 = arith.mulf %247, %246 : vector<4x32xf32>
    %cst_66 = arith.constant 1.000000e+00 : f32
    %249 = vector.broadcast %cst_66 : f32 to vector<4x32xf32>
    %250 = arith.subf %248, %249 : vector<4x32xf32>
    %251 = vector.extract_strided_slice %243 {offsets = [0, 96], sizes = [4, 32], strides = [1, 1]} : vector<4x128xf32> to vector<4x32xf32>
    %252 = arith.mulf %245, %228 : vector<4x32xf32>
    %253 = arith.mulf %244, %250 : vector<4x32xf32>
    %254 = arith.addf %252, %253 : vector<4x32xf32>
    %255 = math.tanh %254 : vector<4x32xf32>
    %256 = arith.mulf %251, %255 : vector<4x32xf32>
    %c0_67 = arith.constant 0 : index
    %c0_68 = arith.constant 0 : index
    %c0_69 = arith.constant 0 : index
    %257 = vector.load %arg11[%c0_67, %c0_68, %c0_69] : memref<4x7x32xf32, #tpu.memory_space<vmem>>, vector<4x1x32xf32>
    %258 = vector.shape_cast %257 : vector<4x1x32xf32> to vector<4x32xf32>
    %259 = vector.shape_cast %256 : vector<4x32xf32> to vector<4x1x32xf32>
    tpu.vector_store %arg11[%c0_67, %c0_68, %c0_69], %259 {strides = array<i32>} : memref<4x7x32xf32, #tpu.memory_space<vmem>>, vector<4x1x32xf32>,
    %260 = vector.extract_strided_slice %21 {offsets = [0, 1, 0], sizes = [4, 1, 128], strides = [1, 1, 1]} : vector<4x7x128xf32> to vector<4x1x128xf32>
    %261 = vector.shape_cast %260 : vector<4x1x128xf32> to vector<4x128xf32>
    %262 = arith.truncf %256 : vector<4x32xf32> to vector<4x32xbf16>
    %cst_70 = arith.constant dense<0.000000e+00> : vector<4x128xf32>
    %263 = tpu.matmul %262, %23, %cst_70 {dimension_numbers = #tpu.dot_dimension_numbers<[1], [0], [0], [1], [0, 0, 1, 1], [], []>} : vector<4x32xbf16>, vector<32x128xbf16>, vector<4x128xf32> -> vector<4x128xf32>
    %264 = arith.addf %261, %263 : vector<4x128xf32>
    %265 = arith.negf %264 : vector<4x128xf32>
    %266 = math.exp %265 : vector<4x128xf32>
    %cst_71 = arith.constant 1.000000e+00 : f32
    %267 = vector.broadcast %cst_71 : f32 to vector<4x128xf32>
    %268 = arith.addf %267, %266 : vector<4x128xf32>
    %269 = arith.divf %267, %268 : vector<4x128xf32>
    %270 = vector.extract_strided_slice %269 {offsets = [0, 0], sizes = [4, 32], strides = [1, 1]} : vector<4x128xf32> to vector<4x32xf32>
    %271 = vector.extract_strided_slice %269 {offsets = [0, 32], sizes = [4, 32], strides = [1, 1]} : vector<4x128xf32> to vector<4x32xf32>
    %272 = vector.extract_strided_slice %269 {offsets = [0, 64], sizes = [4, 32], strides = [1, 1]} : vector<4x128xf32> to vector<4x32xf32>
    %cst_72 = arith.constant 2.000000e+00 : f32
    %273 = vector.broadcast %cst_72 : f32 to vector<4x32xf32>
    %274 = arith.mulf %273, %272 : vector<4x32xf32>
    %cst_73 = arith.constant 1.000000e+00 : f32
    %275 = vector.broadcast %cst_73 : f32 to vector<4x32xf32>
    %276 = arith.subf %274, %275 : vector<4x32xf32>
    %277 = vector.extract_strided_slice %269 {offsets = [0, 96], sizes = [4, 32], strides = [1, 1]} : vector<4x128xf32> to vector<4x32xf32>
    %278 = arith.mulf %271, %254 : vector<4x32xf32>
    %279 = arith.mulf %270, %276 : vector<4x32xf32>
    %280 = arith.addf %278, %279 : vector<4x32xf32>
    %281 = math.tanh %280 : vector<4x32xf32>
    %282 = arith.mulf %277, %281 : vector<4x32xf32>
    %c0_74 = arith.constant 0 : index
    %c1_75 = arith.constant 1 : index
    %c0_76 = arith.constant 0 : index
    %283 = vector.load %arg11[%c0_74, %c1_75, %c0_76] : memref<4x7x32xf32, #tpu.memory_space<vmem>>, vector<4x1x32xf32>
    %284 = vector.shape_cast %283 : vector<4x1x32xf32> to vector<4x32xf32>
    %285 = vector.shape_cast %282 : vector<4x32xf32> to vector<4x1x32xf32>
    tpu.vector_store %arg11[%c0_74, %c1_75, %c0_76], %285 {strides = array<i32>} : memref<4x7x32xf32, #tpu.memory_space<vmem>>, vector<4x1x32xf32>,
    %286 = vector.extract_strided_slice %21 {offsets = [0, 2, 0], sizes = [4, 1, 128], strides = [1, 1, 1]} : vector<4x7x128xf32> to vector<4x1x128xf32>
    %287 = vector.shape_cast %286 : vector<4x1x128xf32> to vector<4x128xf32>
    %288 = arith.truncf %282 : vector<4x32xf32> to vector<4x32xbf16>
    %cst_77 = arith.constant dense<0.000000e+00> : vector<4x128xf32>
    %289 = tpu.matmul %288, %23, %cst_77 {dimension_numbers = #tpu.dot_dimension_numbers<[1], [0], [0], [1], [0, 0, 1, 1], [], []>} : vector<4x32xbf16>, vector<32x128xbf16>, vector<4x128xf32> -> vector<4x128xf32>
    %290 = arith.addf %287, %289 : vector<4x128xf32>
    %291 = arith.negf %290 : vector<4x128xf32>
    %292 = math.exp %291 : vector<4x128xf32>
    %cst_78 = arith.constant 1.000000e+00 : f32
    %293 = vector.broadcast %cst_78 : f32 to vector<4x128xf32>
    %294 = arith.addf %293, %292 : vector<4x128xf32>
    %295 = arith.divf %293, %294 : vector<4x128xf32>
    %296 = vector.extract_strided_slice %295 {offsets = [0, 0], sizes = [4, 32], strides = [1, 1]} : vector<4x128xf32> to vector<4x32xf32>
    %297 = vector.extract_strided_slice %295 {offsets = [0, 32], sizes = [4, 32], strides = [1, 1]} : vector<4x128xf32> to vector<4x32xf32>
    %298 = vector.extract_strided_slice %295 {offsets = [0, 64], sizes = [4, 32], strides = [1, 1]} : vector<4x128xf32> to vector<4x32xf32>
    %cst_79 = arith.constant 2.000000e+00 : f32
    %299 = vector.broadcast %cst_79 : f32 to vector<4x32xf32>
    %300 = arith.mulf %299, %298 : vector<4x32xf32>
    %cst_80 = arith.constant 1.000000e+00 : f32
    %301 = vector.broadcast %cst_80 : f32 to vector<4x32xf32>
    %302 = arith.subf %300, %301 : vector<4x32xf32>
    %303 = vector.extract_strided_slice %295 {offsets = [0, 96], sizes = [4, 32], strides = [1, 1]} : vector<4x128xf32> to vector<4x32xf32>
    %304 = arith.mulf %297, %280 : vector<4x32xf32>
    %305 = arith.mulf %296, %302 : vector<4x32xf32>
    %306 = arith.addf %304, %305 : vector<4x32xf32>
    %307 = math.tanh %306 : vector<4x32xf32>
    %308 = arith.mulf %303, %307 : vector<4x32xf32>
    %c0_81 = arith.constant 0 : index
    %c2_82 = arith.constant 2 : index
    %c0_83 = arith.constant 0 : index
    %309 = vector.load %arg11[%c0_81, %c2_82, %c0_83] : memref<4x7x32xf32, #tpu.memory_space<vmem>>, vector<4x1x32xf32>
    %310 = vector.shape_cast %309 : vector<4x1x32xf32> to vector<4x32xf32>
    %311 = vector.shape_cast %308 : vector<4x32xf32> to vector<4x1x32xf32>
    tpu.vector_store %arg11[%c0_81, %c2_82, %c0_83], %311 {strides = array<i32>} : memref<4x7x32xf32, #tpu.memory_space<vmem>>, vector<4x1x32xf32>,
    %312 = vector.extract_strided_slice %21 {offsets = [0, 3, 0], sizes = [4, 1, 128], strides = [1, 1, 1]} : vector<4x7x128xf32> to vector<4x1x128xf32>
    %313 = vector.shape_cast %312 : vector<4x1x128xf32> to vector<4x128xf32>
    %314 = arith.truncf %308 : vector<4x32xf32> to vector<4x32xbf16>
    %cst_84 = arith.constant dense<0.000000e+00> : vector<4x128xf32>
    %315 = tpu.matmul %314, %23, %cst_84 {dimension_numbers = #tpu.dot_dimension_numbers<[1], [0], [0], [1], [0, 0, 1, 1], [], []>} : vector<4x32xbf16>, vector<32x128xbf16>, vector<4x128xf32> -> vector<4x128xf32>
    %316 = arith.addf %313, %315 : vector<4x128xf32>
    %317 = arith.negf %316 : vector<4x128xf32>
    %318 = math.exp %317 : vector<4x128xf32>
    %cst_85 = arith.constant 1.000000e+00 : f32
    %319 = vector.broadcast %cst_85 : f32 to vector<4x128xf32>
    %320 = arith.addf %319, %318 : vector<4x128xf32>
    %321 = arith.divf %319, %320 : vector<4x128xf32>
    %322 = vector.extract_strided_slice %321 {offsets = [0, 0], sizes = [4, 32], strides = [1, 1]} : vector<4x128xf32> to vector<4x32xf32>
    %323 = vector.extract_strided_slice %321 {offsets = [0, 32], sizes = [4, 32], strides = [1, 1]} : vector<4x128xf32> to vector<4x32xf32>
    %324 = vector.extract_strided_slice %321 {offsets = [0, 64], sizes = [4, 32], strides = [1, 1]} : vector<4x128xf32> to vector<4x32xf32>
    %cst_86 = arith.constant 2.000000e+00 : f32
    %325 = vector.broadcast %cst_86 : f32 to vector<4x32xf32>
    %326 = arith.mulf %325, %324 : vector<4x32xf32>
    %cst_87 = arith.constant 1.000000e+00 : f32
    %327 = vector.broadcast %cst_87 : f32 to vector<4x32xf32>
    %328 = arith.subf %326, %327 : vector<4x32xf32>
    %329 = vector.extract_strided_slice %321 {offsets = [0, 96], sizes = [4, 32], strides = [1, 1]} : vector<4x128xf32> to vector<4x32xf32>
    %330 = arith.mulf %323, %306 : vector<4x32xf32>
    %331 = arith.mulf %322, %328 : vector<4x32xf32>
    %332 = arith.addf %330, %331 : vector<4x32xf32>
    %333 = math.tanh %332 : vector<4x32xf32>
    %334 = arith.mulf %329, %333 : vector<4x32xf32>
    %c0_88 = arith.constant 0 : index
    %c3_89 = arith.constant 3 : index
    %c0_90 = arith.constant 0 : index
    %335 = vector.load %arg11[%c0_88, %c3_89, %c0_90] : memref<4x7x32xf32, #tpu.memory_space<vmem>>, vector<4x1x32xf32>
    %336 = vector.shape_cast %335 : vector<4x1x32xf32> to vector<4x32xf32>
    %337 = vector.shape_cast %334 : vector<4x32xf32> to vector<4x1x32xf32>
    tpu.vector_store %arg11[%c0_88, %c3_89, %c0_90], %337 {strides = array<i32>} : memref<4x7x32xf32, #tpu.memory_space<vmem>>, vector<4x1x32xf32>,
    %338 = vector.extract_strided_slice %21 {offsets = [0, 4, 0], sizes = [4, 1, 128], strides = [1, 1, 1]} : vector<4x7x128xf32> to vector<4x1x128xf32>
    %339 = vector.shape_cast %338 : vector<4x1x128xf32> to vector<4x128xf32>
    %340 = arith.truncf %334 : vector<4x32xf32> to vector<4x32xbf16>
    %cst_91 = arith.constant dense<0.000000e+00> : vector<4x128xf32>
    %341 = tpu.matmul %340, %23, %cst_91 {dimension_numbers = #tpu.dot_dimension_numbers<[1], [0], [0], [1], [0, 0, 1, 1], [], []>} : vector<4x32xbf16>, vector<32x128xbf16>, vector<4x128xf32> -> vector<4x128xf32>
    %342 = arith.addf %339, %341 : vector<4x128xf32>
    %343 = arith.negf %342 : vector<4x128xf32>
    %344 = math.exp %343 : vector<4x128xf32>
    %cst_92 = arith.constant 1.000000e+00 : f32
    %345 = vector.broadcast %cst_92 : f32 to vector<4x128xf32>
    %346 = arith.addf %345, %344 : vector<4x128xf32>
    %347 = arith.divf %345, %346 : vector<4x128xf32>
    %348 = vector.extract_strided_slice %347 {offsets = [0, 0], sizes = [4, 32], strides = [1, 1]} : vector<4x128xf32> to vector<4x32xf32>
    %349 = vector.extract_strided_slice %347 {offsets = [0, 32], sizes = [4, 32], strides = [1, 1]} : vector<4x128xf32> to vector<4x32xf32>
    %350 = vector.extract_strided_slice %347 {offsets = [0, 64], sizes = [4, 32], strides = [1, 1]} : vector<4x128xf32> to vector<4x32xf32>
    %cst_93 = arith.constant 2.000000e+00 : f32
    %351 = vector.broadcast %cst_93 : f32 to vector<4x32xf32>
    %352 = arith.mulf %351, %350 : vector<4x32xf32>
    %cst_94 = arith.constant 1.000000e+00 : f32
    %353 = vector.broadcast %cst_94 : f32 to vector<4x32xf32>
    %354 = arith.subf %352, %353 : vector<4x32xf32>
    %355 = vector.extract_strided_slice %347 {offsets = [0, 96], sizes = [4, 32], strides = [1, 1]} : vector<4x128xf32> to vector<4x32xf32>
    %356 = arith.mulf %349, %332 : vector<4x32xf32>
    %357 = arith.mulf %348, %354 : vector<4x32xf32>
    %358 = arith.addf %356, %357 : vector<4x32xf32>
    %359 = math.tanh %358 : vector<4x32xf32>
    %360 = arith.mulf %355, %359 : vector<4x32xf32>
    %c0_95 = arith.constant 0 : index
    %c4_96 = arith.constant 4 : index
    %c0_97 = arith.constant 0 : index
    %361 = vector.load %arg11[%c0_95, %c4_96, %c0_97] : memref<4x7x32xf32, #tpu.memory_space<vmem>>, vector<4x1x32xf32>
    %362 = vector.shape_cast %361 : vector<4x1x32xf32> to vector<4x32xf32>
    %363 = vector.shape_cast %360 : vector<4x32xf32> to vector<4x1x32xf32>
    tpu.vector_store %arg11[%c0_95, %c4_96, %c0_97], %363 {strides = array<i32>} : memref<4x7x32xf32, #tpu.memory_space<vmem>>, vector<4x1x32xf32>,
    %364 = vector.extract_strided_slice %21 {offsets = [0, 5, 0], sizes = [4, 1, 128], strides = [1, 1, 1]} : vector<4x7x128xf32> to vector<4x1x128xf32>
    %365 = vector.shape_cast %364 : vector<4x1x128xf32> to vector<4x128xf32>
    %366 = arith.truncf %360 : vector<4x32xf32> to vector<4x32xbf16>
    %cst_98 = arith.constant dense<0.000000e+00> : vector<4x128xf32>
    %367 = tpu.matmul %366, %23, %cst_98 {dimension_numbers = #tpu.dot_dimension_numbers<[1], [0], [0], [1], [0, 0, 1, 1], [], []>} : vector<4x32xbf16>, vector<32x128xbf16>, vector<4x128xf32> -> vector<4x128xf32>
    %368 = arith.addf %365, %367 : vector<4x128xf32>
    %369 = arith.negf %368 : vector<4x128xf32>
    %370 = math.exp %369 : vector<4x128xf32>
    %cst_99 = arith.constant 1.000000e+00 : f32
    %371 = vector.broadcast %cst_99 : f32 to vector<4x128xf32>
    %372 = arith.addf %371, %370 : vector<4x128xf32>
    %373 = arith.divf %371, %372 : vector<4x128xf32>
    %374 = vector.extract_strided_slice %373 {offsets = [0, 0], sizes = [4, 32], strides = [1, 1]} : vector<4x128xf32> to vector<4x32xf32>
    %375 = vector.extract_strided_slice %373 {offsets = [0, 32], sizes = [4, 32], strides = [1, 1]} : vector<4x128xf32> to vector<4x32xf32>
    %376 = vector.extract_strided_slice %373 {offsets = [0, 64], sizes = [4, 32], strides = [1, 1]} : vector<4x128xf32> to vector<4x32xf32>
    %cst_100 = arith.constant 2.000000e+00 : f32
    %377 = vector.broadcast %cst_100 : f32 to vector<4x32xf32>
    %378 = arith.mulf %377, %376 : vector<4x32xf32>
    %cst_101 = arith.constant 1.000000e+00 : f32
    %379 = vector.broadcast %cst_101 : f32 to vector<4x32xf32>
    %380 = arith.subf %378, %379 : vector<4x32xf32>
    %381 = vector.extract_strided_slice %373 {offsets = [0, 96], sizes = [4, 32], strides = [1, 1]} : vector<4x128xf32> to vector<4x32xf32>
    %382 = arith.mulf %375, %358 : vector<4x32xf32>
    %383 = arith.mulf %374, %380 : vector<4x32xf32>
    %384 = arith.addf %382, %383 : vector<4x32xf32>
    %385 = math.tanh %384 : vector<4x32xf32>
    %386 = arith.mulf %381, %385 : vector<4x32xf32>
    %c0_102 = arith.constant 0 : index
    %c5_103 = arith.constant 5 : index
    %c0_104 = arith.constant 0 : index
    %387 = vector.load %arg11[%c0_102, %c5_103, %c0_104] : memref<4x7x32xf32, #tpu.memory_space<vmem>>, vector<4x1x32xf32>
    %388 = vector.shape_cast %387 : vector<4x1x32xf32> to vector<4x32xf32>
    %389 = vector.shape_cast %386 : vector<4x32xf32> to vector<4x1x32xf32>
    tpu.vector_store %arg11[%c0_102, %c5_103, %c0_104], %389 {strides = array<i32>} : memref<4x7x32xf32, #tpu.memory_space<vmem>>, vector<4x1x32xf32>,
    %390 = vector.extract_strided_slice %21 {offsets = [0, 6, 0], sizes = [4, 1, 128], strides = [1, 1, 1]} : vector<4x7x128xf32> to vector<4x1x128xf32>
    %391 = vector.shape_cast %390 : vector<4x1x128xf32> to vector<4x128xf32>
    %392 = arith.truncf %386 : vector<4x32xf32> to vector<4x32xbf16>
    %cst_105 = arith.constant dense<0.000000e+00> : vector<4x128xf32>
    %393 = tpu.matmul %392, %23, %cst_105 {dimension_numbers = #tpu.dot_dimension_numbers<[1], [0], [0], [1], [0, 0, 1, 1], [], []>} : vector<4x32xbf16>, vector<32x128xbf16>, vector<4x128xf32> -> vector<4x128xf32>
    %394 = arith.addf %391, %393 : vector<4x128xf32>
    %395 = arith.negf %394 : vector<4x128xf32>
    %396 = math.exp %395 : vector<4x128xf32>
    %cst_106 = arith.constant 1.000000e+00 : f32
    %397 = vector.broadcast %cst_106 : f32 to vector<4x128xf32>
    %398 = arith.addf %397, %396 : vector<4x128xf32>
    %399 = arith.divf %397, %398 : vector<4x128xf32>
    %400 = vector.extract_strided_slice %399 {offsets = [0, 0], sizes = [4, 32], strides = [1, 1]} : vector<4x128xf32> to vector<4x32xf32>
    %401 = vector.extract_strided_slice %399 {offsets = [0, 32], sizes = [4, 32], strides = [1, 1]} : vector<4x128xf32> to vector<4x32xf32>
    %402 = vector.extract_strided_slice %399 {offsets = [0, 64], sizes = [4, 32], strides = [1, 1]} : vector<4x128xf32> to vector<4x32xf32>
    %cst_107 = arith.constant 2.000000e+00 : f32
    %403 = vector.broadcast %cst_107 : f32 to vector<4x32xf32>
    %404 = arith.mulf %403, %402 : vector<4x32xf32>
    %cst_108 = arith.constant 1.000000e+00 : f32
    %405 = vector.broadcast %cst_108 : f32 to vector<4x32xf32>
    %406 = arith.subf %404, %405 : vector<4x32xf32>
    %407 = vector.extract_strided_slice %399 {offsets = [0, 96], sizes = [4, 32], strides = [1, 1]} : vector<4x128xf32> to vector<4x32xf32>
    %408 = arith.mulf %401, %384 : vector<4x32xf32>
    %409 = arith.mulf %400, %406 : vector<4x32xf32>
    %410 = arith.addf %408, %409 : vector<4x32xf32>
    %411 = math.tanh %410 : vector<4x32xf32>
    %412 = arith.mulf %407, %411 : vector<4x32xf32>
    %c0_109 = arith.constant 0 : index
    %c6_110 = arith.constant 6 : index
    %c0_111 = arith.constant 0 : index
    %413 = vector.load %arg11[%c0_109, %c6_110, %c0_111] : memref<4x7x32xf32, #tpu.memory_space<vmem>>, vector<4x1x32xf32>
    %414 = vector.shape_cast %413 : vector<4x1x32xf32> to vector<4x32xf32>
    %415 = vector.shape_cast %412 : vector<4x32xf32> to vector<4x1x32xf32>
    tpu.vector_store %arg11[%c0_109, %c6_110, %c0_111], %415 {strides = array<i32>} : memref<4x7x32xf32, #tpu.memory_space<vmem>>, vector<4x1x32xf32>,
    %c0_112 = arith.constant 0 : index
    %c0_113 = arith.constant 0 : index
    %c0_114 = arith.constant 0 : index
    %416 = vector.load %arg10[%c0_112, %c0_113, %c0_114] : memref<4x8x32xf32, #tpu.memory_space<vmem>>, vector<4x8x32xf32>
    %c0_115 = arith.constant 0 : index
    %c0_116 = arith.constant 0 : index
    %c0_117 = arith.constant 0 : index
    %417 = vector.load %arg11[%c0_115, %c0_116, %c0_117] : memref<4x7x32xf32, #tpu.memory_space<vmem>>, vector<4x7x32xf32>
    %418 = arith.truncf %417 : vector<4x7x32xf32> to vector<4x7x32xbf16>
    %419 = arith.truncf %416 : vector<4x8x32xf32> to vector<4x8x32xbf16>
    "tpu.trace_start"() <{level = 10 : i32, message = "bth,bsh->bts"}> : () -> ()
    %cst_118 = arith.constant dense<0.000000e+00> : vector<4x7x8xf32>
    %420 = tpu.matmul %418, %419, %cst_118 {dimension_numbers = #tpu.dot_dimension_numbers<[2], [2], [1], [1], [0, 0, 0, 1, 1, 1], [0], [0]>} : vector<4x7x32xbf16>, vector<4x8x32xbf16>, vector<4x7x8xf32> -> vector<4x7x8xf32>
    "tpu.trace_stop"() : () -> ()
    %cst_119 = arith.constant dense<0xFF800000> : vector<4x7xf32>
    %421 = vector.multi_reduction <maximumf>, %420, %cst_119 [2] : vector<4x7x8xf32> to vector<4x7xf32>
    %422 = vector.shape_cast %421 : vector<4x7xf32> to vector<4x7x1xf32>
    %423 = vector.broadcast %422 : vector<4x7x1xf32> to vector<4x7x8xf32>
    %424 = arith.subf %420, %423 : vector<4x7x8xf32>
    %425 = math.exp %424 : vector<4x7x8xf32>
    %cst_120 = arith.constant dense<0.000000e+00> : vector<4x7xf32>
    %426 = vector.multi_reduction <add>, %425, %cst_120 [2] : vector<4x7x8xf32> to vector<4x7xf32>
    %427 = vector.shape_cast %426 : vector<4x7xf32> to vector<4x7x1xf32>
    %428 = tpu.reciprocal %427 {approx = true} : vector<4x7x1xf32> -> vector<4x7x1xf32>
    %429 = vector.broadcast %428 : vector<4x7x1xf32> to vector<4x7x8xf32>
    %430 = arith.mulf %425, %429 : vector<4x7x8xf32>
    %431 = arith.truncf %430 : vector<4x7x8xf32> to vector<4x7x8xbf16>
    %432 = arith.truncf %416 : vector<4x8x32xf32> to vector<4x8x32xbf16>
    "tpu.trace_start"() <{level = 10 : i32, message = "bts,bsh->bth"}> : () -> ()
    %cst_121 = arith.constant dense<0.000000e+00> : vector<4x7x32xf32>
    %433 = tpu.matmul %431, %432, %cst_121 {dimension_numbers = #tpu.dot_dimension_numbers<[2], [1], [1], [2], [0, 0, 0, 1, 1, 2], [0], [0]>} : vector<4x7x8xbf16>, vector<4x8x32xbf16>, vector<4x7x32xf32> -> vector<4x7x32xf32>
    "tpu.trace_stop"() : () -> ()
    %434 = vector.shape_cast %433 : vector<4x7x32xf32> to vector<28x32xf32>
    %435 = arith.truncf %434 : vector<28x32xf32> to vector<28x32xbf16>
    %c0_122 = arith.constant 0 : index
    %c0_123 = arith.constant 0 : index
    %436 = vector.load %arg6[%c0_122, %c0_123] : memref<32x32xbf16, #tpu.memory_space<vmem>>, vector<32x32xbf16>
    %cst_124 = arith.constant dense<0.000000e+00> : vector<28x32xf32>
    %437 = tpu.matmul %435, %436, %cst_124 {dimension_numbers = #tpu.dot_dimension_numbers<[1], [0], [0], [1], [0, 0, 1, 1], [], []>} : vector<28x32xbf16>, vector<32x32xbf16>, vector<28x32xf32> -> vector<28x32xf32>
    %438 = vector.shape_cast %417 : vector<4x7x32xf32> to vector<28x32xf32>
    %439 = arith.truncf %438 : vector<28x32xf32> to vector<28x32xbf16>
    %c0_125 = arith.constant 0 : index
    %c0_126 = arith.constant 0 : index
    %440 = vector.load %arg7[%c0_125, %c0_126] : memref<32x32xbf16, #tpu.memory_space<vmem>>, vector<32x32xbf16>
    %cst_127 = arith.constant dense<0.000000e+00> : vector<28x32xf32>
    %441 = tpu.matmul %439, %440, %cst_127 {dimension_numbers = #tpu.dot_dimension_numbers<[1], [0], [0], [1], [0, 0, 1, 1], [], []>} : vector<28x32xbf16>, vector<32x32xbf16>, vector<28x32xf32> -> vector<28x32xf32>
    %442 = arith.addf %437, %441 : vector<28x32xf32>
    %443 = math.tanh %442 : vector<28x32xf32>
    %444 = arith.truncf %443 : vector<28x32xf32> to vector<28x32xbf16>
    %c0_128 = arith.constant 0 : index
    %c0_129 = arith.constant 0 : index
    %445 = vector.load %arg8[%c0_128, %c0_129] : memref<32x128xbf16, #tpu.memory_space<vmem>>, vector<32x128xbf16>
    %cst_130 = arith.constant dense<0.000000e+00> : vector<28x128xf32>
    %446 = tpu.matmul %444, %445, %cst_130 {dimension_numbers = #tpu.dot_dimension_numbers<[1], [0], [0], [1], [0, 0, 1, 1], [], []>} : vector<28x32xbf16>, vector<32x128xbf16>, vector<28x128xf32> -> vector<28x128xf32>
    %447 = vector.shape_cast %446 : vector<28x128xf32> to vector<4x7x128xf32>
    %c0_131 = arith.constant 0 : index
    %c0_132 = arith.constant 0 : index
    %c0_133 = arith.constant 0 : index
    %448 = vector.load %arg9[%c0_131, %c0_132, %c0_133] : memref<4x7x128xf32, #tpu.memory_space<vmem>>, vector<4x7x128xf32>
    tpu.vector_store %arg9[%c0_131, %c0_132, %c0_133], %447 {strides = array<i32>} : memref<4x7x128xf32, #tpu.memory_space<vmem>>, vector<4x7x128xf32>,
    return
  }
}

</mosaic_0001>

<bundles_post_ra>
// kernel: seq2seq_forward.1
= control target key start
LH: loop header
LB: loop body
LE: loop exit
PB: predicated region body
PF: predicated region fallthrough
CT: control target
= control target key end

     0   :  { %14 = vsyncpa [#allocation5], 0  ;;  %s6968_s0 = inlined_call_operand.hbm [shape: s32[4,8], index: 0, kind: input, shape index: {}]   ;;  %s6969_s1 = inlined_call_operand.hbm [shape: s32[4,7], index: 1, kind: input, shape index: {}]   ;;  %s6970_s2 = inlined_call_operand.hbm [shape: f32[64,128], index: 2, kind: input, shape index: {}]   ;;  %s6971_s3 = inlined_call_operand.hbm [shape: bf16[32,128], index: 3, kind: input, shape index: {}]   ;;  %s6972_s4 = inlined_call_operand.hbm [shape: f32[64,128], index: 4, kind: input, shape index: {}]   ;;  %s6973_s5 = inlined_call_operand.hbm [shape: bf16[32,128], index: 5, kind: input, shape index: {}]   ;;  %s6974_s6 = inlined_call_operand.hbm [shape: bf16[32,32], index: 6, kind: input, shape index: {}]   ;;  %s6975_s7 = inlined_call_operand.hbm [shape: bf16[32,32], index: 7, kind: input, shape index: {}]   ;;  %s6976_s8 = inlined_call_operand.hbm [shape: bf16[32,128], index: 8, kind: input, shape index: {}]   ;;  %s6977_s9 = inlined_call_operand.vmem [shape: f32[4,7,128], index: 9, kind: output, shape index: {}]  }
   0x1   :  { %15 = vsyncpa [#allocation7], 0 }
   0x2   :  { %16 = vsyncpa [#allocation10], 0 }
   0x3   :  { %17 = vsyncpa [#allocation13], 0  ;;  %s35_s11 = sshll.u32 %s6969_s1, 4  ;;  %s36_s11 = int_to_ptr.hbm [resolvable:$true] %s35_s11 }
   0x4   :  { %18 = vsyncpa [#allocation16], 0  ;;  %s5353_s12 = smov [#allocation6]   ;;  %s58_s16 = sshll.u32 %s6971_s3, 4  ;;  %s59_s16 = int_to_ptr.hbm [resolvable:$true] %s58_s16 }
   0x5   :  { %s37_s13 = sshll.u32 %s5353_s12, 4  ;;  %s5354_s17 = smov [#allocation9]   ;;  %s38_s13 = int_to_ptr.vmem [resolvable:$true] %s37_s13 }
   0x6   :  { %40 = dma.hbm_to_vmem [thread:$0]  %s36_s11, 64, %s38_s13, [#allocation7]  }
   0x7   :  { %s60_s18 = sshll.u32 %s5354_s17, 4  ;;  %s5355_s19 = smov 64   ;;  %s61_s18 = int_to_ptr.vmem [resolvable:$true] %s60_s18 }
   0x8   :  { %s5356_s20 = smov 4   ;;  %s84_s22 = sshll.u32 %s6973_s5, 4  ;;  %s85_s22 = int_to_ptr.hbm [resolvable:$true] %s84_s22 }
   0x9   :  { %66 = dma.hbm_to_vmem [thread:$0]  %s59_s16, 256, %s61_s18, [#allocation10], %s5355_s19, %s5355_s19, %s5356_s20  }
   0xa   :  { %s5357_s23 = smov [#allocation12]   ;;  %s110_s26 = sshll.u32 %s6975_s7, 4  ;;  %s111_s26 = int_to_ptr.hbm [resolvable:$true] %s110_s26 }
   0xb   :  { %s86_s24 = sshll.u32 %s5357_s23, 4  ;;  %s5358_s27 = smov [#allocation15]   ;;  %s87_s24 = int_to_ptr.vmem [resolvable:$true] %s86_s24 }
   0xc   :  { %92 = dma.hbm_to_vmem [thread:$0]  %s85_s22, 256, %s87_s24, [#allocation13], %s5355_s19, %s5355_s19, %s5356_s20  }
   0xd   :  { %s112_s28 = sshll.u32 %s5358_s27, 4  ;;  %s24_s10 = sshll.u32 %s6968_s0, 4  ;;  %s113_s28 = int_to_ptr.vmem [resolvable:$true] %s112_s28  ;;  %s25_s10 = int_to_ptr.hbm [resolvable:$true] %s24_s10 }
   0xe   :  { %118 = dma.hbm_to_vmem [thread:$0]  %s111_s26, 256, %s113_s28, [#allocation16], %s5355_s19, %s5355_s19, %s5356_s20  }
   0xf   :  { %s45_s7 = sshll.u32 %s6970_s2, 4  ;;  %s5359_s12 = smov [#allocation4]   ;;  %s46_s7 = int_to_ptr.hbm [resolvable:$true] %s45_s7 }
  0x10   :  { %s26_s13 = sshll.u32 %s5359_s12, 4  ;;  %s5360_s14 = smov [#allocation8]   ;;  %s27_s13 = int_to_ptr.vmem [resolvable:$true] %s26_s13 }
  0x11   :  { %29 = dma.hbm_to_vmem [thread:$0]  %s25_s10, 64, %s27_s13, [#allocation5]  }
  0x12   :  { %s47_s15 = sshll.u32 %s5360_s14, 4  ;;  %s5361_s16 = smov 128   ;;  %s48_s15 = int_to_ptr.vmem [resolvable:$true] %s47_s15 }
  0x13   :  { %s5362_s0 = smov 8   ;;  %s71_s1 = sshll.u32 %s6972_s4, 4  ;;  %s72_s1 = int_to_ptr.hbm [resolvable:$true] %s71_s1 }
  0x14   :  { %53 = dma.hbm_to_vmem [thread:$0]  %s46_s7, 1024, %s48_s15, [#allocation7], %s5361_s16, %s5361_s16, %s5362_s0  }
  0x15   :  { %s5363_s21 = smov [#allocation11]   ;;  %s97_s24 = sshll.u32 %s6974_s6, 4  ;;  %s98_s24 = int_to_ptr.hbm [resolvable:$true] %s97_s24 }
  0x16   :  { %s73_s22 = sshll.u32 %s5363_s21, 4  ;;  %s5364_s3 = smov [#allocation14]   ;;  %s74_s22 = int_to_ptr.vmem [resolvable:$true] %s73_s22 }
  0x17   :  { %79 = dma.hbm_to_vmem [thread:$0]  %s72_s1, 1024, %s74_s22, [#allocation10], %s5361_s16, %s5361_s16, %s5362_s0  }
  0x18   :  { %s99_s25 = sshll.u32 %s5364_s3, 4  ;;  %s123_s28 = sshll.u32 %s6976_s8, 4  ;;  %s100_s25 = int_to_ptr.vmem [resolvable:$true] %s99_s25  ;;  %s124_s28 = int_to_ptr.hbm [resolvable:$true] %s123_s28 }
  0x19   :  { %105 = dma.hbm_to_vmem [thread:$0]  %s98_s24, 256, %s100_s25, [#allocation13], %s5355_s19, %s5355_s19, %s5356_s20  }
  0x1a   :  { %s5365_s4 = smov [#allocation17]  }
  0x1b   :  { %s125_s29 = sshll.u32 %s5365_s4, 4  ;;  %s126_s29 = int_to_ptr.vmem [resolvable:$true] %s125_s29 }
  0x1c   :  { %131 = dma.hbm_to_vmem [thread:$0]  %s124_s28, 256, %s126_s29, [#allocation16], %s5355_s19, %s5355_s19, %s5356_s20  }
  0x1d   :  { %5343 = dma.done.wait [#allocation5], 64  }
  0x1e   :  { %5344 = vsyncadd [#allocation5], 4294967232 }
  0x1f   :  { %5345 = dma.done.wait [#allocation7], 1088  }
  0x20   :  { %5346 = vsyncadd [#allocation7], 4294966208 }
  0x21   :  { %5347 = dma.done.wait [#allocation10], 1280  }
  0x22   :  { %5348 = vsyncadd [#allocation10], 4294966016 }
  0x23   :  { %5349 = dma.done.wait [#allocation13], 512  }
  0x24   :  { %5350 = vsyncadd [#allocation13], 4294966784 }
  0x25   :  { %5351 = dma.done.wait [#allocation16], 512  }
  0x26   :  { %5352 = vsyncadd [#allocation16], 4294966784  ;;  %v170_v0 = vlaneseq  ;;  %v169_v2 = vld [vmem:[#allocation4] sm:$0xf]  ;;  %v218_v4 = vld [vmem:[#allocation8 + $0x30] sm:$0xff]  ;;  %vm6978_vm0 = vcmask 523264  }
  0x27   :  { %v219_v3 = vld [vmem:[#allocation8 + $0x38] sm:$0xff]  ;;  %v172_v5 = vperm.slane %v169_v2, 0  ;;  %v186_v6 = vperm.slane %v169_v2, 2  ;;  %v217_v7 = vld [vmem:[#allocation8 + $0x28] sm:$0xff]  ;;  %v216_v8 = vld [vmem:[#allocation8 + $0x20] sm:$0xff]  ;;  %v179_v10 = vperm.slane %v169_v2, 1 }
  0x28   :  { %v174_v1 = vshrl.u32 %v170_v0, 7  ;;  %241 = vmatpush.msra.mxu0 %v219_v3  ;;  %v215_v9 = vld [vmem:[#allocation8 + $0x18] sm:$0xff]  ;;  %v193_v11 = vperm.slane %v169_v2, 3  ;;  %v214_v12 = vld [vmem:[#allocation8 + $0x10] sm:$0xff]  ;;  %v213_v13 = vld [vmem:[#allocation8 + $0x8] sm:$0xff]  ;;  %v5475_v17 = vand.u32 127, %v170_v0 }
  0x29   :  { %v212_v14 = vld [vmem:[#allocation8] sm:$0xff]  ;;  %v5461_v15 = vld [vmem:[#allocation9 + $0x8] sm:$0xff]  ;;  %v6982_v19 = vmov 0.0   ;;  %v5367_v27 = vmov 0   ;;  %s5368_s6 = smov 32  }
  0x2a   :  { %4738 = vset.pattern.permute.xlu0 %v174_v1  ;;  %4739 = vset.pattern.permute.xlu1 %v174_v1  ;;  %v5466_v16 = vld [vmem:[#allocation9] sm:$0xff] }
  0x2b   :  { %4740 = vset.pattern.permute.xlu2 %v174_v1  ;;  %242 = vmatpush.msra.mxu0 %v218_v4 }
  0x2c   :  { %722 = vmatpush.bf16.msra.mxu3 %v5461_v15  ;;  %956 = vmatpush.bf16.msra.mxu2 %v5461_v15 }
  0x2d   :  { %243 = vmatpush.msra.mxu0 %v217_v7 }
  0x2f   :  { %244 = vmatpush.msra.mxu0 %v216_v8 }
  0x30   :  { %723 = vmatpush.bf16.msra.mxu3 %v5466_v16  ;;  %957 = vmatpush.bf16.msra.mxu2 %v5466_v16 }
  0x31   :  { %245 = vmatpush.msra.mxu0 %v215_v9 }
  0x32   :  { %177 = vperm.xlu0 %4738, %v172_v5   ;;  %191 = vperm.xlu1 %4739, %v186_v6  }
  0x33   :  { %246 = vmatpush.msra.mxu0 %v214_v12 }
  0x34   :  { %1190 = vmatpush.bf16.msrb.mxu3 %v5461_v15  ;;  %1424 = vmatpush.bf16.msrb.mxu2 %v5461_v15 }
  0x35   :  { %247 = vmatpush.msra.mxu0 %v213_v13 }
  0x37   :  { %248 = vmatpush.msra.mxu0 %v212_v14 }
  0x38   :  { %1191 = vmatpush.bf16.msrb.mxu3 %v5466_v16  ;;  %1425 = vmatpush.bf16.msrb.mxu2 %v5466_v16 }
  0x39   :  { %497 = vmatpush.bf16.msrb.mxu0 %v5461_v15 }
  0x3a   :  { %184 = vperm.xlu0 %4738, %v179_v10   ;;  %198 = vperm.xlu1 %4739, %v193_v11  }
  0x3d   :  { %498 = vmatpush.bf16.msrb.mxu0 %v5466_v16 }
  0xa4   :  { %v178_v18 = vpop.permute.xlu0 %177  ;;  %v192_v22 = vpop.permute.xlu1 %191 }
  0xa5   :  { %vm200_vm1 = vcmp.eq.s32.totalorder %v178_v18, %v5475_v17  ;;  %vm202_vm3 = vcmp.eq.s32.totalorder %v192_v22, %v5475_v17 }
  0xa6   :  { %v4508_v20 = vsel %vm200_vm1, 1.0, %v6982_v19  ;;  %v4510_v24 = vsel %vm202_vm3, 1.0, %v6982_v19 }
  0xa7   :  { %4512 = vmatmul.msk.f32.vlgmr.msra.gmra.mxu0 %vm6978_vm0, %v4508_v20 }
  0xa8   :  { %1896 = vmatpush.bf16.msra.mxu0 %v5461_v15 }
  0xac   :  { %v185_v21 = vpop.permute.xlu0 %184  ;;  %1897 = vmatpush.bf16.msra.mxu0 %v5466_v16  ;;  %v199_v25 = vpop.permute.xlu1 %198 }
  0xad   :  { %vm201_vm2 = vcmp.eq.s32.totalorder %v185_v21, %v5475_v17  ;;  %vm203_vm4 = vcmp.eq.s32.totalorder %v199_v25, %v5475_v17 }
  0xae   :  { %v4509_v23 = vsel %vm201_vm2, 1.0, %v6982_v19  ;;  %v4511_v26 = vsel %vm203_vm4, 1.0, %v6982_v19 }
  0xaf   :  { %4513 = vmatmul.msk.f32.gmra.mxu0 %vm6978_vm0, %v4509_v23 }
  0xb7   :  { %4514 = vmatmul.msk.f32.gmra.mxu0 %vm6978_vm0, %v4510_v24 }
  0xbf   :  { %4515 = vmatmul.msk.f32.gmra.mxu0 %vm6978_vm0, %v4511_v26 }
  0xc7   :  { %499 = vmatmul.bf16.vlgmr.msrb.gmra.mxu0 %v5367_v27 }
 0x124   :  { %v5491_v28 = vpop.f32.mrf.mxu0 }
 0x12c   :  { %v5493_v29 = vpop.f32.mrf.mxu0 }
 0x134   :  { %v5495_v30 = vpop.f32.mrf.mxu0 }
 0x13c   :  { %v5497_v31 = vpop.f32.mrf.mxu0 }
 0x144   :  { %v500_v32 = vpop.f32.mrf.mxu0 }
 0x145   :  { %v505_v33 = vrot.slane %v500_v32, 1  ;;  %v506_v34 = vrot.slane %v500_v32, 2  ;;  %v507_v35 = vrot.slane %v500_v32, 3  ;;  %v512_v36 = vadd.f32 %v500_v32, %v5491_v28 }
 0x147   :  { %v513_v37 = vadd.f32 %v505_v33, %v5493_v29  ;;  %v514_v38 = vadd.f32 %v506_v34, %v5495_v30  ;;  %v515_v39 = vadd.f32 %v507_v35, %v5497_v31  ;;  %v4532_v40 = vmul.f32 -1.442695, %v512_v36 }
 0x149   :  { %4741 = vpow2.f32 %v4532_v40  ;;  %v4533_v41 = vmul.f32 -1.442695, %v513_v37  ;;  %v4534_v42 = vmul.f32 -1.442695, %v514_v38  ;;  %v4535_v43 = vmul.f32 -1.442695, %v515_v39 }
 0x14b   :  { %4743 = vpow2.f32 %v4533_v41 }
 0x14c   :  { %4745 = vpow2.f32 %v4534_v42  ;;  %v502_v44 = vpop.f32.mrf.mxu0 }
 0x14d   :  { %4747 = vpow2.f32 %v4535_v43 }
 0x14f   :  { %v4742_v45 = vpop.eup %4741 }
 0x150   :  { %v528_v46 = vadd.f32 1.0, %v4742_v45 }
 0x151   :  { %v4744_v47 = vpop.eup %4743 }
 0x152   :  { %v4746_v48 = vpop.eup %4745  ;;  %v529_v49 = vadd.f32 1.0, %v4744_v47  ;;  %4749 = vrcp.f32 %v528_v46  ;;  %v541_v53 = vand.u32 2147483647, %v528_v46  ;;  %v543_v55 = vand.u32 2147483648, %v528_v46 }
 0x153   :  { %v4748_v50 = vpop.eup %4747  ;;  %v5503_v51 = vadd.f32 1.0, %v4746_v48  ;;  %vm537_vm5 = vweird.f32 %v528_v46 }
 0x154   :  { %v531_v52 = vadd.f32 1.0, %v4748_v50  ;;  %4751 = vrcp.f32 %v529_v49  ;;  %vm5506_vm6 = vcmp.eq.f32.partialorder %v541_v53, 8.507059e+37  ;;  %vm552_vm7 = vweird.f32 %v529_v49 }
 0x155   :  { %4753 = vrcp.f32 %v5503_v51  ;;  %v544_v63 = vor.u32 1.1754944e-38, %v543_v55  ;;  %v556_v0 = vand.u32 2147483647, %v529_v49  ;;  %v558_v1 = vand.u32 2147483648, %v529_v49 }
 0x156   :  { %4755 = vrcp.f32 %v531_v52  ;;  %vm582_vm9 = vweird.f32 %v531_v52  ;;  %v586_v6 = vand.u32 2147483647, %v531_v52  ;;  %v588_v7 = vand.u32 2147483648, %v531_v52 }
 0x157   :  { %vm5512_vm12 = vcmp.eq.f32.partialorder %v556_v0, 8.507059e+37  ;;  %v559_v13 = vor.u32 1.1754944e-38, %v558_v1  ;;  %vm567_vm1 = vweird.f32 %v5503_v51  ;;  %v573_v24 = vand.u32 2147483648, %v5503_v51 }
 0x158   :  { %v4750_v54 = vpop.eup %4749  ;;  %v571_v33 = vand.u32 2147483647, %v5503_v51  ;;  %vm587_vm4 = vcmp.eq.f32.partialorder %v586_v6, 8.507059e+37  ;;  %v589_v34 = vor.u32 1.1754944e-38, %v588_v7 }
 0x159   :  { %v533_v56 = vmul.f32 %v4750_v54, %v528_v46  ;;  %vm538_vm8 = vweird.f32 %v4750_v54  ;;  %v574_v41 = vor.u32 1.1754944e-38, %v573_v24 }
 0x15a   :  { %v4752_v57 = vpop.eup %4751  ;;  %vm539_vm11 = vmor %vm537_vm5, %vm538_vm8  ;;  %vm572_vm5 = vcmp.eq.f32.partialorder %v571_v33, 8.507059e+37  ;;  %vm6980_vm8 = vcmask 1043459  }
 0x15b   :  { %v4754_v58 = vpop.eup %4753  ;;  %v534_v59 = vsub.f32 1.0, %v533_v56  ;;  %v548_v61 = vmul.f32 %v4752_v57, %v529_v49  ;;  %vm553_vm10 = vweird.f32 %v4752_v57 }
 0x15c   :  { %v4756_v62 = vpop.eup %4755  ;;  %v563_v2 = vmul.f32 %v4754_v58, %v5503_v51  ;;  %vm568_vm13 = vweird.f32 %v4754_v58  ;;  %vm554_vm15 = vmor %vm552_vm7, %vm553_vm10  ;;  %vm6981_vm7 = vcmask 1042434  }
 0x15d   :  { %v535_v3 = vmul.f32 %v4750_v54, %v534_v59  ;;  %v578_v4 = vmul.f32 %v4756_v62, %v531_v52  ;;  %v549_v5 = vsub.f32 1.0, %v548_v61  ;;  %vm583_vm14 = vweird.f32 %v4756_v62  ;;  %vm5524_vm2 = vmor %vm567_vm1, %vm568_vm13 }
 0x15e   :  { %v564_v8 = vsub.f32 1.0, %v563_v2  ;;  %vm584_vm3 = vmor %vm582_vm9, %vm583_vm14  ;;  %vm6979_vm9 = vcmask 261120  }
 0x15f   :  { %v536_v9 = vadd.f32 %v4750_v54, %v535_v3  ;;  %v579_v10 = vsub.f32 1.0, %v578_v4  ;;  %v550_v11 = vmul.f32 %v4752_v57, %v549_v5 }
 0x160   :  { %v565_v14 = vmul.f32 %v4754_v58, %v564_v8 }
 0x161   :  { %v540_v18 = vsel %vm539_vm11, %v4750_v54, %v536_v9  ;;  %v580_v20 = vmul.f32 %v4756_v62, %v579_v10  ;;  %v551_v21 = vadd.f32 %v4752_v57, %v550_v11 }
 0x162   :  { %v5518_v22 = vsel %vm5506_vm6, %v544_v63, %v540_v18  ;;  %v566_v23 = vadd.f32 %v4754_v58, %v565_v14  ;;  %vm702_vm6 = vcmask 1041409  }
 0x163   :  { %v592_v25 = vmul.f32 2.0, %v5518_v22  ;;  %v581_v26 = vadd.f32 %v4756_v62, %v580_v20  ;;  %v555_v27 = vsel %vm554_vm15, %v4752_v57, %v551_v21  ;;  %v600_v4 = vmul.f32 0.0, %v5518_v22 }
 0x164   :  { %v560_v35 = vsel %vm5512_vm12, %v559_v13, %v555_v27  ;;  %v570_v39 = vsel %vm5524_vm2, %v4754_v58, %v566_v23 }
 0x165   :  { %v4536_v36 = vadd.f32 -1.0, %v592_v25  ;;  %v585_v37 = vsel %vm584_vm3, %v4756_v62, %v581_v26  ;;  %v593_v38 = vmul.f32 2.0, %v560_v35  ;;  %v575_v44 = vsel %vm572_vm5, %v574_v41, %v570_v39 }
 0x166   :  { %v590_v40 = vsel %vm587_vm4, %v589_v34, %v585_v37  ;;  %v594_v46 = vmul.f32 2.0, %v575_v44  ;;  %v601_v56 = vmul.f32 0.0, %v560_v35  ;;  %v602_v63 = vmul.f32 0.0, %v575_v44 }
 0x167   :  { %608 = vrot.lane.b32.xlu0 %v4536_v36, %s5355_s19  ;;  %v595_v42 = vmul.f32 2.0, %v590_v40  ;;  %v4537_v43 = vadd.f32 -1.0, %v593_v38  ;;  %v603_v60 = vmul.f32 0.0, %v590_v40 }
 0x168   :  { %v4538_v47 = vadd.f32 -1.0, %v594_v46 }
 0x169   :  { %v4539_v45 = vadd.f32 -1.0, %v595_v42  ;;  %610 = vrot.lane.b32.xlu2 %v4537_v43, %s5355_s19 }
 0x16b   :  { %614 = vrot.lane.b32.xlu1 %v4539_v45, %s5355_s19 }
 0x171   :  { %612 = vrot.lane.b32.xlu2 %v4538_v47, %s5355_s19 }
 0x1c3   :  { %v611_v48 = vpop.permute.xlu2 %610 }
 0x1c4   :  { %v621_v49 = vmul.f32 %v611_v48, %v560_v35 }
 0x1c6   :  { %630 = vrot.lane.b32.xlu2 %v621_v49, %s5368_s6 }
 0x1cb   :  { %v613_v50 = vpop.permute.xlu2 %612 }
 0x1cc   :  { %v622_v51 = vmul.f32 %v613_v50, %v575_v44 }
 0x1ce   :  { %632 = vrot.lane.b32.xlu0 %v622_v51, %s5368_s6 }
 0x1d9   :  { %v609_v52 = vpop.permute.xlu0 %608 }
 0x1da   :  { %v620_v53 = vmul.f32 %v609_v52, %v5518_v22 }
 0x1dc   :  { %628 = vrot.lane.b32.xlu1 %v620_v53, %s5368_s6 }
 0x1dd   :  { %v615_v54 = vpop.permute.xlu1 %614 }
 0x1de   :  { %v623_v55 = vmul.f32 %v615_v54, %v590_v40 }
 0x1e0   :  { %634 = vrot.lane.b32.xlu2 %v623_v55, %s5368_s6 }
 0x220   :  { %v631_v57 = vpop.permute.xlu2 %630 }
 0x221   :  { %v5543_v58 = vadd.f32 %v631_v57, %v601_v56 }
 0x223   :  { %4757 = vtanh.f32 %v5543_v58 }
 0x229   :  { %v4758_v59 = vpop.eup %4757 }
 0x22a   :  { %654 = vrot.lane.b32.xlu0 %v4758_v59, %s5355_s19 }
 0x23a   :  { %v635_v61 = vpop.permute.xlu2 %634 }
 0x23b   :  { %v5547_v62 = vadd.f32 %v635_v61, %v603_v60 }
 0x23d   :  { %4759 = vtanh.f32 %v5547_v62 }
 0x240   :  { %v633_v0 = vpop.permute.xlu0 %632 }
 0x241   :  { %v5550_v1 = vadd.f32 %v633_v0, %v602_v63 }
 0x243   :  { %v4760_v2 = vpop.eup %4759  ;;  %4761 = vtanh.f32 %v5550_v1 }
 0x244   :  { %658 = vrot.lane.b32.xlu0 %v4760_v2, %s5355_s19 }
 0x249   :  { %v4762_v3 = vpop.eup %4761 }
 0x24a   :  { %656 = vrot.lane.b32.xlu1 %v4762_v3, %s5355_s19 }
 0x24e   :  { %v629_v5 = vpop.permute.xlu1 %628 }
 0x24f   :  { %v5556_v6 = vadd.f32 %v629_v5, %v600_v4 }
 0x251   :  { %4763 = vtanh.f32 %v5556_v6 }
 0x257   :  { %v4764_v7 = vpop.eup %4763 }
 0x258   :  { %652 = vrot.lane.b32.xlu2 %v4764_v7, %s5355_s19 }
 0x29c   :  { %v655_v8 = vpop.permute.xlu0 %654 }
 0x29d   :  { %v5560_v10 = vmul.f32 %v655_v8, %v560_v35 }
 0x29f   :  { %v690_v14 = vpack.c.bf16 %v5560_v10, %v5560_v10 }
 0x2a1   :  { %v698_v24 = vunpack.c.l.b16 %v690_v14 }
 0x2a3   :  { %v701_v32 = vrot.slane %v698_v24, 7 }
 0x2b2   :  { %v653_v9 = vpop.permute.xlu2 %652 }
 0x2b3   :  { %v5563_v12 = vmul.f32 %v653_v9, %v5518_v22 }
 0x2b5   :  { %v689_v18 = vpack.c.bf16 %v5563_v12, %v5563_v12 }
 0x2b6   :  { %v659_v11 = vpop.permute.xlu0 %658 }
 0x2b7   :  { %v5565_v13 = vmul.f32 %v659_v11, %v590_v40  ;;  %v697_v22 = vunpack.c.l.b16 %v689_v18 }
 0x2b9   :  { %7018 = vst [vmem:[#allocation23_spill] sm:$0xff] %v5565_v13  ;;  %v692_v20 = vpack.c.bf16 %v5565_v13, %v5565_v13  ;;  %v703_v35 = vsel %vm702_vm6, %v701_v32, %v697_v22 }
 0x2bb   :  { %v700_v26 = vunpack.c.l.b16 %v692_v20 }
 0x2bc   :  { %v657_v21 = vpop.permute.xlu1 %656 }
 0x2bd   :  { %v5573_v23 = vmul.f32 %v657_v21, %v575_v44  ;;  %v707_v34 = vrot.slane %v700_v26, 5 }
 0x2bf   :  { %v691_v25 = vpack.c.bf16 %v5573_v23, %v5573_v23 }
 0x2c1   :  { %v699_v27 = vunpack.c.l.b16 %v691_v25 }
 0x2c3   :  { %v704_v33 = vrot.slane %v699_v27, 6 }
 0x2c5   :  { %v706_v36 = vsel %vm6981_vm7, %v704_v33, %v703_v35 }
 0x2c6   :  { %v709_v37 = vsel %vm6980_vm8, %v707_v34, %v706_v36 }
 0x2c7   :  { %v710_v38 = vpack.c.b16 %v709_v37, %v709_v37 }
 0x2c9   :  { %711 = vrot.lane.b32.xlu1 %v710_v38, %s5368_s6 }
 0x33b   :  { %v712_v39 = vpop.permute.xlu1 %711 }
 0x33c   :  { %4540 = vmatmul.msk.bf16.vlgmr.msra.gmra.mxu3 %vm6979_vm9, %v712_v39 }
 0x33d   :  { %1660 = vmatpush.bf16.msra.mxu3 %v5461_v15 }
 0x341   :  { %1661 = vmatpush.bf16.msra.mxu3 %v5466_v16 }
 0x3bf   :  { %v725_v40 = vpop.f32.mrf.mxu3 }
 0x3c0   :  { %v730_v41 = vrot.slane %v725_v40, 7  ;;  %v731_v42 = vrot.slane %v725_v40, 1  ;;  %v732_v43 = vrot.slane %v725_v40, 2  ;;  %v738_v44 = vadd.f32 %v725_v40, %v5493_v29 }
 0x3c2   :  { %v737_v45 = vadd.f32 %v730_v41, %v5491_v28  ;;  %v739_v46 = vadd.f32 %v731_v42, %v5495_v30  ;;  %v740_v47 = vadd.f32 %v732_v43, %v5497_v31  ;;  %v4542_v48 = vmul.f32 -1.442695, %v738_v44 }
 0x3c4   :  { %v4541_v49 = vmul.f32 -1.442695, %v737_v45  ;;  %4765 = vpow2.f32 %v4542_v48  ;;  %v4543_v50 = vmul.f32 -1.442695, %v739_v46  ;;  %v4544_v51 = vmul.f32 -1.442695, %v740_v47 }
 0x3c6   :  { %4767 = vpow2.f32 %v4541_v49 }
 0x3c7   :  { %4769 = vpow2.f32 %v4543_v50  ;;  %v727_v15 = vpop.f32.mrf.mxu3 }
 0x3c8   :  { %4771 = vpow2.f32 %v4544_v51 }
 0x3ca   :  { %v4766_v16 = vpop.eup %4765 }
 0x3cb   :  { %v754_v52 = vadd.f32 1.0, %v4766_v16 }
 0x3cc   :  { %v4768_v53 = vpop.eup %4767 }
 0x3cd   :  { %v4770_v54 = vpop.eup %4769  ;;  %v753_v55 = vadd.f32 1.0, %v4768_v53  ;;  %4773 = vrcp.f32 %v754_v52  ;;  %v781_v60 = vand.u32 2147483647, %v754_v52  ;;  %v783_v61 = vand.u32 2147483648, %v754_v52 }
 0x3ce   :  { %v4772_v56 = vpop.eup %4771  ;;  %v755_v57 = vadd.f32 1.0, %v4770_v54  ;;  %vm777_vm10 = vweird.f32 %v754_v52 }
 0x3cf   :  { %v5588_v59 = vadd.f32 1.0, %v4772_v56  ;;  %4775 = vrcp.f32 %v753_v55  ;;  %vm5591_vm11 = vcmp.eq.f32.partialorder %v781_v60, 8.507059e+37  ;;  %v784_v7 = vor.u32 1.1754944e-38, %v783_v61 }
 0x3d0   :  { %4777 = vrcp.f32 %v755_v57  ;;  %vm762_vm12 = vweird.f32 %v753_v55  ;;  %vm792_vm13 = vweird.f32 %v755_v57  ;;  %v796_v14 = vand.u32 2147483647, %v755_v57 }
 0x3d1   :  { %4779 = vrcp.f32 %v5588_v59  ;;  %v798_v18 = vand.u32 2147483648, %v755_v57  ;;  %v766_v22 = vand.u32 2147483647, %v753_v55  ;;  %v768_v26 = vand.u32 2147483648, %v753_v55 }
 0x3d2   :  { %vm807_vm15 = vweird.f32 %v5588_v59  ;;  %v811_v35 = vand.u32 2147483647, %v5588_v59  ;;  %v813_v36 = vand.u32 2147483648, %v5588_v59 }
 0x3d3   :  { %v4774_v63 = vpop.eup %4773  ;;  %v799_v42 = vor.u32 1.1754944e-38, %v798_v18  ;;  %v769_v43 = vor.u32 1.1754944e-38, %v768_v26 }
 0x3d4   :  { %v773_v0 = vmul.f32 %v4774_v63, %v754_v52  ;;  %vm778_vm14 = vweird.f32 %v4774_v63  ;;  %v814_v52 = vor.u32 1.1754944e-38, %v813_v36 }
 0x3d5   :  { %v4776_v2 = vpop.eup %4775  ;;  %vm779_vm2 = vmor %vm777_vm10, %vm778_vm14  ;;  %vm767_vm14 = vcmp.eq.f32.partialorder %v766_v22, 8.507059e+37 }
 0x3d6   :  { %v4778_v4 = vpop.eup %4777  ;;  %v774_v5 = vsub.f32 1.0, %v773_v0  ;;  %v758_v8 = vmul.f32 %v4776_v2, %v753_v55  ;;  %vm763_vm1 = vweird.f32 %v4776_v2 }
 0x3d7   :  { %v4780_v9 = vpop.eup %4779  ;;  %v788_v11 = vmul.f32 %v4778_v4, %v755_v57  ;;  %vm793_vm3 = vweird.f32 %v4778_v4  ;;  %vm764_vm5 = vmor %vm762_vm12, %vm763_vm1 }
 0x3d8   :  { %v775_v20 = vmul.f32 %v4774_v63, %v774_v5  ;;  %v759_v21 = vsub.f32 1.0, %v758_v8  ;;  %v803_v24 = vmul.f32 %v4780_v9, %v5588_v59  ;;  %vm808_vm4 = vweird.f32 %v4780_v9  ;;  %vm794_vm10 = vmor %vm792_vm13, %vm793_vm3 }
 0x3d9   :  { %v789_v25 = vsub.f32 1.0, %v788_v11  ;;  %vm809_vm0 = vmor %vm807_vm15, %vm808_vm4  ;;  %v830_v5 = vrot.slane %v5543_v58, 7 }
 0x3da   :  { %v776_v27 = vadd.f32 %v4774_v63, %v775_v20  ;;  %v760_v32 = vmul.f32 %v4776_v2, %v759_v21  ;;  %v804_v33 = vsub.f32 1.0, %v803_v24  ;;  %v832_v21 = vrot.slane %v5547_v62, 7 }
 0x3db   :  { %v790_v34 = vmul.f32 %v4778_v4, %v789_v25 }
 0x3dc   :  { %v780_v37 = vsel %vm779_vm2, %v4774_v63, %v776_v27  ;;  %v761_v38 = vadd.f32 %v4776_v2, %v760_v32  ;;  %v805_v39 = vmul.f32 %v4780_v9, %v804_v33  ;;  %vm797_vm2 = vcmp.eq.f32.partialorder %v796_v14, 8.507059e+37 }
 0x3dd   :  { %v5602_v40 = vsel %vm5591_vm11, %v784_v7, %v780_v37  ;;  %v791_v41 = vadd.f32 %v4778_v4, %v790_v34  ;;  %vm812_vm11 = vcmp.eq.f32.partialorder %v811_v35, 8.507059e+37  ;;  %v829_v7 = vrot.slane %v5556_v6, 7 }
 0x3de   :  { %v818_v44 = vmul.f32 2.0, %v5602_v40  ;;  %v765_v45 = vsel %vm764_vm5, %v4776_v2, %v761_v38  ;;  %v806_v46 = vadd.f32 %v4780_v9, %v805_v39  ;;  %v838_v8 = vmul.f32 %v830_v5, %v5602_v40 }
 0x3df   :  { %v795_v47 = vsel %vm794_vm10, %v4778_v4, %v791_v41  ;;  %v770_v48 = vsel %vm767_vm14, %v769_v43, %v765_v45  ;;  %v831_v27 = vrot.slane %v5550_v1, 7 }
 0x3e0   :  { %v4546_v49 = vadd.f32 -1.0, %v818_v44  ;;  %v800_v50 = vsel %vm797_vm2, %v799_v42, %v795_v47  ;;  %v817_v51 = vmul.f32 2.0, %v770_v48  ;;  %v810_v15 = vsel %vm809_vm0, %v4780_v9, %v806_v46 }
 0x3e1   :  { %v819_v16 = vmul.f32 2.0, %v800_v50  ;;  %v815_v55 = vsel %vm812_vm11, %v814_v52, %v810_v15  ;;  %v837_v14 = vmul.f32 %v829_v7, %v770_v48  ;;  %v839_v32 = vmul.f32 %v831_v27, %v800_v50 }
 0x3e2   :  { %847 = vrot.lane.b32.xlu1 %v4546_v49, %s5355_s19  ;;  %v4545_v53 = vadd.f32 -1.0, %v817_v51  ;;  %v820_v56 = vmul.f32 2.0, %v815_v55  ;;  %v840_v25 = vmul.f32 %v832_v21, %v815_v55 }
 0x3e3   :  { %v4547_v54 = vadd.f32 -1.0, %v819_v16 }
 0x3e4   :  { %845 = vrot.lane.b32.xlu2 %v4545_v53, %s5355_s19  ;;  %v4548_v57 = vadd.f32 -1.0, %v820_v56 }
 0x3e5   :  { %849 = vrot.lane.b32.xlu0 %v4547_v54, %s5355_s19 }
 0x3ec   :  { %851 = vrot.lane.b32.xlu2 %v4548_v57, %s5355_s19 }
 0x43e   :  { %v846_v59 = vpop.permute.xlu2 %845 }
 0x43f   :  { %v857_v60 = vmul.f32 %v846_v59, %v770_v48 }
 0x441   :  { %865 = vrot.lane.b32.xlu0 %v857_v60, %s5368_s6 }
 0x446   :  { %v852_v61 = vpop.permute.xlu2 %851 }
 0x447   :  { %v860_v63 = vmul.f32 %v852_v61, %v815_v55 }
 0x449   :  { %871 = vrot.lane.b32.xlu0 %v860_v63, %s5368_s6 }
 0x454   :  { %v848_v0 = vpop.permute.xlu1 %847 }
 0x455   :  { %v858_v2 = vmul.f32 %v848_v0, %v5602_v40 }
 0x457   :  { %v850_v3 = vpop.permute.xlu0 %849  ;;  %867 = vrot.lane.b32.xlu2 %v858_v2, %s5368_s6 }
 0x458   :  { %v859_v4 = vmul.f32 %v850_v3, %v800_v50 }
 0x45a   :  { %869 = vrot.lane.b32.xlu1 %v859_v4, %s5368_s6 }
 0x4b1   :  { %v868_v9 = vpop.permute.xlu2 %867 }
 0x4b2   :  { %v5621_v11 = vadd.f32 %v868_v9, %v838_v8 }
 0x4b3   :  { %v866_v18 = vpop.permute.xlu0 %865 }
 0x4b4   :  { %4781 = vtanh.f32 %v5621_v11  ;;  %v5624_v20 = vadd.f32 %v866_v18, %v837_v14 }
 0x4b6   :  { %4783 = vtanh.f32 %v5624_v20 }
 0x4ba   :  { %v4782_v24 = vpop.eup %4781 }
 0x4bb   :  { %v872_v58 = vpop.permute.xlu0 %871  ;;  %891 = vrot.lane.b32.xlu0 %v4782_v24, %s5355_s19 }
 0x4bc   :  { %v4784_v6 = vpop.eup %4783  ;;  %v5629_v22 = vadd.f32 %v872_v58, %v840_v25 }
 0x4bd   :  { %889 = vrot.lane.b32.xlu1 %v4784_v6, %s5355_s19 }
 0x4be   :  { %4785 = vtanh.f32 %v5629_v22 }
 0x4c4   :  { %v4786_v26 = vpop.eup %4785 }
 0x4c5   :  { %895 = vrot.lane.b32.xlu1 %v4786_v26, %s5355_s19 }
 0x4cc   :  { %v870_v33 = vpop.permute.xlu1 %869 }
 0x4cd   :  { %v5635_v62 = vadd.f32 %v870_v33, %v839_v32 }
 0x4cf   :  { %4787 = vtanh.f32 %v5635_v62 }
 0x4d5   :  { %v4788_v34 = vpop.eup %4787 }
 0x4d6   :  { %893 = vrot.lane.b32.xlu2 %v4788_v34, %s5355_s19 }
 0x52d   :  { %v892_v35 = vpop.permute.xlu0 %891 }
 0x52e   :  { %v5644_v41 = vmul.f32 %v892_v35, %v5602_v40 }
 0x52f   :  { %v890_v36 = vpop.permute.xlu1 %889 }
 0x530   :  { %v5639_v37 = vmul.f32 %v890_v36, %v770_v48  ;;  %v894_v38 = vpop.permute.xlu2 %893  ;;  %v927_v44 = vpack.c.bf16 %v5644_v41, %v5644_v41 }
 0x531   :  { %v5641_v39 = vmul.f32 %v894_v38, %v800_v50 }
 0x532   :  { %7021 = vst [vmem:[#allocation24_spill] sm:$0xff] %v5639_v37  ;;  %v926_v1 = vpack.c.bf16 %v5639_v37, %v5639_v37  ;;  %v935_v49 = vunpack.c.l.b16 %v927_v44 }
 0x533   :  { %v928_v42 = vpack.c.bf16 %v5641_v39, %v5641_v39 }
 0x534   :  { %v934_v43 = vunpack.c.l.b16 %v926_v1 }
 0x535   :  { %v936_v45 = vunpack.c.l.b16 %v928_v42 }
 0x536   :  { %v938_v47 = vrot.slane %v934_v43, 1 }
 0x537   :  { %v896_v46 = vpop.permute.xlu1 %895  ;;  %v940_v50 = vrot.slane %v936_v45, 7 }
 0x538   :  { %v5652_v48 = vmul.f32 %v896_v46, %v815_v55  ;;  %v939_v15 = vsel %vm702_vm6, %v935_v49, %v938_v47 }
 0x539   :  { %v941_v52 = vsel %vm6981_vm7, %v940_v50, %v939_v15 }
 0x53a   :  { %7022 = vst [vmem:[#allocation25_spill] sm:$0xff] %v5652_v48  ;;  %v929_v40 = vpack.c.bf16 %v5652_v48, %v5652_v48 }
 0x53c   :  { %v937_v51 = vunpack.c.l.b16 %v929_v40 }
 0x53e   :  { %v942_v16 = vrot.slane %v937_v51, 6 }
 0x540   :  { %v943_v53 = vsel %vm6980_vm8, %v942_v16, %v941_v52 }
 0x541   :  { %v944_v54 = vpack.c.b16 %v943_v53, %v943_v53 }
 0x543   :  { %945 = vrot.lane.b32.xlu2 %v944_v54, %s5368_s6 }
 0x59d   :  { %v946_v56 = vpop.permute.xlu2 %945 }
 0x59e   :  { %4549 = vmatmul.msk.bf16.vlgmr.msra.gmra.mxu2 %vm6979_vm9, %v946_v56 }
 0x621   :  { %v959_v55 = vpop.f32.mrf.mxu2 }
 0x622   :  { %v964_v57 = vrot.slane %v959_v55, 6  ;;  %v965_v59 = vrot.slane %v959_v55, 7  ;;  %v966_v60 = vrot.slane %v959_v55, 1  ;;  %v973_v61 = vadd.f32 %v959_v55, %v5495_v30 }
 0x624   :  { %v971_v63 = vadd.f32 %v964_v57, %v5491_v28  ;;  %v972_v0 = vadd.f32 %v965_v59, %v5493_v29  ;;  %v974_v2 = vadd.f32 %v966_v60, %v5497_v31  ;;  %v4552_v3 = vmul.f32 -1.442695, %v973_v61 }
 0x626   :  { %v4550_v4 = vmul.f32 -1.442695, %v971_v63  ;;  %v4551_v5 = vmul.f32 -1.442695, %v972_v0  ;;  %4789 = vpow2.f32 %v4552_v3  ;;  %v4553_v7 = vmul.f32 -1.442695, %v974_v2 }
 0x628   :  { %4791 = vpow2.f32 %v4550_v4 }
 0x629   :  { %4793 = vpow2.f32 %v4551_v5  ;;  %v961_v8 = vpop.f32.mrf.mxu2 }
 0x62a   :  { %4795 = vpow2.f32 %v4553_v7 }
 0x62c   :  { %v4790_v9 = vpop.eup %4789 }
 0x62d   :  { %v5665_v14 = vadd.f32 1.0, %v4790_v9 }
 0x62e   :  { %v4792_v18 = vpop.eup %4791 }
 0x62f   :  { %v4794_v21 = vpop.eup %4793  ;;  %v987_v24 = vadd.f32 1.0, %v4792_v18  ;;  %4797 = vrcp.f32 %v5665_v14  ;;  %vm1026_vm0 = vweird.f32 %v5665_v14  ;;  %v1030_v36 = vand.u32 2147483647, %v5665_v14 }
 0x630   :  { %v4796_v25 = vpop.eup %4795  ;;  %v988_v58 = vadd.f32 1.0, %v4794_v21  ;;  %v1032_v43 = vand.u32 2147483648, %v5665_v14 }
 0x631   :  { %v990_v6 = vadd.f32 1.0, %v4796_v25  ;;  %4799 = vrcp.f32 %v987_v24  ;;  %vm996_vm12 = vweird.f32 %v987_v24  ;;  %v1000_v42 = vand.u32 2147483647, %v987_v24 }
 0x632   :  { %4801 = vrcp.f32 %v988_v58  ;;  %vm1011_vm13 = vweird.f32 %v988_v58  ;;  %v1015_v49 = vand.u32 2147483647, %v988_v58  ;;  %v1002_v40 = vand.u32 2147483648, %v987_v24 }
 0x633   :  { %4803 = vrcp.f32 %v990_v6  ;;  %v1017_v51 = vand.u32 2147483648, %v988_v58  ;;  %v1045_v16 = vand.u32 2147483647, %v990_v6  ;;  %v1047_v52 = vand.u32 2147483648, %v990_v6 }
 0x634   :  { %vm1041_vm10 = vweird.f32 %v990_v6  ;;  %vm1016_vm14 = vcmp.eq.f32.partialorder %v1015_v49, 8.507059e+37  ;;  %v1003_v60 = vor.u32 1.1754944e-38, %v1002_v40  ;;  %vm1001_vm9 = vcmp.eq.f32.partialorder %v1000_v42, 8.507059e+37 }
 0x635   :  { %v4798_v26 = vpop.eup %4797  ;;  %v1018_v63 = vor.u32 1.1754944e-38, %v1017_v51  ;;  %vm1046_vm7 = vcmp.eq.f32.partialorder %v1045_v16, 8.507059e+37  ;;  %v1048_v2 = vor.u32 1.1754944e-38, %v1047_v52  ;;  %v1033_v21 = vor.u32 1.1754944e-38, %v1032_v43 }
 0x636   :  { %v1022_v27 = vmul.f32 %v4798_v26, %v5665_v14  ;;  %vm1027_vm15 = vweird.f32 %v4798_v26 }
 0x637   :  { %v4800_v32 = vpop.eup %4799  ;;  %vm5674_vm5 = vmor %vm1026_vm0, %vm1027_vm15  ;;  %vm1031_vm0 = vcmp.eq.f32.partialorder %v1030_v36, 8.507059e+37 }
 0x638   :  { %v4802_v33 = vpop.eup %4801  ;;  %v992_v34 = vmul.f32 %v4800_v32, %v987_v24  ;;  %v1023_v35 = vsub.f32 1.0, %v1022_v27  ;;  %vm997_vm1 = vweird.f32 %v4800_v32 }
 0x639   :  { %v4804_v38 = vpop.eup %4803  ;;  %v1007_v1 = vmul.f32 %v4802_v33, %v988_v58  ;;  %vm1012_vm3 = vweird.f32 %v4802_v33  ;;  %vm998_vm2 = vmor %vm996_vm12, %vm997_vm1 }
 0x63a   :  { %v1037_v44 = vmul.f32 %v4804_v38, %v990_v6  ;;  %v993_v45 = vsub.f32 1.0, %v992_v34  ;;  %v1024_v46 = vmul.f32 %v4798_v26, %v1023_v35  ;;  %vm1042_vm4 = vweird.f32 %v4804_v38  ;;  %vm1013_vm11 = vmor %vm1011_vm13, %vm1012_vm3 }
 0x63b   :  { %v1008_v47 = vsub.f32 1.0, %v1007_v1  ;;  %vm1043_vm8 = vmor %vm1041_vm10, %vm1042_vm4 }
 0x63c   :  { %v1038_v50 = vsub.f32 1.0, %v1037_v44  ;;  %v994_v15 = vmul.f32 %v4800_v32, %v993_v45  ;;  %v1025_v55 = vadd.f32 %v4798_v26, %v1024_v46  ;;  %v1064_v44 = vrot.slane %v5621_v11, 7 }
 0x63d   :  { %v1009_v53 = vmul.f32 %v4802_v33, %v1008_v47  ;;  %v1066_v45 = vrot.slane %v5629_v22, 7  ;;  %v1063_v11 = vrot.slane %v5624_v20, 7 }
 0x63e   :  { %v1039_v54 = vmul.f32 %v4804_v38, %v1038_v50  ;;  %v995_v56 = vadd.f32 %v4800_v32, %v994_v15  ;;  %v1029_v9 = vsel %vm5674_vm5, %v4798_v26, %v1025_v55 }
 0x63f   :  { %v1010_v59 = vadd.f32 %v4802_v33, %v1009_v53  ;;  %v1034_v6 = vsel %vm1031_vm0, %v1033_v21, %v1029_v9 }
 0x640   :  { %v1040_v61 = vadd.f32 %v4804_v38, %v1039_v54  ;;  %v999_v0 = vsel %vm998_vm2, %v4800_v32, %v995_v56  ;;  %v1053_v32 = vmul.f32 2.0, %v1034_v6  ;;  %v1065_v54 = vrot.slane %v5635_v62, 7 }
 0x641   :  { %v1014_v3 = vsel %vm1013_vm11, %v4802_v33, %v1010_v59  ;;  %v1004_v4 = vsel %vm1001_vm9, %v1003_v60, %v999_v0  ;;  %vm7028_vm9 = vcmask 261120  }
 0x642   :  { %v1044_v5 = vsel %vm1043_vm8, %v4804_v38, %v1040_v61  ;;  %v1019_v7 = vsel %vm1016_vm14, %v1018_v63, %v1014_v3  ;;  %v1051_v8 = vmul.f32 2.0, %v1004_v4  ;;  %v4556_v33 = vadd.f32 -1.0, %v1053_v32 }
 0x643   :  { %v1049_v14 = vsel %vm1046_vm7, %v1048_v2, %v1044_v5  ;;  %v1052_v18 = vmul.f32 2.0, %v1019_v7  ;;  %v1072_v46 = vmul.f32 %v1064_v44, %v1019_v7  ;;  %v1071_v22 = vmul.f32 %v1063_v11, %v1004_v4 }
 0x644   :  { %v1054_v24 = vmul.f32 2.0, %v1049_v14  ;;  %v4554_v25 = vadd.f32 -1.0, %v1051_v8  ;;  %v1074_v49 = vmul.f32 %v1066_v45, %v1049_v14  ;;  %v1073_v56 = vmul.f32 %v1065_v54, %v1034_v6 }
 0x645   :  { %v4555_v58 = vadd.f32 -1.0, %v1052_v18  ;;  %vm7026_vm7 = vcmask 1042434   ;;  %vm7027_vm8 = vcmask 1043459  }
 0x646   :  { %v4557_v27 = vadd.f32 -1.0, %v1054_v24  ;;  %1079 = vrot.lane.b32.xlu0 %v4554_v25, %s5355_s19 }
 0x647   :  { %1081 = vrot.lane.b32.xlu1 %v4555_v58, %s5355_s19 }
 0x648   :  { %1085 = vrot.lane.b32.xlu2 %v4557_v27, %s5355_s19 }
 0x64e   :  { %1083 = vrot.lane.b32.xlu0 %v4556_v33, %s5355_s19 }
 0x6a2   :  { %v1086_v26 = vpop.permute.xlu2 %1085 }
 0x6a3   :  { %v1094_v34 = vmul.f32 %v1086_v26, %v1049_v14 }
 0x6a5   :  { %1105 = vrot.lane.b32.xlu0 %v1094_v34, %s5368_s6 }
 0x6b8   :  { %v1080_v35 = vpop.permute.xlu0 %1079 }
 0x6b9   :  { %v1082_v38 = vpop.permute.xlu1 %1081  ;;  %v1091_v36 = vmul.f32 %v1080_v35, %v1004_v4 }
 0x6ba   :  { %v1092_v1 = vmul.f32 %v1082_v38, %v1019_v7 }
 0x6bb   :  { %1099 = vrot.lane.b32.xlu1 %v1091_v36, %s5368_s6 }
 0x6bc   :  { %1101 = vrot.lane.b32.xlu2 %v1092_v1, %s5368_s6 }
 0x6c0   :  { %v1084_v42 = vpop.permute.xlu0 %1083 }
 0x6c1   :  { %v1093_v43 = vmul.f32 %v1084_v42, %v1034_v6 }
 0x6c3   :  { %1103 = vrot.lane.b32.xlu1 %v1093_v43, %s5368_s6 }
 0x716   :  { %v1102_v47 = vpop.permute.xlu2 %1101 }
 0x717   :  { %v5692_v40 = vadd.f32 %v1102_v47, %v1072_v46  ;;  %v1106_v50 = vpop.permute.xlu0 %1105 }
 0x718   :  { %v5694_v51 = vadd.f32 %v1106_v50, %v1074_v49 }
 0x719   :  { %4805 = vtanh.f32 %v5692_v40 }
 0x71a   :  { %4807 = vtanh.f32 %v5694_v51 }
 0x71f   :  { %v4806_v15 = vpop.eup %4805 }
 0x720   :  { %v4808_v16 = vpop.eup %4807  ;;  %1125 = vrot.lane.b32.xlu0 %v4806_v15, %s5355_s19 }
 0x721   :  { %1129 = vrot.lane.b32.xlu1 %v4808_v16, %s5355_s19 }
 0x72d   :  { %v1100_v52 = vpop.permute.xlu1 %1099 }
 0x72e   :  { %v5701_v53 = vadd.f32 %v1100_v52, %v1071_v22 }
 0x730   :  { %4809 = vtanh.f32 %v5701_v53 }
 0x735   :  { %v1104_v55 = vpop.permute.xlu1 %1103 }
 0x736   :  { %v4810_v57 = vpop.eup %4809  ;;  %v5705_v59 = vadd.f32 %v1104_v55, %v1073_v56 }
 0x737   :  { %1123 = vrot.lane.b32.xlu2 %v4810_v57, %s5355_s19 }
 0x738   :  { %4811 = vtanh.f32 %v5705_v59 }
 0x73e   :  { %v4812_v60 = vpop.eup %4811 }
 0x73f   :  { %1127 = vrot.lane.b32.xlu2 %v4812_v60, %s5355_s19 }
 0x791   :  { %v1124_v20 = vpop.permute.xlu2 %1123 }
 0x792   :  { %v5710_v61 = vmul.f32 %v1124_v20, %v1004_v4  ;;  %v1126_v63 = vpop.permute.xlu0 %1125 }
 0x793   :  { %v1130_v0 = vpop.permute.xlu1 %1129  ;;  %v5712_v2 = vmul.f32 %v1126_v63, %v1019_v7 }
 0x794   :  { %v1160_v62 = vpack.c.bf16 %v5710_v61, %v5710_v61  ;;  %v5716_v3 = vmul.f32 %v1130_v0, %v1049_v14 }
 0x795   :  { %v1161_v5 = vpack.c.bf16 %v5712_v2, %v5712_v2 }
 0x796   :  { %7025 = vst [vmem:[#allocation26_spill] sm:$0xff] %v5716_v3  ;;  %v1168_v8 = vunpack.c.l.b16 %v1160_v62  ;;  %v1163_v9 = vpack.c.bf16 %v5716_v3, %v5716_v3 }
 0x797   :  { %v1169_v18 = vunpack.c.l.b16 %v1161_v5 }
 0x798   :  { %v1172_v24 = vrot.slane %v1168_v8, 2  ;;  %v1171_v25 = vunpack.c.l.b16 %v1163_v9 }
 0x799   :  { %v1128_v21 = vpop.permute.xlu2 %1127  ;;  %v1173_v7 = vrot.slane %v1169_v18, 1 }
 0x79a   :  { %v5722_v4 = vmul.f32 %v1128_v21, %v1034_v6  ;;  %v1176_v14 = vrot.slane %v1171_v25, 7 }
 0x79b   :  { %v1174_v32 = vsel %vm702_vm6, %v1173_v7, %v1172_v24 }
 0x79c   :  { %v1162_v58 = vpack.c.bf16 %v5722_v4, %v5722_v4 }
 0x79e   :  { %v1170_v27 = vunpack.c.l.b16 %v1162_v58 }
 0x7a0   :  { %v1175_v33 = vsel %vm7026_vm7, %v1170_v27, %v1174_v32 }
 0x7a1   :  { %v1177_v26 = vsel %vm7027_vm8, %v1176_v14, %v1175_v33 }
 0x7a2   :  { %v1178_v34 = vpack.c.b16 %v1177_v26, %v1177_v26 }
 0x7a4   :  { %1179 = vrot.lane.b32.xlu0 %v1178_v34, %s5368_s6 }
 0x816   :  { %v1180_v35 = vpop.permute.xlu0 %1179 }
 0x817   :  { %4558 = vmatmul.msk.bf16.vlgmr.msrb.gmra.mxu3 %vm7028_vm9, %v1180_v35 }
 0x89a   :  { %v1193_v6 = vpop.f32.mrf.mxu3 }
 0x89b   :  { %v1198_v38 = vrot.slane %v1193_v6, 5  ;;  %v1199_v36 = vrot.slane %v1193_v6, 6  ;;  %v1200_v1 = vrot.slane %v1193_v6, 7  ;;  %v1208_v42 = vadd.f32 %v1193_v6, %v5497_v31 }
 0x89d   :  { %v1205_v43 = vadd.f32 %v1198_v38, %v5491_v28  ;;  %v1206_v44 = vadd.f32 %v1199_v36, %v5493_v29  ;;  %v1207_v45 = vadd.f32 %v1200_v1, %v5495_v30  ;;  %v4562_v46 = vmul.f32 -1.442695, %v1208_v42 }
 0x89f   :  { %v4559_v47 = vmul.f32 -1.442695, %v1205_v43  ;;  %v4560_v49 = vmul.f32 -1.442695, %v1206_v44  ;;  %v4561_v50 = vmul.f32 -1.442695, %v1207_v45  ;;  %4813 = vpow2.f32 %v4562_v46 }
 0x8a1   :  { %4815 = vpow2.f32 %v4559_v47 }
 0x8a2   :  { %4817 = vpow2.f32 %v4560_v49  ;;  %v1195_v15 = vpop.f32.mrf.mxu3 }
 0x8a3   :  { %4819 = vpow2.f32 %v4561_v50 }
 0x8a5   :  { %v4814_v16 = vpop.eup %4813 }
 0x8a6   :  { %v5735_v11 = vadd.f32 1.0, %v4814_v16 }
 0x8a7   :  { %v4816_v22 = vpop.eup %4815 }
 0x8a8   :  { %v4818_v52 = vpop.eup %4817  ;;  %v1221_v54 = vadd.f32 1.0, %v4816_v22  ;;  %4821 = vrcp.f32 %v5735_v11  ;;  %vm1275_vm12 = vweird.f32 %v5735_v11  ;;  %v1279_v8 = vand.u32 2147483647, %v5735_v11 }
 0x8a9   :  { %v4820_v56 = vpop.eup %4819  ;;  %v1222_v55 = vadd.f32 1.0, %v4818_v52  ;;  %v1281_v24 = vand.u32 2147483648, %v5735_v11 }
 0x8aa   :  { %v1223_v57 = vadd.f32 1.0, %v4820_v56  ;;  %4823 = vrcp.f32 %v1221_v54  ;;  %vm1230_vm13 = vweird.f32 %v1221_v54  ;;  %v1234_v21 = vand.u32 2147483647, %v1221_v54 }
 0x8ab   :  { %4825 = vrcp.f32 %v1222_v55  ;;  %vm1245_vm15 = vweird.f32 %v1222_v55  ;;  %v1249_v14 = vand.u32 2147483647, %v1222_v55  ;;  %v1236_v32 = vand.u32 2147483648, %v1221_v54 }
 0x8ac   :  { %4827 = vrcp.f32 %v1223_v57  ;;  %v1251_v26 = vand.u32 2147483648, %v1222_v55  ;;  %v1264_v35 = vand.u32 2147483647, %v1223_v57  ;;  %v1266_v6 = vand.u32 2147483648, %v1223_v57 }
 0x8ad   :  { %vm1260_vm14 = vweird.f32 %v1223_v57  ;;  %vm1250_vm2 = vcmp.eq.f32.partialorder %v1249_v14, 8.507059e+37  ;;  %v1237_v45 = vor.u32 1.1754944e-38, %v1236_v32  ;;  %vm1235_vm7 = vcmp.eq.f32.partialorder %v1234_v21, 8.507059e+37 }
 0x8ae   :  { %v4822_v60 = vpop.eup %4821  ;;  %v1252_v47 = vor.u32 1.1754944e-38, %v1251_v26  ;;  %vm1265_vm9 = vcmp.eq.f32.partialorder %v1264_v35, 8.507059e+37  ;;  %v1267_v50 = vor.u32 1.1754944e-38, %v1266_v6  ;;  %v1297_v14 = vrot.slane %v5701_v53, 7 }
 0x8af   :  { %v1271_v20 = vmul.f32 %v4822_v60, %v5735_v11  ;;  %vm1276_vm1 = vweird.f32 %v4822_v60  ;;  %v1298_v32 = vrot.slane %v5692_v40, 7 }
 0x8b0   :  { %v4824_v63 = vpop.eup %4823  ;;  %vm5744_vm10 = vmor %vm1275_vm12, %vm1276_vm1  ;;  %vm1280_vm12 = vcmp.eq.f32.partialorder %v1279_v8, 8.507059e+37  ;;  %vm7034_vm1 = vcmask 261120  }
 0x8b1   :  { %v4826_v0 = vpop.eup %4825  ;;  %v1226_v62 = vmul.f32 %v4824_v63, %v1221_v54  ;;  %v1272_v5 = vsub.f32 1.0, %v1271_v20  ;;  %vm1231_vm3 = vweird.f32 %v4824_v63  ;;  %v1282_v20 = vor.u32 1.1754944e-38, %v1281_v24 }
 0x8b2   :  { %v4828_v9 = vpop.eup %4827  ;;  %v1241_v18 = vmul.f32 %v4826_v0, %v1222_v55  ;;  %vm1246_vm4 = vweird.f32 %v4826_v0  ;;  %vm1232_vm11 = vmor %vm1230_vm13, %vm1231_vm3  ;;  %vm7032_vm13 = vcmask 1042434  }
 0x8b3   :  { %v1256_v25 = vmul.f32 %v4828_v9, %v1223_v57  ;;  %v1227_v7 = vsub.f32 1.0, %v1226_v62  ;;  %v1273_v58 = vmul.f32 %v4822_v60, %v1272_v5  ;;  %vm1261_vm5 = vweird.f32 %v4828_v9  ;;  %vm1247_vm0 = vmor %vm1245_vm15, %vm1246_vm4 }
 0x8b4   :  { %v1242_v27 = vsub.f32 1.0, %v1241_v18  ;;  %vm1262_vm8 = vmor %vm1260_vm14, %vm1261_vm5  ;;  %vm7033_vm15 = vcmask 1043459  }
 0x8b5   :  { %v1257_v33 = vsub.f32 1.0, %v1256_v25  ;;  %v1228_v34 = vmul.f32 %v4824_v63, %v1227_v7  ;;  %v1274_v42 = vadd.f32 %v4822_v60, %v1273_v58 }
 0x8b6   :  { %v1243_v38 = vmul.f32 %v4826_v0, %v1242_v27 }
 0x8b7   :  { %v1258_v36 = vmul.f32 %v4828_v9, %v1257_v33  ;;  %v1229_v1 = vadd.f32 %v4824_v63, %v1228_v34  ;;  %v1278_v56 = vsel %vm5744_vm10, %v4822_v60, %v1274_v42 }
 0x8b8   :  { %v1244_v44 = vadd.f32 %v4826_v0, %v1243_v38 }
 0x8b9   :  { %v1259_v46 = vadd.f32 %v4828_v9, %v1258_v36  ;;  %v1233_v49 = vsel %vm1232_vm11, %v4824_v63, %v1229_v1  ;;  %v5752_v63 = vsel %vm1280_vm12, %v1282_v20, %v1278_v56  ;;  %v1300_v36 = vrot.slane %v5694_v51, 7 }
 0x8ba   :  { %v1248_v15 = vsel %vm1247_vm0, %v4826_v0, %v1244_v44  ;;  %v1238_v16 = vsel %vm1235_vm7, %v1237_v45, %v1233_v49  ;;  %v1288_v0 = vmul.f32 2.0, %v5752_v63  ;;  %v1299_v45 = vrot.slane %v5705_v59, 7 }
 0x8bb   :  { %v1263_v11 = vsel %vm1262_vm8, %v4828_v9, %v1259_v46  ;;  %v1253_v22 = vsel %vm1250_vm2, %v1252_v47, %v1248_v15  ;;  %v1285_v52 = vmul.f32 2.0, %v1238_v16  ;;  %v1305_v33 = vmul.f32 %v1297_v14, %v1238_v16 }
 0x8bc   :  { %v1268_v54 = vsel %vm1265_vm9, %v1267_v50, %v1263_v11  ;;  %v1286_v57 = vmul.f32 2.0, %v1253_v22  ;;  %v4566_v9 = vadd.f32 -1.0, %v1288_v0  ;;  %v1306_v26 = vmul.f32 %v1298_v32, %v1253_v22 }
 0x8bd   :  { %v1287_v62 = vmul.f32 2.0, %v1268_v54  ;;  %v4563_v55 = vadd.f32 -1.0, %v1285_v52  ;;  %v1308_v1 = vmul.f32 %v1300_v36, %v5752_v63  ;;  %v1307_v46 = vmul.f32 %v1299_v45, %v1268_v54 }
 0x8be   :  { %v4564_v5 = vadd.f32 -1.0, %v1286_v57 }
 0x8bf   :  { %v4565_v18 = vadd.f32 -1.0, %v1287_v62  ;;  %1313 = vrot.lane.b32.xlu1 %v4563_v55, %s5355_s19 }
 0x8c0   :  { %1315 = vrot.lane.b32.xlu2 %v4564_v5, %s5355_s19 }
 0x8c1   :  { %1317 = vrot.lane.b32.xlu0 %v4565_v18, %s5355_s19 }
 0x8c7   :  { %1319 = vrot.lane.b32.xlu1 %v4566_v9, %s5355_s19 }
 0x91a   :  { %v1316_v60 = vpop.permute.xlu2 %1315 }
 0x91b   :  { %v1326_v21 = vmul.f32 %v1316_v60, %v1253_v22 }
 0x91d   :  { %1335 = vrot.lane.b32.xlu0 %v1326_v21, %s5368_s6 }
 0x931   :  { %v1314_v8 = vpop.permute.xlu1 %1313 }
 0x932   :  { %v1325_v24 = vmul.f32 %v1314_v8, %v1238_v16 }
 0x933   :  { %v1318_v25 = vpop.permute.xlu0 %1317 }
 0x934   :  { %v1327_v7 = vmul.f32 %v1318_v25, %v1268_v54  ;;  %1333 = vrot.lane.b32.xlu2 %v1325_v24, %s5368_s6 }
 0x936   :  { %1337 = vrot.lane.b32.xlu1 %v1327_v7, %s5368_s6 }
 0x939   :  { %v1320_v58 = vpop.permute.xlu1 %1319 }
 0x93a   :  { %v1328_v27 = vmul.f32 %v1320_v58, %v5752_v63 }
 0x93c   :  { %1339 = vrot.lane.b32.xlu2 %v1328_v27, %s5368_s6 }
 0x98e   :  { %v1334_v34 = vpop.permute.xlu2 %1333 }
 0x98f   :  { %v1336_v35 = vpop.permute.xlu0 %1335  ;;  %v5766_v6 = vadd.f32 %v1334_v34, %v1305_v33 }
 0x990   :  { %v5768_v38 = vadd.f32 %v1336_v35, %v1306_v26 }
 0x991   :  { %4829 = vtanh.f32 %v5766_v6 }
 0x992   :  { %4831 = vtanh.f32 %v5768_v38 }
 0x996   :  { %v1340_v42 = vpop.permute.xlu2 %1339 }
 0x997   :  { %v4830_v53 = vpop.eup %4829  ;;  %v5774_v43 = vadd.f32 %v1340_v42, %v1308_v1 }
 0x998   :  { %v4832_v40 = vpop.eup %4831  ;;  %1357 = vrot.lane.b32.xlu0 %v4830_v53, %s5355_s19 }
 0x999   :  { %4833 = vtanh.f32 %v5774_v43  ;;  %1359 = vrot.lane.b32.xlu1 %v4832_v40, %s5355_s19 }
 0x99f   :  { %v4834_v44 = vpop.eup %4833 }
 0x9a0   :  { %1363 = vrot.lane.b32.xlu0 %v4834_v44, %s5355_s19 }
 0x9a8   :  { %v1338_v51 = vpop.permute.xlu1 %1337 }
 0x9a9   :  { %v5781_v47 = vadd.f32 %v1338_v51, %v1307_v46 }
 0x9ab   :  { %4835 = vtanh.f32 %v5781_v47 }
 0x9b1   :  { %v4836_v49 = vpop.eup %4835 }
 0x9b2   :  { %1361 = vrot.lane.b32.xlu2 %v4836_v49, %s5355_s19 }
 0xa0a   :  { %v1358_v50 = vpop.permute.xlu0 %1357 }
 0xa0b   :  { %v5785_v15 = vmul.f32 %v1358_v50, %v1238_v16  ;;  %v1360_v11 = vpop.permute.xlu1 %1359 }
 0xa0c   :  { %v1362_v52 = vpop.permute.xlu2 %1361  ;;  %v5787_v56 = vmul.f32 %v1360_v11, %v1253_v22 }
 0xa0d   :  { %v1394_v57 = vpack.c.bf16 %v5785_v15, %v5785_v15  ;;  %v5791_v59 = vmul.f32 %v1362_v52, %v1268_v54 }
 0xa0e   :  { %v1395_v20 = vpack.c.bf16 %v5787_v56, %v5787_v56 }
 0xa0f   :  { %v1402_v62 = vunpack.c.l.b16 %v1394_v57  ;;  %v1396_v55 = vpack.c.bf16 %v5791_v59, %v5791_v59 }
 0xa10   :  { %v1403_v5 = vunpack.c.l.b16 %v1395_v20 }
 0xa11   :  { %v1406_v18 = vrot.slane %v1402_v62, 3  ;;  %v1404_v16 = vunpack.c.l.b16 %v1396_v55 }
 0xa12   :  { %v1407_v0 = vrot.slane %v1403_v5, 2  ;;  %v1364_v9 = vpop.permute.xlu0 %1363 }
 0xa13   :  { %v5798_v22 = vmul.f32 %v1364_v9, %v5752_v63  ;;  %v1409_v60 = vrot.slane %v1404_v16, 1 }
 0xa14   :  { %v1408_v21 = vsel %vm702_vm6, %v1407_v0, %v1406_v18 }
 0xa15   :  { %7031 = vst [vmem:[#allocation27_spill] sm:$0xff] %v5798_v22  ;;  %v1397_v54 = vpack.c.bf16 %v5798_v22, %v5798_v22  ;;  %v1410_v24 = vsel %vm7032_vm13, %v1409_v60, %v1408_v21 }
 0xa17   :  { %v1405_v8 = vunpack.c.l.b16 %v1397_v54 }
 0xa19   :  { %v1411_v25 = vsel %vm7033_vm15, %v1405_v8, %v1410_v24 }
 0xa1a   :  { %v1412_v7 = vpack.c.b16 %v1411_v25, %v1411_v25 }
 0xa1c   :  { %1413 = vrot.lane.b32.xlu1 %v1412_v7, %s5368_s6 }
 0xa8e   :  { %v1414_v58 = vpop.permute.xlu1 %1413 }
 0xa8f   :  { %4567 = vmatmul.msk.bf16.vlgmr.msrb.gmra.mxu2 %vm7034_vm1, %v1414_v58 }
 0xb12   :  { %v1427_v27 = vpop.f32.mrf.mxu2 }
 0xb13   :  { %v1432_v63 = vrot.slane %v1427_v27, 4  ;;  %v1433_v14 = vrot.slane %v1427_v27, 5  ;;  %v1434_v32 = vrot.slane %v1427_v27, 6  ;;  %v1435_v33 = vrot.slane %v1427_v27, 7 }
 0xb15   :  { %v1440_v26 = vadd.f32 %v1432_v63, %v5491_v28  ;;  %v1441_v34 = vadd.f32 %v1433_v14, %v5493_v29  ;;  %v1442_v35 = vadd.f32 %v1434_v32, %v5495_v30  ;;  %v1443_v36 = vadd.f32 %v1435_v33, %v5497_v31 }
 0xb17   :  { %v4568_v1 = vmul.f32 -1.442695, %v1440_v26  ;;  %v4569_v42 = vmul.f32 -1.442695, %v1441_v34  ;;  %v4570_v53 = vmul.f32 -1.442695, %v1442_v35 }
 0xb18   :  { %v4571_v40 = vmul.f32 -1.442695, %v1443_v36 }
 0xb19   :  { %4837 = vpow2.f32 %v4568_v1 }
 0xb1a   :  { %4839 = vpow2.f32 %v4569_v42  ;;  %v1429_v44 = vpop.f32.mrf.mxu2 }
 0xb1b   :  { %4841 = vpow2.f32 %v4570_v53 }
 0xb1c   :  { %4843 = vpow2.f32 %v4571_v40 }
 0xb1f   :  { %v4838_v45 = vpop.eup %4837 }
 0xb20   :  { %v4840_v46 = vpop.eup %4839  ;;  %v1456_v51 = vadd.f32 1.0, %v4838_v45 }
 0xb21   :  { %v4842_v49 = vpop.eup %4841  ;;  %v1457_v50 = vadd.f32 1.0, %v4840_v46 }
 0xb22   :  { %v4844_v11 = vpop.eup %4843  ;;  %v1458_v52 = vadd.f32 1.0, %v4842_v49  ;;  %4845 = vrcp.f32 %v1456_v51  ;;  %vm1465_vm3 = vweird.f32 %v1456_v51  ;;  %v1469_v18 = vand.u32 2147483647, %v1456_v51 }
 0xb23   :  { %v1459_v57 = vadd.f32 1.0, %v4844_v11  ;;  %4847 = vrcp.f32 %v1457_v50  ;;  %v1484_v20 = vand.u32 2147483647, %v1457_v50  ;;  %vm1480_vm5 = vweird.f32 %v1457_v50 }
 0xb24   :  { %4849 = vrcp.f32 %v1458_v52  ;;  %vm1495_vm4 = vweird.f32 %v1458_v52  ;;  %v1501_v0 = vand.u32 2147483648, %v1458_v52  ;;  %v1499_v21 = vand.u32 2147483647, %v1458_v52 }
 0xb25   :  { %4851 = vrcp.f32 %v1459_v57  ;;  %vm5811_vm10 = vcmp.eq.f32.partialorder %v1484_v20, 8.507059e+37  ;;  %v1486_v7 = vand.u32 2147483648, %v1457_v50  ;;  %v1471_v58 = vand.u32 2147483648, %v1456_v51 }
 0xb26   :  { %vm5815_vm2 = vcmp.eq.f32.partialorder %v1469_v18, 8.507059e+37  ;;  %v1502_v33 = vor.u32 1.1754944e-38, %v1501_v0  ;;  %v1516_v1 = vand.u32 2147483648, %v1459_v57  ;;  %v1514_v49 = vand.u32 2147483647, %v1459_v57 }
 0xb27   :  { %v1472_v53 = vor.u32 1.1754944e-38, %v1471_v58  ;;  %v1487_v45 = vor.u32 1.1754944e-38, %v1486_v7  ;;  %vm1510_vm13 = vweird.f32 %v1459_v57  ;;  %vm1500_vm15 = vcmp.eq.f32.partialorder %v1499_v21, 8.507059e+37 }
 0xb28   :  { %v4846_v62 = vpop.eup %4845  ;;  %v1517_v0 = vor.u32 1.1754944e-38, %v1516_v1 }
 0xb29   :  { %v4848_v55 = vpop.eup %4847  ;;  %v1461_v5 = vmul.f32 %v4846_v62, %v1456_v51  ;;  %vm1466_vm14 = vweird.f32 %v4846_v62 }
 0xb2a   :  { %v4850_v16 = vpop.eup %4849  ;;  %v1476_v9 = vmul.f32 %v4848_v55, %v1457_v50  ;;  %vm1481_vm11 = vweird.f32 %v4848_v55  ;;  %vm1467_vm7 = vmor %vm1465_vm3, %vm1466_vm14  ;;  %vm1515_vm3 = vcmp.eq.f32.partialorder %v1514_v49, 8.507059e+37 }
 0xb2b   :  { %v4852_v60 = vpop.eup %4851  ;;  %v1491_v54 = vmul.f32 %v4850_v16, %v1458_v52  ;;  %v1462_v24 = vsub.f32 1.0, %v1461_v5  ;;  %vm1496_vm0 = vweird.f32 %v4850_v16  ;;  %vm1482_vm9 = vmor %vm1480_vm5, %vm1481_vm11  ;;  %vm7042_vm5 = vcmask 1043459  }
 0xb2c   :  { %v1477_v25 = vsub.f32 1.0, %v1476_v9  ;;  %v1506_v27 = vmul.f32 %v4852_v60, %v1459_v57  ;;  %vm1511_vm8 = vweird.f32 %v4852_v60  ;;  %vm1497_vm12 = vmor %vm1495_vm4, %vm1496_vm0  ;;  %vm7041_vm4 = vcmask 1042434  }
 0xb2d   :  { %v1492_v63 = vsub.f32 1.0, %v1491_v54  ;;  %v1463_v14 = vmul.f32 %v4846_v62, %v1462_v24  ;;  %vm1512_vm1 = vmor %vm1510_vm13, %vm1511_vm8 }
 0xb2e   :  { %v1478_v26 = vmul.f32 %v4848_v55, %v1477_v25  ;;  %v1507_v34 = vsub.f32 1.0, %v1506_v27 }
 0xb2f   :  { %v1493_v35 = vmul.f32 %v4850_v16, %v1492_v63  ;;  %v1464_v36 = vadd.f32 %v4846_v62, %v1463_v14 }
 0xb30   :  { %v1479_v42 = vadd.f32 %v4848_v55, %v1478_v26  ;;  %v1508_v40 = vmul.f32 %v4852_v60, %v1507_v34  ;;  %v1534_v26 = vrot.slane %v5781_v47, 7 }
 0xb31   :  { %v1494_v44 = vadd.f32 %v4850_v16, %v1493_v35  ;;  %v1468_v46 = vsel %vm1467_vm7, %v4846_v62, %v1464_v36 }
 0xb32   :  { %v1483_v11 = vsel %vm1482_vm9, %v4848_v55, %v1479_v42  ;;  %v5824_v20 = vsel %vm5815_vm2, %v1472_v53, %v1468_v46  ;;  %v1509_v5 = vadd.f32 %v4852_v60, %v1508_v40  ;;  %v1535_v40 = vrot.slane %v5774_v43, 7 }
 0xb33   :  { %v1498_v51 = vsel %vm1497_vm12, %v4850_v16, %v1494_v44  ;;  %v5828_v18 = vsel %vm5811_vm10, %v1487_v45, %v1483_v11  ;;  %v1520_v50 = vmul.f32 2.0, %v5824_v20  ;;  %v1533_v43 = vrot.slane %v5768_v38, 7 }
 0xb34   :  { %v1503_v62 = vsel %vm1500_vm15, %v1502_v33, %v1498_v51  ;;  %v1521_v52 = vmul.f32 2.0, %v5828_v18  ;;  %v1513_v55 = vsel %vm1512_vm1, %v4852_v60, %v1509_v5  ;;  %v1532_v33 = vrot.slane %v5766_v6, 7 }
 0xb35   :  { %v1522_v9 = vmul.f32 2.0, %v1503_v62  ;;  %v4572_v54 = vadd.f32 -1.0, %v1520_v50  ;;  %v5833_v57 = vsel %vm1515_vm3, %v1517_v0, %v1513_v55  ;;  %v1542_v1 = vmul.f32 %v1534_v26, %v1503_v62 }
 0xb36   :  { %v4573_v24 = vadd.f32 -1.0, %v1521_v52  ;;  %v1523_v21 = vmul.f32 2.0, %v5833_v57  ;;  %v1540_v34 = vmul.f32 %v1532_v33, %v5824_v20  ;;  %v1543_v44 = vmul.f32 %v1535_v40, %v5833_v57 }
 0xb37   :  { %v4574_v16 = vadd.f32 -1.0, %v1522_v9  ;;  %1548 = vrot.lane.b32.xlu2 %v4572_v54, %s5355_s19  ;;  %v1541_v11 = vmul.f32 %v1533_v43, %v5828_v18  ;;  %vm7043_vm10 = vcmask 261120  }
 0xb38   :  { %1550 = vrot.lane.b32.xlu0 %v4573_v24, %s5355_s19  ;;  %v4575_v8 = vadd.f32 -1.0, %v1523_v21 }
 0xb39   :  { %1552 = vrot.lane.b32.xlu1 %v4574_v16, %s5355_s19 }
 0xb3f   :  { %1554 = vrot.lane.b32.xlu2 %v4575_v8, %s5355_s19 }
 0xb91   :  { %v1549_v60 = vpop.permute.xlu2 %1548 }
 0xb92   :  { %v1560_v25 = vmul.f32 %v1549_v60, %v5824_v20 }
 0xb94   :  { %1568 = vrot.lane.b32.xlu0 %v1560_v25, %s5368_s6 }
 0xb99   :  { %v1555_v7 = vpop.permute.xlu2 %1554 }
 0xb9a   :  { %v1563_v58 = vmul.f32 %v1555_v7, %v5833_v57 }
 0xb9c   :  { %1574 = vrot.lane.b32.xlu0 %v1563_v58, %s5368_s6 }
 0xbaa   :  { %v1551_v27 = vpop.permute.xlu0 %1550 }
 0xbab   :  { %v1553_v63 = vpop.permute.xlu1 %1552  ;;  %v1561_v14 = vmul.f32 %v1551_v27, %v5828_v18 }
 0xbac   :  { %v1562_v32 = vmul.f32 %v1553_v63, %v1503_v62 }
 0xbad   :  { %1570 = vrot.lane.b32.xlu1 %v1561_v14, %s5368_s6 }
 0xbae   :  { %1572 = vrot.lane.b32.xlu2 %v1562_v32, %s5368_s6 }
 0xc06   :  { %v1569_v35 = vpop.permute.xlu0 %1568 }
 0xc07   :  { %v5850_v36 = vadd.f32 %v1569_v35, %v1540_v34 }
 0xc08   :  { %v1573_v42 = vpop.permute.xlu2 %1572 }
 0xc09   :  { %4853 = vtanh.f32 %v5850_v36  ;;  %v5853_v53 = vadd.f32 %v1573_v42, %v1542_v1 }
 0xc0b   :  { %4855 = vtanh.f32 %v5853_v53 }
 0xc0e   :  { %v1575_v6 = vpop.permute.xlu0 %1574 }
 0xc0f   :  { %v4854_v45 = vpop.eup %4853  ;;  %v5858_v47 = vadd.f32 %v1575_v6, %v1543_v44 }
 0xc10   :  { %1592 = vrot.lane.b32.xlu1 %v4854_v45, %s5355_s19 }
 0xc11   :  { %v4856_v46 = vpop.eup %4855  ;;  %4857 = vtanh.f32 %v5858_v47 }
 0xc12   :  { %1596 = vrot.lane.b32.xlu0 %v4856_v46, %s5355_s19 }
 0xc17   :  { %v4858_v49 = vpop.eup %4857 }
 0xc18   :  { %1598 = vrot.lane.b32.xlu1 %v4858_v49, %s5355_s19 }
 0xc1f   :  { %v1571_v5 = vpop.permute.xlu1 %1570 }
 0xc20   :  { %v5866_v51 = vadd.f32 %v1571_v5, %v1541_v11 }
 0xc22   :  { %4859 = vtanh.f32 %v5866_v51 }
 0xc28   :  { %v4860_v50 = vpop.eup %4859 }
 0xc29   :  { %1594 = vrot.lane.b32.xlu2 %v4860_v50, %s5355_s19 }
 0xc82   :  { %v1593_v52 = vpop.permute.xlu1 %1592 }
 0xc83   :  { %v5871_v55 = vmul.f32 %v1593_v52, %v5824_v20  ;;  %v1595_v0 = vpop.permute.xlu2 %1594 }
 0xc84   :  { %v1597_v9 = vpop.permute.xlu0 %1596  ;;  %v5874_v54 = vmul.f32 %v1595_v0, %v5828_v18 }
 0xc85   :  { %7039 = vst [vmem:[#allocation28_spill] sm:$0xff] %v5871_v55  ;;  %v1629_v38 = vpack.c.bf16 %v5871_v55, %v5871_v55  ;;  %v5878_v24 = vmul.f32 %v1597_v9, %v1503_v62 }
 0xc86   :  { %v1630_v16 = vpack.c.bf16 %v5874_v54, %v5874_v54 }
 0xc87   :  { %v1637_v21 = vunpack.c.l.b16 %v1629_v38  ;;  %v1631_v8 = vpack.c.bf16 %v5878_v24, %v5878_v24 }
 0xc88   :  { %v1638_v60 = vunpack.c.l.b16 %v1630_v16 }
 0xc89   :  { %v1639_v20 = vunpack.c.l.b16 %v1631_v8  ;;  %v1641_v7 = vrot.slane %v1637_v21, 4 }
 0xc8a   :  { %v1599_v25 = vpop.permute.xlu1 %1598  ;;  %v1642_v58 = vrot.slane %v1638_v60, 3 }
 0xc8b   :  { %v5885_v18 = vmul.f32 %v1599_v25, %v5833_v57  ;;  %v1644_v62 = vrot.slane %v1639_v20, 2 }
 0xc8c   :  { %v1643_v14 = vsel %vm702_vm6, %v1642_v58, %v1641_v7 }
 0xc8d   :  { %7040 = vst [vmem:[#allocation29_spill] sm:$0xff] %v5885_v18  ;;  %v1632_v27 = vpack.c.bf16 %v5885_v18, %v5885_v18  ;;  %v1645_v33 = vsel %vm7041_vm4, %v1644_v62, %v1643_v14 }
 0xc8f   :  { %v1640_v63 = vunpack.c.l.b16 %v1632_v27 }
 0xc91   :  { %v1646_v32 = vrot.slane %v1640_v63, 1 }
 0xc93   :  { %v1647_v26 = vsel %vm7042_vm5, %v1646_v32, %v1645_v33 }
 0xc94   :  { %v1648_v34 = vpack.c.b16 %v1647_v26, %v1647_v26 }
 0xc96   :  { %1649 = vrot.lane.b32.xlu2 %v1648_v34, %s5368_s6 }
 0xcf0   :  { %v1650_v35 = vpop.permute.xlu2 %1649 }
 0xcf1   :  { %4576 = vmatmul.msk.bf16.vlgmr.msra.gmra.mxu3 %vm7043_vm10, %v1650_v35 }
 0xd74   :  { %v1663_v57 = vpop.f32.mrf.mxu3 }
 0xd75   :  { %v1668_v1 = vrot.slane %v1663_v57, 3  ;;  %v1669_v42 = vrot.slane %v1663_v57, 4  ;;  %v1670_v40 = vrot.slane %v1663_v57, 5  ;;  %v1671_v44 = vrot.slane %v1663_v57, 6 }
 0xd77   :  { %v1676_v6 = vadd.f32 %v1668_v1, %v5491_v28  ;;  %v1677_v45 = vadd.f32 %v1669_v42, %v5493_v29  ;;  %v1678_v46 = vadd.f32 %v1670_v40, %v5495_v30  ;;  %v1679_v49 = vadd.f32 %v1671_v44, %v5497_v31 }
 0xd79   :  { %v4577_v43 = vmul.f32 -1.442695, %v1676_v6  ;;  %v4578_v11 = vmul.f32 -1.442695, %v1677_v45  ;;  %v4579_v5 = vmul.f32 -1.442695, %v1678_v46 }
 0xd7a   :  { %v4580_v50 = vmul.f32 -1.442695, %v1679_v49 }
 0xd7b   :  { %4861 = vpow2.f32 %v4577_v43 }
 0xd7c   :  { %4863 = vpow2.f32 %v4578_v11  ;;  %v1665_v52 = vpop.f32.mrf.mxu3 }
 0xd7d   :  { %4865 = vpow2.f32 %v4579_v5 }
 0xd7e   :  { %4867 = vpow2.f32 %v4580_v50 }
 0xd81   :  { %v4862_v0 = vpop.eup %4861 }
 0xd82   :  { %v4864_v9 = vpop.eup %4863  ;;  %v1692_v38 = vadd.f32 1.0, %v4862_v0 }
 0xd83   :  { %v4866_v16 = vpop.eup %4865  ;;  %v1693_v21 = vadd.f32 1.0, %v4864_v9 }
 0xd84   :  { %v4868_v8 = vpop.eup %4867  ;;  %v1694_v60 = vadd.f32 1.0, %v4866_v16  ;;  %4869 = vrcp.f32 %v1692_v38  ;;  %vm1701_vm14 = vweird.f32 %v1692_v38  ;;  %v1705_v62 = vand.u32 2147483647, %v1692_v38 }
 0xd85   :  { %v1695_v20 = vadd.f32 1.0, %v4868_v8  ;;  %4871 = vrcp.f32 %v1693_v21  ;;  %v1720_v25 = vand.u32 2147483647, %v1693_v21  ;;  %vm1716_vm11 = vweird.f32 %v1693_v21 }
 0xd86   :  { %4873 = vrcp.f32 %v1694_v60  ;;  %vm1731_vm2 = vweird.f32 %v1694_v60  ;;  %v1737_v14 = vand.u32 2147483648, %v1694_v60  ;;  %v1735_v34 = vand.u32 2147483647, %v1694_v60 }
 0xd87   :  { %4875 = vrcp.f32 %v1695_v20  ;;  %vm5898_vm0 = vcmp.eq.f32.partialorder %v1720_v25, 8.507059e+37  ;;  %v1722_v42 = vand.u32 2147483648, %v1693_v21  ;;  %v1707_v40 = vand.u32 2147483648, %v1692_v38 }
 0xd88   :  { %vm5902_vm8 = vcmp.eq.f32.partialorder %v1705_v62, 8.507059e+37  ;;  %v1738_v49 = vor.u32 1.1754944e-38, %v1737_v14  ;;  %v1752_v52 = vand.u32 2147483648, %v1695_v20  ;;  %v1750_v62 = vand.u32 2147483647, %v1695_v20 }
 0xd89   :  { %v1708_v9 = vor.u32 1.1754944e-38, %v1707_v40  ;;  %v1723_v25 = vor.u32 1.1754944e-38, %v1722_v42  ;;  %vm1746_vm4 = vweird.f32 %v1695_v20  ;;  %vm1736_vm5 = vcmp.eq.f32.partialorder %v1735_v34, 8.507059e+37 }
 0xd8a   :  { %v4870_v7 = vpop.eup %4869 }
 0xd8b   :  { %v4872_v58 = vpop.eup %4871  ;;  %v1697_v27 = vmul.f32 %v4870_v7, %v1692_v38  ;;  %vm1702_vm7 = vweird.f32 %v4870_v7 }
 0xd8c   :  { %v4874_v63 = vpop.eup %4873  ;;  %v1712_v32 = vmul.f32 %v4872_v58, %v1693_v21  ;;  %vm1717_vm9 = vweird.f32 %v4872_v58  ;;  %vm1703_vm13 = vmor %vm1701_vm14, %vm1702_vm7  ;;  %vm1751_vm14 = vcmp.eq.f32.partialorder %v1750_v62, 8.507059e+37 }
 0xd8d   :  { %v4876_v33 = vpop.eup %4875  ;;  %v1727_v26 = vmul.f32 %v4874_v63, %v1694_v60  ;;  %v1698_v57 = vsub.f32 1.0, %v1697_v27  ;;  %vm1732_vm12 = vweird.f32 %v4874_v63  ;;  %vm1718_vm1 = vmor %vm1716_vm11, %vm1717_vm9  ;;  %vm7051_vm11 = vcmask 1043459  }
 0xd8e   :  { %v1713_v1 = vsub.f32 1.0, %v1712_v32  ;;  %v1742_v44 = vmul.f32 %v4876_v33, %v1695_v20  ;;  %vm1747_vm15 = vweird.f32 %v4876_v33  ;;  %vm1733_vm3 = vmor %vm1731_vm2, %vm1732_vm12  ;;  %vm7050_vm2 = vcmask 1042434  }
 0xd8f   :  { %v1728_v6 = vsub.f32 1.0, %v1727_v26  ;;  %v1699_v45 = vmul.f32 %v4870_v7, %v1698_v57  ;;  %vm1748_vm10 = vmor %vm1746_vm4, %vm1747_vm15 }
 0xd90   :  { %v1714_v43 = vmul.f32 %v4872_v58, %v1713_v1  ;;  %v1743_v11 = vsub.f32 1.0, %v1742_v44  ;;  %v1753_v1 = vor.u32 1.1754944e-38, %v1752_v52  ;;  %v1770_v52 = vrot.slane %v5853_v53, 7 }
 0xd91   :  { %v1729_v5 = vmul.f32 %v4874_v63, %v1728_v6  ;;  %v1700_v50 = vadd.f32 %v4870_v7, %v1699_v45  ;;  %v1768_v53 = vrot.slane %v5850_v36, 7 }
 0xd92   :  { %v1715_v0 = vadd.f32 %v4872_v58, %v1714_v43  ;;  %v1744_v16 = vmul.f32 %v4876_v33, %v1743_v11 }
 0xd93   :  { %v1730_v8 = vadd.f32 %v4874_v63, %v1729_v5  ;;  %v1704_v27 = vsel %vm1703_vm13, %v4870_v7, %v1700_v50  ;;  %v1769_v50 = vrot.slane %v5866_v51, 7 }
 0xd94   :  { %v1719_v14 = vsel %vm1718_vm1, %v4872_v58, %v1715_v0  ;;  %v5911_v32 = vsel %vm5902_vm8, %v1708_v9, %v1704_v27  ;;  %v1745_v26 = vadd.f32 %v4876_v33, %v1744_v16 }
 0xd95   :  { %v1734_v38 = vsel %vm1733_vm3, %v4874_v63, %v1730_v8  ;;  %v5915_v57 = vsel %vm5898_vm0, %v1723_v25, %v1719_v14  ;;  %v1756_v21 = vmul.f32 2.0, %v5911_v32  ;;  %v1776_v51 = vmul.f32 %v1768_v53, %v5911_v32 }
 0xd96   :  { %v1739_v7 = vsel %vm1736_vm5, %v1738_v49, %v1734_v38  ;;  %v1757_v60 = vmul.f32 2.0, %v5915_v57  ;;  %v1749_v58 = vsel %vm1748_vm10, %v4876_v33, %v1745_v26  ;;  %v1777_v0 = vmul.f32 %v1769_v50, %v5915_v57 }
 0xd97   :  { %v1758_v42 = vmul.f32 2.0, %v1739_v7  ;;  %v4581_v40 = vadd.f32 -1.0, %v1756_v21  ;;  %v5920_v20 = vsel %vm1751_vm14, %v1753_v1, %v1749_v58  ;;  %v1778_v16 = vmul.f32 %v1770_v52, %v1739_v7 }
 0xd98   :  { %v4582_v44 = vadd.f32 -1.0, %v1757_v60  ;;  %v1759_v34 = vmul.f32 2.0, %v5920_v20  ;;  %v1771_v21 = vrot.slane %v5858_v47, 7  ;;  %vm7052_vm0 = vcmask 261120  }
 0xd99   :  { %v4583_v63 = vadd.f32 -1.0, %v1758_v42  ;;  %1784 = vrot.lane.b32.xlu0 %v4581_v40, %s5355_s19 }
 0xd9a   :  { %1786 = vrot.lane.b32.xlu1 %v4582_v44, %s5355_s19  ;;  %v4584_v35 = vadd.f32 -1.0, %v1759_v34  ;;  %v1779_v60 = vmul.f32 %v1771_v21, %v5920_v20 }
 0xd9b   :  { %1788 = vrot.lane.b32.xlu2 %v4583_v63, %s5355_s19 }
 0xda1   :  { %1790 = vrot.lane.b32.xlu0 %v4584_v35, %s5355_s19 }
 0xdf5   :  { %v1789_v33 = vpop.permute.xlu2 %1788 }
 0xdf6   :  { %v1798_v6 = vmul.f32 %v1789_v33, %v1739_v7 }
 0xdf8   :  { %1808 = vrot.lane.b32.xlu0 %v1798_v6, %s5368_s6 }
 0xe0b   :  { %v1785_v45 = vpop.permute.xlu0 %1784 }
 0xe0c   :  { %v1787_v46 = vpop.permute.xlu1 %1786  ;;  %v1796_v49 = vmul.f32 %v1785_v45, %v5911_v32 }
 0xe0d   :  { %v1797_v43 = vmul.f32 %v1787_v46, %v5915_v57 }
 0xe0e   :  { %1804 = vrot.lane.b32.xlu1 %v1796_v49, %s5368_s6 }
 0xe0f   :  { %1806 = vrot.lane.b32.xlu2 %v1797_v43, %s5368_s6 }
 0xe13   :  { %v1791_v11 = vpop.permute.xlu0 %1790 }
 0xe14   :  { %v1799_v5 = vmul.f32 %v1791_v11, %v5920_v20 }
 0xe16   :  { %1810 = vrot.lane.b32.xlu1 %v1799_v5, %s5368_s6 }
 0xe69   :  { %v1807_v9 = vpop.permute.xlu2 %1806 }
 0xe6a   :  { %v5937_v8 = vadd.f32 %v1807_v9, %v1777_v0  ;;  %v1809_v25 = vpop.permute.xlu0 %1808 }
 0xe6b   :  { %v5939_v27 = vadd.f32 %v1809_v25, %v1778_v16 }
 0xe6c   :  { %4877 = vtanh.f32 %v5937_v8 }
 0xe6d   :  { %4879 = vtanh.f32 %v5939_v27 }
 0xe72   :  { %v4878_v62 = vpop.eup %4877 }
 0xe73   :  { %v4880_v14 = vpop.eup %4879  ;;  %1830 = vrot.lane.b32.xlu0 %v4878_v62, %s5355_s19 }
 0xe74   :  { %1832 = vrot.lane.b32.xlu1 %v4880_v14, %s5355_s19 }
 0xe80   :  { %v1805_v26 = vpop.permute.xlu1 %1804 }
 0xe81   :  { %v5947_v38 = vadd.f32 %v1805_v26, %v1776_v51 }
 0xe83   :  { %4881 = vtanh.f32 %v5947_v38 }
 0xe88   :  { %v1811_v58 = vpop.permute.xlu1 %1810 }
 0xe89   :  { %v4882_v1 = vpop.eup %4881  ;;  %v5952_v42 = vadd.f32 %v1811_v58, %v1779_v60 }
 0xe8a   :  { %1828 = vrot.lane.b32.xlu2 %v4882_v1, %s5355_s19 }
 0xe8b   :  { %4883 = vtanh.f32 %v5952_v42 }
 0xe91   :  { %v4884_v36 = vpop.eup %4883 }
 0xe92   :  { %1834 = vrot.lane.b32.xlu2 %v4884_v36, %s5355_s19 }
 0xee4   :  { %v1829_v40 = vpop.permute.xlu2 %1828 }
 0xee5   :  { %v5958_v44 = vmul.f32 %v1829_v40, %v5911_v32  ;;  %v1831_v63 = vpop.permute.xlu0 %1830 }
 0xee6   :  { %v1833_v34 = vpop.permute.xlu1 %1832  ;;  %v5961_v47 = vmul.f32 %v1831_v63, %v5915_v57 }
 0xee7   :  { %7048 = vst [vmem:[#allocation30_spill] sm:$0xff] %v5958_v44  ;;  %v1865_v35 = vpack.c.bf16 %v5958_v44, %v5958_v44  ;;  %v5965_v33 = vmul.f32 %v1833_v34, %v1739_v7 }
 0xee8   :  { %v1866_v6 = vpack.c.bf16 %v5961_v47, %v5961_v47 }
 0xee9   :  { %v1873_v45 = vunpack.c.l.b16 %v1865_v35  ;;  %v1867_v46 = vpack.c.bf16 %v5965_v33, %v5965_v33 }
 0xeea   :  { %v1874_v49 = vunpack.c.l.b16 %v1866_v6 }
 0xeeb   :  { %v1875_v32 = vunpack.c.l.b16 %v1867_v46  ;;  %v1877_v11 = vrot.slane %v1873_v45, 5 }
 0xeec   :  { %v1835_v43 = vpop.permute.xlu2 %1834  ;;  %v1878_v5 = vrot.slane %v1874_v49, 4 }
 0xeed   :  { %v5972_v57 = vmul.f32 %v1835_v43, %v5920_v20  ;;  %v1880_v7 = vrot.slane %v1875_v32, 3 }
 0xeee   :  { %v1879_v0 = vsel %vm702_vm6, %v1878_v5, %v1877_v11 }
 0xeef   :  { %7049 = vst [vmem:[#allocation31_spill] sm:$0xff] %v5972_v57  ;;  %v1868_v50 = vpack.c.bf16 %v5972_v57, %v5972_v57  ;;  %v1881_v16 = vsel %vm7050_vm2, %v1880_v7, %v1879_v0 }
 0xef1   :  { %v1876_v52 = vunpack.c.l.b16 %v1868_v50 }
 0xef3   :  { %v1882_v9 = vrot.slane %v1876_v52, 2 }
 0xef5   :  { %v1883_v25 = vsel %vm7051_vm11, %v1882_v9, %v1881_v16 }
 0xef6   :  { %v1884_v62 = vpack.c.b16 %v1883_v25, %v1883_v25 }
 0xef8   :  { %1885 = vrot.lane.b32.xlu0 %v1884_v62, %s5368_s6 }
 0xf6a   :  { %v1886_v14 = vpop.permute.xlu0 %1885 }
 0xf6b   :  { %4585 = vmatmul.msk.bf16.vlgmr.msra.gmra.mxu0 %vm7052_vm0, %v1886_v14 }
 0xfe8   :  { %v1899_v20 = vpop.f32.mrf.mxu0 }
 0xfe9   :  { %v1904_v53 = vrot.slane %v1899_v20, 2  ;;  %v1905_v51 = vrot.slane %v1899_v20, 3  ;;  %v1906_v26 = vrot.slane %v1899_v20, 4  ;;  %v1907_v21 = vrot.slane %v1899_v20, 5 }
 0xfeb   :  { %v1912_v60 = vadd.f32 %v1904_v53, %v5491_v28  ;;  %v1913_v58 = vadd.f32 %v1905_v51, %v5493_v29  ;;  %v1914_v1 = vadd.f32 %v1906_v26, %v5495_v30  ;;  %v1915_v36 = vadd.f32 %v1907_v21, %v5497_v31 }
 0xfed   :  { %v4586_v40 = vmul.f32 -1.442695, %v1912_v60  ;;  %v4587_v63 = vmul.f32 -1.442695, %v1913_v58  ;;  %v4588_v34 = vmul.f32 -1.442695, %v1914_v1 }
 0xfee   :  { %v4589_v35 = vmul.f32 -1.442695, %v1915_v36 }
 0xfef   :  { %4885 = vpow2.f32 %v4586_v40 }
 0xff0   :  { %4887 = vpow2.f32 %v4587_v63  ;;  %v1901_v6 = vpop.f32.mrf.mxu0 }
 0xff1   :  { %4889 = vpow2.f32 %v4588_v34 }
 0xff2   :  { %4891 = vpow2.f32 %v4589_v35 }
 0xff5   :  { %v4886_v45 = vpop.eup %4885 }
 0xff6   :  { %v4888_v46 = vpop.eup %4887  ;;  %v1928_v49 = vadd.f32 1.0, %v4886_v45 }
 0xff7   :  { %v4890_v32 = vpop.eup %4889  ;;  %v1929_v43 = vadd.f32 1.0, %v4888_v46 }
 0xff8   :  { %v4892_v11 = vpop.eup %4891  ;;  %v1930_v5 = vadd.f32 1.0, %v4890_v32  ;;  %4893 = vrcp.f32 %v1928_v49  ;;  %vm1937_vm7 = vweird.f32 %v1928_v49  ;;  %v1941_v16 = vand.u32 2147483647, %v1928_v49 }
 0xff9   :  { %v1931_v50 = vadd.f32 1.0, %v4892_v11  ;;  %4895 = vrcp.f32 %v1929_v43  ;;  %v1956_v7 = vand.u32 2147483647, %v1929_v43  ;;  %vm1952_vm9 = vweird.f32 %v1929_v43 }
 0xffa   :  { %4897 = vrcp.f32 %v1930_v5  ;;  %vm1967_vm8 = vweird.f32 %v1930_v5  ;;  %v1973_v62 = vand.u32 2147483648, %v1930_v5  ;;  %v1971_v51 = vand.u32 2147483647, %v1930_v5 }
 0xffb   :  { %4899 = vrcp.f32 %v1931_v50  ;;  %vm5985_vm12 = vcmp.eq.f32.partialorder %v1956_v7, 8.507059e+37  ;;  %v1958_v58 = vand.u32 2147483648, %v1929_v43  ;;  %v1943_v1 = vand.u32 2147483648, %v1928_v49 }
 0xffc   :  { %vm5989_vm15 = vcmp.eq.f32.partialorder %v1941_v16, 8.507059e+37  ;;  %v1974_v35 = vor.u32 1.1754944e-38, %v1973_v62  ;;  %v1988_v11 = vand.u32 2147483648, %v1931_v50  ;;  %v1986_v19 = vand.u32 2147483647, %v1931_v50 }
 0xffd   :  { %v1959_v16 = vor.u32 1.1754944e-38, %v1958_v58  ;;  %vm1982_vm2 = vweird.f32 %v1931_v50  ;;  %vm1972_vm11 = vcmp.eq.f32.partialorder %v1971_v51, 8.507059e+37 }
 0xffe   :  { %v4894_v52 = vpop.eup %4893  ;;  %v1989_v58 = vor.u32 1.1754944e-38, %v1988_v11 }
 0xfff   :  { %v4896_v0 = vpop.eup %4895  ;;  %v1933_v9 = vmul.f32 %v4894_v52, %v1928_v49  ;;  %vm1938_vm13 = vweird.f32 %v4894_v52 }
0x1000   :  { %v4898_v25 = vpop.eup %4897  ;;  %v1948_v14 = vmul.f32 %v4896_v0, %v1929_v43  ;;  %vm1953_vm1 = vweird.f32 %v4896_v0  ;;  %vm1939_vm4 = vmor %vm1937_vm7, %vm1938_vm13  ;;  %vm1987_vm7 = vcmp.eq.f32.partialorder %v1986_v19, 8.507059e+37  ;;  %vm7060_vm13 = vcmask 1043459  }
0x1001   :  { %v4900_v20 = vpop.eup %4899  ;;  %v1963_v53 = vmul.f32 %v4898_v25, %v1930_v5  ;;  %v1934_v21 = vsub.f32 1.0, %v1933_v9  ;;  %vm1968_vm3 = vweird.f32 %v4898_v25  ;;  %v1944_v9 = vor.u32 1.1754944e-38, %v1943_v1  ;;  %vm1954_vm10 = vmor %vm1952_vm9, %vm1953_vm1 }
0x1002   :  { %v1949_v60 = vsub.f32 1.0, %v1948_v14  ;;  %v1978_v36 = vmul.f32 %v4900_v20, %v1931_v50  ;;  %vm1983_vm5 = vweird.f32 %v4900_v20  ;;  %vm1969_vm14 = vmor %vm1967_vm8, %vm1968_vm3  ;;  %vm7061_vm1 = vcmask 523264  }
0x1003   :  { %v1964_v40 = vsub.f32 1.0, %v1963_v53  ;;  %v1935_v63 = vmul.f32 %v4894_v52, %v1934_v21  ;;  %vm1984_vm0 = vmor %vm1982_vm2, %vm1983_vm5 }
0x1004   :  { %v1950_v6 = vmul.f32 %v4896_v0, %v1949_v60  ;;  %v1979_v45 = vsub.f32 1.0, %v1978_v36  ;;  %vm7063_vm5 = vmmov %vm7061_vm1 }
0x1005   :  { %v1965_v46 = vmul.f32 %v4898_v25, %v1964_v40  ;;  %v1936_v32 = vadd.f32 %v4894_v52, %v1935_v63 }
0x1006   :  { %v1951_v7 = vadd.f32 %v4896_v0, %v1950_v6  ;;  %v1980_v14 = vmul.f32 %v4900_v20, %v1979_v45 }
0x1007   :  { %v1966_v53 = vadd.f32 %v4898_v25, %v1965_v46  ;;  %v1940_v21 = vsel %vm1939_vm4, %v4894_v52, %v1936_v32  ;;  %vm7062_vm4 = vmmov %vm7061_vm1 }
0x1008   :  { %v1955_v62 = vsel %vm1954_vm10, %v4896_v0, %v1951_v7  ;;  %v5998_v60 = vsel %vm5989_vm15, %v1944_v9, %v1940_v21  ;;  %v1981_v36 = vadd.f32 %v4900_v20, %v1980_v14  ;;  %v2004_v7 = vrot.slane %v5947_v38, 7  ;;  %vm7064_vm10 = vmmov %vm7061_vm1 }
0x1009   :  { %v1970_v49 = vsel %vm1969_vm14, %v4898_v25, %v1966_v53  ;;  %v6002_v1 = vsel %vm5985_vm12, %v1959_v16, %v1955_v62  ;;  %v1992_v43 = vmul.f32 2.0, %v5998_v60  ;;  %v2005_v9 = vrot.slane %v5937_v8, 7 }
0x100a   :  { %v6006_v52 = vsel %vm1972_vm11, %v1974_v35, %v1970_v49  ;;  %v1993_v5 = vmul.f32 2.0, %v6002_v1  ;;  %v1985_v0 = vsel %vm1984_vm0, %v4900_v20, %v1981_v36  ;;  %v2012_v14 = vmul.f32 %v2004_v7, %v5998_v60 }
0x100b   :  { %v1994_v40 = vmul.f32 2.0, %v6006_v52  ;;  %v4590_v63 = vadd.f32 -1.0, %v1992_v43  ;;  %v6010_v25 = vsel %vm1987_vm7, %v1989_v58, %v1985_v0  ;;  %v2013_v53 = vmul.f32 %v2005_v9, %v6002_v1  ;;  %v262_v58 = vld [vmem:[#allocation6] sm:$0xf] }
0x100c   :  { %v4591_v50 = vadd.f32 -1.0, %v1993_v5  ;;  %v1995_v26 = vmul.f32 2.0, %v6010_v25  ;;  %v2007_v49 = vrot.slane %v5952_v42, 7  ;;  %v277_v42 = vperm.slane %v262_v58, 2 }
0x100d   :  { %v4592_v51 = vadd.f32 -1.0, %v1994_v40  ;;  %2020 = vrot.lane.b32.xlu1 %v4590_v63, %s5355_s19  ;;  %v263_v40 = vperm.slane %v262_v58, 0  ;;  %vm7059_vm12 = vcmask 1042434   ;;  %vm7065_vm14 = vcmask 261120  }
0x100e   :  { %2022 = vrot.lane.b32.xlu2 %v4591_v50, %s5355_s19  ;;  %v4593_v34 = vadd.f32 -1.0, %v1995_v26  ;;  %v2015_v38 = vmul.f32 %v2007_v49, %v6010_v25  ;;  %v2006_v50 = vrot.slane %v5939_v27, 7  ;;  %v336_v27 = vld [vmem:[#allocation11 + $0x28] sm:$0xff] }
0x100f   :  { %2024 = vrot.lane.b32.xlu0 %v4592_v51, %s5355_s19  ;;  %v284_v51 = vperm.slane %v262_v58, 3 }
0x1010   :  { %v2014_v26 = vmul.f32 %v2006_v50, %v6006_v52 }
0x1015   :  { %2026 = vrot.lane.b32.xlu1 %v4593_v34, %s5355_s19 }
0x1068   :  { %v2023_v20 = vpop.permute.xlu2 %2022 }
0x1069   :  { %v2033_v35 = vmul.f32 %v2023_v20, %v6002_v1 }
0x106b   :  { %2042 = vrot.lane.b32.xlu0 %v2033_v35, %s5368_s6 }
0x107f   :  { %v2021_v19 = vpop.permute.xlu1 %2020 }
0x1080   :  { %v2032_v6 = vmul.f32 %v2021_v19, %v5998_v60  ;;  %v270_v19 = vperm.slane %v262_v58, 1 }
0x1081   :  { %v2025_v45 = vpop.permute.xlu0 %2024 }
0x1082   :  { %v2034_v46 = vmul.f32 %v2025_v45, %v6006_v52  ;;  %2040 = vrot.lane.b32.xlu2 %v2032_v6, %s5368_s6  ;;  %v338_v6 = vld [vmem:[#allocation11 + $0x38] sm:$0xff]  ;;  %v337_v45 = vld [vmem:[#allocation11 + $0x30] sm:$0xff] }
0x1083   :  { %394 = vmatpush.msra.mxu1 %v338_v6 }
0x1084   :  { %2044 = vrot.lane.b32.xlu1 %v2034_v46, %s5368_s6  ;;  %v335_v46 = vld [vmem:[#allocation11 + $0x20] sm:$0xff] }
0x1085   :  { %395 = vmatpush.msra.mxu1 %v337_v45 }
0x1087   :  { %v2027_v32 = vpop.permute.xlu1 %2026  ;;  %396 = vmatpush.msra.mxu1 %v336_v27 }
0x1088   :  { %v2035_v11 = vmul.f32 %v2027_v32, %v6010_v25  ;;  %v334_v32 = vld [vmem:[#allocation11 + $0x18] sm:$0xff] }
0x1089   :  { %397 = vmatpush.msra.mxu1 %v335_v46 }
0x108a   :  { %2046 = vrot.lane.b32.xlu2 %v2035_v11, %s5368_s6  ;;  %v333_v11 = vld [vmem:[#allocation11 + $0x10] sm:$0xff] }
0x108b   :  { %398 = vmatpush.msra.mxu1 %v334_v32 }
0x108d   :  { %399 = vmatpush.msra.mxu1 %v333_v11 }
0x10dc   :  { %v2041_v16 = vpop.permute.xlu2 %2040 }
0x10dd   :  { %v2043_v21 = vpop.permute.xlu0 %2042  ;;  %v6029_v62 = vadd.f32 %v2041_v16, %v2012_v14 }
0x10de   :  { %v6031_v36 = vadd.f32 %v2043_v21, %v2013_v53 }
0x10df   :  { %4901 = vtanh.f32 %v6029_v62 }
0x10e0   :  { %4903 = vtanh.f32 %v6031_v36 }
0x10e4   :  { %v2047_v43 = vpop.permute.xlu2 %2046 }
0x10e5   :  { %v4902_v8 = vpop.eup %4901  ;;  %v6037_v5 = vadd.f32 %v2047_v43, %v2015_v38 }
0x10e6   :  { %v4904_v0 = vpop.eup %4903  ;;  %2064 = vrot.lane.b32.xlu0 %v4902_v8, %s5355_s19 }
0x10e7   :  { %4905 = vtanh.f32 %v6037_v5  ;;  %2066 = vrot.lane.b32.xlu1 %v4904_v0, %s5355_s19  ;;  %v332_v0 = vld [vmem:[#allocation11 + $0x8] sm:$0xff] }
0x10e8   :  { %400 = vmatpush.msra.mxu1 %v332_v0 }
0x10ed   :  { %v4906_v63 = vpop.eup %4905 }
0x10ee   :  { %2070 = vrot.lane.b32.xlu0 %v4906_v63, %s5355_s19 }
0x10ef   :  { %268 = vperm.xlu1 %4739, %v263_v40  }
0x10f6   :  { %v2045_v34 = vpop.permute.xlu1 %2044  ;;  %282 = vperm.xlu0 %4738, %v277_v42  }
0x10f7   :  { %v6045_v20 = vadd.f32 %v2045_v34, %v2014_v26  ;;  %289 = vperm.xlu1 %4739, %v284_v51   ;;  %v5125_v51 = vld [vmem:[#allocation9 + $0x8] sm:$0xff]  ;;  %v7058_v34 = vmov 0.0  }
0x10f9   :  { %4907 = vtanh.f32 %v6045_v20 }
0x10ff   :  { %v4908_v35 = vpop.eup %4907 }
0x1100   :  { %2068 = vrot.lane.b32.xlu2 %v4908_v35, %s5355_s19 }
0x1108   :  { %275 = vperm.xlu2 %4740, %v270_v19  }
0x1158   :  { %v2065_v7 = vpop.permute.xlu0 %2064 }
0x1159   :  { %v6050_v9 = vmul.f32 %v2065_v7, %v5998_v60  ;;  %v2067_v14 = vpop.permute.xlu1 %2066 }
0x115a   :  { %v2069_v53 = vpop.permute.xlu2 %2068  ;;  %v6053_v16 = vmul.f32 %v2067_v14, %v6002_v1  ;;  %v331_v1 = vld [vmem:[#allocation11] sm:$0xff]  ;;  %v5126_v14 = vld [vmem:[#allocation9] sm:$0xff] }
0x115b   :  { %v2101_v21 = vpack.c.bf16 %v6050_v9, %v6050_v9  ;;  %v6058_v49 = vmul.f32 %v2069_v53, %v6006_v52  ;;  %401 = vmatpush.msra.mxu1 %v331_v1 }
0x115c   :  { %v2102_v38 = vpack.c.bf16 %v6053_v16, %v6053_v16 }
0x115d   :  { %v2109_v43 = vunpack.c.l.b16 %v2101_v21  ;;  %v2103_v8 = vpack.c.bf16 %v6058_v49, %v6058_v49  ;;  %2132 = vmatpush.bf16.msrb.mxu1 %v5125_v51 }
0x115e   :  { %v2110_v60 = vunpack.c.l.b16 %v2102_v38 }
0x115f   :  { %v2111_v58 = vunpack.c.l.b16 %v2103_v8  ;;  %v2113_v63 = vrot.slane %v2109_v43, 6 }
0x1160   :  { %v2071_v40 = vpop.permute.xlu0 %2070  ;;  %v2114_v42 = vrot.slane %v2110_v60, 5 }
0x1161   :  { %v6065_v50 = vmul.f32 %v2071_v40, %v6010_v25  ;;  %v269_v52 = vpop.permute.xlu1 %268  ;;  %v2116_v6 = vrot.slane %v2111_v58, 4  ;;  %2133 = vmatpush.bf16.msrb.mxu1 %v5126_v14 }
0x1162   :  { %vm291_vm8 = vcmp.eq.s32.totalorder %v269_v52, %v5475_v17  ;;  %v276_v19 = vpop.permute.xlu2 %275  ;;  %v2115_v11 = vsel %vm702_vm6, %v2114_v42, %v2113_v63 }
0x1163   :  { %7057 = vst [vmem:[#allocation32_spill] sm:$0xff] %v6065_v50  ;;  %v2104_v26 = vpack.c.bf16 %v6065_v50, %v6065_v50  ;;  %v4516_v35 = vsel %vm291_vm8, 1.0, %v7058_v34  ;;  %vm292_vm9 = vcmp.eq.s32.totalorder %v276_v19, %v5475_v17  ;;  %v2117_v38 = vsel %vm7059_vm12, %v2116_v6, %v2115_v11 }
0x1164   :  { %v307_v45 = vrot.slane %v4516_v35, 1  ;;  %v308_v27 = vrot.slane %v4516_v35, 2  ;;  %v309_v46 = vrot.slane %v4516_v35, 3  ;;  %339 = vst [vmem:[#allocation1] ss:$9 sm:$0xff] %v4516_v35  ;;  %v310_v25 = vrot.slane %v4516_v35, 4 }
0x1165   :  { %v2112_v32 = vunpack.c.l.b16 %v2104_v26  ;;  %v311_v7 = vrot.slane %v4516_v35, 5  ;;  %v312_v21 = vrot.slane %v4516_v35, 6  ;;  %v4517_v43 = vsel %vm292_vm9, 1.0, %v7058_v34 }
0x1166   :  { %341 = vst [vmem:[#allocation1 + $0x1] ss:$9 sm:$0xff] %v307_v45  ;;  %v313_v58 = vrot.slane %v4517_v43, 1  ;;  %v314_v40 = vrot.slane %v4517_v43, 2  ;;  %v315_v1 = vrot.slane %v4517_v43, 3  ;;  %v316_v63 = vrot.slane %v4517_v43, 4 }
0x1167   :  { %v2118_v53 = vrot.slane %v2112_v32, 3  ;;  %343 = vst [vmem:[#allocation1 + $0x2] ss:$9 sm:$0xff] %v308_v27  ;;  %v317_v52 = vrot.slane %v4517_v43, 5  ;;  %v318_v26 = vrot.slane %v4517_v43, 6 }
0x1168   :  { %345 = vst [vmem:[#allocation1 + $0x3] ss:$9 sm:$0xff] %v309_v46  ;;  %v283_v0 = vpop.permute.xlu0 %282 }
0x1169   :  { %347 = vst [vmem:[#allocation1 + $0x4] ss:$9 sm:$0xff] %v310_v25  ;;  %v2119_v8 = vsel %vm7060_vm13, %v2118_v53, %v2117_v38  ;;  %vm293_vm15 = vcmp.eq.s32.totalorder %v283_v0, %v5475_v17  ;;  %v290_v19 = vpop.permute.xlu1 %289 }
0x116a   :  { %349 = vst [vmem:[#allocation1 + $0x5] ss:$9 sm:$0xff] %v311_v7  ;;  %v2120_v60 = vpack.c.b16 %v2119_v8, %v2119_v8  ;;  %v4518_v51 = vsel %vm293_vm15, 1.0, %v7058_v34  ;;  %vm294_vm3 = vcmp.eq.s32.totalorder %v290_v19, %v5475_v17 }
0x116b   :  { %351 = vst [vmem:[#allocation1 + $0x6] ss:$9 sm:$0xff] %v312_v21  ;;  %v319_v35 = vrot.slane %v4518_v51, 1  ;;  %v324_v6 = vrot.slane %v4518_v51, 6  ;;  %v320_v45 = vrot.slane %v4518_v51, 2  ;;  %v321_v46 = vrot.slane %v4518_v51, 3 }
0x116c   :  { %353 = vst [vmem:[#allocation1 + $0x7] ss:$9 sm:$0xff] %v4517_v43  ;;  %2121 = vrot.lane.b32.xlu2 %v2120_v60, %s5368_s6  ;;  %v322_v32 = vrot.slane %v4518_v51, 4  ;;  %v4519_v25 = vsel %vm294_vm3, 1.0, %v7058_v34  ;;  %v323_v11 = vrot.slane %v4518_v51, 5 }
0x116d   :  { %v325_v7 = vrot.slane %v4519_v25, 1  ;;  %v326_v14 = vrot.slane %v4519_v25, 2  ;;  %v327_v17 = vrot.slane %v4519_v25, 3  ;;  %v328_v53 = vrot.slane %v4519_v25, 4 }
0x116e   :  { %v329_v38 = vrot.slane %v4519_v25, 5  ;;  %v330_v43 = vrot.slane %v4519_v25, 6 }
0x1173   :  { %v354_v42 = vld [vmem:[#allocation1] sm:$0xff] }
0x1174   :  { %355 = vst [vmem:[#allocation1] ss:$9 sm:$0xff] %v313_v58  ;;  %4520 = vmatmul.msk.f32.vlgmr.msra.gmra.mxu1 %vm7061_vm1, %v354_v42 }
0x1175   :  { %356 = vst [vmem:[#allocation1 + $0x1] ss:$9 sm:$0xff] %v314_v40 }
0x1176   :  { %357 = vst [vmem:[#allocation1 + $0x2] ss:$9 sm:$0xff] %v315_v1 }
0x1177   :  { %358 = vst [vmem:[#allocation1 + $0x3] ss:$9 sm:$0xff] %v316_v63 }
0x1178   :  { %359 = vst [vmem:[#allocation1 + $0x4] ss:$9 sm:$0xff] %v317_v52 }
0x1179   :  { %360 = vst [vmem:[#allocation1 + $0x5] ss:$9 sm:$0xff] %v318_v26 }
0x117a   :  { %361 = vst [vmem:[#allocation1 + $0x6] ss:$9 sm:$0xff] %v4518_v51 }
0x117b   :  { %362 = vst [vmem:[#allocation1 + $0x7] ss:$9 sm:$0xff] %v319_v35 }
0x1182   :  { %v363_v27 = vld [vmem:[#allocation1] sm:$0xff] }
0x1183   :  { %368 = vst [vmem:[#allocation1 + $0x4] ss:$9 sm:$0xff] %v324_v6  ;;  %4521 = vmatmul.msk.f32.gmra.mxu1 %vm7062_vm4, %v363_v27 }
0x1184   :  { %364 = vst [vmem:[#allocation1] ss:$9 sm:$0xff] %v320_v45 }
0x1185   :  { %365 = vst [vmem:[#allocation1 + $0x1] ss:$9 sm:$0xff] %v321_v46 }
0x1186   :  { %366 = vst [vmem:[#allocation1 + $0x2] ss:$9 sm:$0xff] %v322_v32 }
0x1187   :  { %367 = vst [vmem:[#allocation1 + $0x3] ss:$9 sm:$0xff] %v323_v11 }
0x1188   :  { %369 = vst [vmem:[#allocation1 + $0x5] ss:$9 sm:$0xff] %v4519_v25 }
0x1189   :  { %370 = vst [vmem:[#allocation1 + $0x6] ss:$9 sm:$0xff] %v325_v7 }
0x118a   :  { %371 = vst [vmem:[#allocation1 + $0x7] ss:$9 sm:$0xff] %v326_v14 }
0x1191   :  { %v372_v21 = vld [vmem:[#allocation1] sm:$0xff] }
0x1192   :  { %373 = vst [vmem:[#allocation1] ss:$9 sm:$0xff] %v327_v17  ;;  %4522 = vmatmul.msk.f32.gmra.mxu1 %vm7063_vm5, %v372_v21 }
0x1193   :  { %374 = vst [vmem:[#allocation1 + $0x1] ss:$9 sm:$0xff] %v328_v53 }
0x1194   :  { %375 = vst [vmem:[#allocation1 + $0x2] ss:$9 sm:$0xff] %v329_v38 }
0x1195   :  { %376 = vst [vmem:[#allocation1 + $0x3] ss:$9 sm:$0xff] %v330_v43 }
0x119c   :  { %v377_v34 = vld [vmem:[#allocation1] sm:$0xff] }
0x119d   :  { %4523 = vmatmul.msk.f32.gmra.mxu1 %vm7064_vm10, %v377_v34 }
0x11c6   :  { %v2122_v8 = vpop.permute.xlu2 %2121 }
0x11c7   :  { %4594 = vmatmul.msk.bf16.vlgmr.msrb.gmra.mxu1 %vm7065_vm14, %v2122_v8 }
0x11f1   :  { %v6086_v60 = vpop.f32.mrf.mxu1 }
0x1200   :  { %v6088_v0 = vpop.f32.mrf.mxu1 }
0x120f   :  { %v6090_v58 = vpop.f32.mrf.mxu1 }
0x121a   :  { %v6092_v40 = vpop.f32.mrf.mxu1 }
0x1244   :  { %v2135_v1 = vpop.f32.mrf.mxu1 }
0x1245   :  { %v2140_v63 = vrot.slane %v2135_v1, 1  ;;  %v2141_v42 = vrot.slane %v2135_v1, 2  ;;  %v2142_v52 = vrot.slane %v2135_v1, 3  ;;  %v2143_v51 = vrot.slane %v2135_v1, 4 }
0x1247   :  { %v2148_v26 = vadd.f32 %v2140_v63, %v5491_v28  ;;  %v2149_v35 = vadd.f32 %v2141_v42, %v5493_v29  ;;  %v2150_v19 = vadd.f32 %v2142_v52, %v5495_v30  ;;  %v2151_v6 = vadd.f32 %v2143_v51, %v5497_v31 }
0x1249   :  { %v4595_v45 = vmul.f32 -1.442695, %v2148_v26  ;;  %v4596_v27 = vmul.f32 -1.442695, %v2149_v35  ;;  %v4597_v46 = vmul.f32 -1.442695, %v2150_v19 }
0x124a   :  { %v4598_v32 = vmul.f32 -1.442695, %v2151_v6 }
0x124b   :  { %4909 = vpow2.f32 %v4595_v45 }
0x124c   :  { %4911 = vpow2.f32 %v4596_v27  ;;  %v2137_v25 = vpop.f32.mrf.mxu1 }
0x124d   :  { %4913 = vpow2.f32 %v4597_v46 }
0x124e   :  { %4915 = vpow2.f32 %v4598_v32 }
0x1251   :  { %v4910_v11 = vpop.eup %4909 }
0x1252   :  { %v4912_v7 = vpop.eup %4911  ;;  %v2164_v14 = vadd.f32 1.0, %v4910_v11 }
0x1253   :  { %v4914_v17 = vpop.eup %4913  ;;  %v2165_v28 = vadd.f32 1.0, %v4912_v7 }
0x1254   :  { %v4916_v53 = vpop.eup %4915  ;;  %v2166_v29 = vadd.f32 1.0, %v4914_v17  ;;  %4917 = vrcp.f32 %v2164_v14  ;;  %vm2173_vm2 = vweird.f32 %v2164_v14  ;;  %v2177_v34 = vand.u32 2147483647, %v2164_v14 }
0x1255   :  { %v2167_v30 = vadd.f32 1.0, %v4916_v53  ;;  %4919 = vrcp.f32 %v2165_v28  ;;  %v2192_v31 = vand.u32 2147483647, %v2165_v28  ;;  %vm2188_vm0 = vweird.f32 %v2165_v28 }
0x1256   :  { %4921 = vrcp.f32 %v2166_v29  ;;  %vm2203_vm11 = vweird.f32 %v2166_v29  ;;  %v2209_v1 = vand.u32 2147483648, %v2166_v29  ;;  %v2207_v51 = vand.u32 2147483647, %v2166_v29 }
0x1257   :  { %4923 = vrcp.f32 %v2167_v30  ;;  %vm6098_vm7 = vcmp.eq.f32.partialorder %v2192_v31, 8.507059e+37  ;;  %v2194_v6 = vand.u32 2147483648, %v2165_v28  ;;  %v2179_v45 = vand.u32 2147483648, %v2164_v14 }
0x1258   :  { %vm6102_vm9 = vcmp.eq.f32.partialorder %v2177_v34, 8.507059e+37  ;;  %v2210_v11 = vor.u32 1.1754944e-38, %v2209_v1  ;;  %v2224_v18 = vand.u32 2147483648, %v2167_v30  ;;  %v2222_v48 = vand.u32 2147483647, %v2167_v30 }
0x1259   :  { %v2195_v34 = vor.u32 1.1754944e-38, %v2194_v6  ;;  %vm2218_vm5 = vweird.f32 %v2167_v30  ;;  %vm2208_vm10 = vcmp.eq.f32.partialorder %v2207_v51, 8.507059e+37 }
0x125a   :  { %v4918_v21 = vpop.eup %4917  ;;  %v2225_v6 = vor.u32 1.1754944e-38, %v2224_v18 }
0x125b   :  { %v4920_v38 = vpop.eup %4919  ;;  %v2169_v43 = vmul.f32 %v4918_v21, %v2164_v14  ;;  %vm2174_vm8 = vweird.f32 %v4918_v21 }
0x125c   :  { %v4922_v8 = vpop.eup %4921  ;;  %v2184_v63 = vmul.f32 %v4920_v38, %v2165_v28  ;;  %vm2189_vm12 = vweird.f32 %v4920_v38  ;;  %vm2175_vm15 = vmor %vm2173_vm2, %vm2174_vm8  ;;  %vm2223_vm2 = vcmp.eq.f32.partialorder %v2222_v48, 8.507059e+37 }
0x125d   :  { %v4924_v42 = vpop.eup %4923  ;;  %v2199_v52 = vmul.f32 %v4922_v8, %v2166_v29  ;;  %v2170_v35 = vsub.f32 1.0, %v2169_v43  ;;  %vm2204_vm13 = vweird.f32 %v4922_v8  ;;  %vm2190_vm3 = vmor %vm2188_vm0, %vm2189_vm12  ;;  %vm7073_vm0 = vcmask 1043459  }
0x125e   :  { %v2185_v19 = vsub.f32 1.0, %v2184_v63  ;;  %v2214_v27 = vmul.f32 %v4924_v42, %v2167_v30  ;;  %v2180_v63 = vor.u32 1.1754944e-38, %v2179_v45  ;;  %vm2219_vm1 = vweird.f32 %v4924_v42  ;;  %vm2205_vm4 = vmor %vm2203_vm11, %vm2204_vm13 }
0x125f   :  { %v2200_v46 = vsub.f32 1.0, %v2199_v52  ;;  %v2171_v32 = vmul.f32 %v4918_v21, %v2170_v35  ;;  %vm2220_vm14 = vmor %vm2218_vm5, %vm2219_vm1  ;;  %vm7072_vm11 = vcmask 1042434  }
0x1260   :  { %v2186_v7 = vmul.f32 %v4920_v38, %v2185_v19  ;;  %v2215_v17 = vsub.f32 1.0, %v2214_v27 }
0x1261   :  { %v2201_v53 = vmul.f32 %v4922_v8, %v2200_v46  ;;  %v2172_v31 = vadd.f32 %v4918_v21, %v2171_v32 }
0x1262   :  { %v2187_v43 = vadd.f32 %v4920_v38, %v2186_v7  ;;  %v2216_v50 = vmul.f32 %v4924_v42, %v2215_v17 }
0x1263   :  { %v2202_v52 = vadd.f32 %v4922_v8, %v2201_v53  ;;  %v2176_v35 = vsel %vm2175_vm15, %v4918_v21, %v2172_v31  ;;  %v2241_v31 = vrot.slane %v6031_v36, 7  ;;  %v2240_v36 = vrot.slane %v6029_v62, 7 }
0x1264   :  { %v2191_v1 = vsel %vm2190_vm3, %v4920_v38, %v2187_v43  ;;  %v6111_v19 = vsel %vm6102_vm9, %v2180_v63, %v2176_v35  ;;  %v2217_v27 = vadd.f32 %v4924_v42, %v2216_v50  ;;  %v2242_v43 = vrot.slane %v6045_v20, 7 }
0x1265   :  { %v2206_v14 = vsel %vm2205_vm4, %v4922_v8, %v2202_v52  ;;  %v6115_v45 = vsel %vm6098_vm7, %v2195_v34, %v2191_v1  ;;  %v2228_v28 = vmul.f32 2.0, %v6111_v19  ;;  %v2248_v20 = vmul.f32 %v2240_v36, %v6111_v19 }
0x1266   :  { %v6119_v21 = vsel %vm2208_vm10, %v2210_v11, %v2206_v14  ;;  %v2229_v29 = vmul.f32 2.0, %v6115_v45  ;;  %v2221_v38 = vsel %vm2220_vm14, %v4924_v42, %v2217_v27  ;;  %v2249_v63 = vmul.f32 %v2241_v31, %v6115_v45 }
0x1267   :  { %v2230_v46 = vmul.f32 2.0, %v6119_v21  ;;  %v4599_v50 = vadd.f32 -1.0, %v2228_v28  ;;  %v6123_v8 = vsel %vm2223_vm2, %v2225_v6, %v2221_v38  ;;  %v2250_v34 = vmul.f32 %v2242_v43, %v6119_v21 }
0x1268   :  { %v4600_v30 = vadd.f32 -1.0, %v2229_v29  ;;  %v2231_v26 = vmul.f32 2.0, %v6123_v8  ;;  %v2243_v6 = vrot.slane %v6037_v5, 7  ;;  %v4715_v5 = vld [vmem:[#allocation12 + $0x8] sm:$0xff]  ;;  %vm7074_vm7 = vcmask 261120  }
0x1269   :  { %v4601_v51 = vadd.f32 -1.0, %v2230_v46  ;;  %2256 = vrot.lane.b32.xlu0 %v4599_v50, %s5355_s19  ;;  %2380 = vmatpush.bf16.msra.mxu2 %v4715_v5 }
0x126a   :  { %2258 = vrot.lane.b32.xlu1 %v4600_v30, %s5355_s19  ;;  %v4602_v32 = vadd.f32 -1.0, %v2231_v26  ;;  %v2251_v46 = vmul.f32 %v2243_v6, %v6123_v8  ;;  %2621 = vmatpush.bf16.msrb.mxu3 %v4715_v5 }
0x126b   :  { %2260 = vrot.lane.b32.xlu2 %v4601_v51, %s5355_s19  ;;  %2845 = vmatpush.bf16.msrb.mxu0 %v4715_v5 }
0x126c   :  { %3069 = vmatpush.bf16.msra.mxu1 %v4715_v5 }
0x1271   :  { %2262 = vrot.lane.b32.xlu0 %v4602_v32, %s5355_s19 }
0x12c5   :  { %v2261_v18 = vpop.permute.xlu2 %2260 }
0x12c6   :  { %v2270_v42 = vmul.f32 %v2261_v18, %v6119_v21 }
0x12c8   :  { %2280 = vrot.lane.b32.xlu0 %v2270_v42, %s5368_s6  ;;  %v4714_v42 = vld [vmem:[#allocation12] sm:$0xff] }
0x12c9   :  { %2381 = vmatpush.bf16.msra.mxu2 %v4714_v42  ;;  %2622 = vmatpush.bf16.msrb.mxu3 %v4714_v42 }
0x12ca   :  { %2846 = vmatpush.bf16.msrb.mxu0 %v4714_v42  ;;  %3070 = vmatpush.bf16.msra.mxu1 %v4714_v42 }
0x12cd   :  { %3293 = vmatpush.bf16.msrb.mxu2 %v4715_v5  ;;  %3517 = vmatpush.bf16.msra.mxu3 %v4715_v5 }
0x12ce   :  { %3741 = vmatpush.bf16.msra.mxu0 %v4715_v5 }
0x12d1   :  { %3294 = vmatpush.bf16.msrb.mxu2 %v4714_v42  ;;  %3518 = vmatpush.bf16.msra.mxu3 %v4714_v42 }
0x12d2   :  { %3742 = vmatpush.bf16.msra.mxu0 %v4714_v42 }
0x12db   :  { %v2257_v48 = vpop.permute.xlu0 %2256 }
0x12dc   :  { %v2259_v25 = vpop.permute.xlu1 %2258  ;;  %v2268_v11 = vmul.f32 %v2257_v48, %v6111_v19 }
0x12dd   :  { %v2269_v7 = vmul.f32 %v2259_v25, %v6115_v45 }
0x12de   :  { %2276 = vrot.lane.b32.xlu1 %v2268_v11, %s5368_s6 }
0x12df   :  { %2278 = vrot.lane.b32.xlu2 %v2269_v7, %s5368_s6 }
0x12e3   :  { %v2263_v17 = vpop.permute.xlu0 %2262 }
0x12e4   :  { %v2271_v53 = vmul.f32 %v2263_v17, %v6123_v8 }
0x12e6   :  { %2282 = vrot.lane.b32.xlu1 %v2271_v53, %s5368_s6 }
0x1339   :  { %v2279_v52 = vpop.permute.xlu2 %2278 }
0x133a   :  { %v2289_v35 = vadd.f32 %v2279_v52, %v2249_v63  ;;  %v2281_v1 = vpop.permute.xlu0 %2280 }
0x133b   :  { %v2290_v27 = vadd.f32 %v2281_v1, %v2250_v34 }
0x133c   :  { %4925 = vtanh.f32 %v2289_v35 }
0x133d   :  { %4927 = vtanh.f32 %v2290_v27 }
0x1342   :  { %v4926_v14 = vpop.eup %4925 }
0x1343   :  { %v4928_v28 = vpop.eup %4927  ;;  %2302 = vrot.lane.b32.xlu0 %v4926_v14, %s5355_s19 }
0x1344   :  { %2304 = vrot.lane.b32.xlu1 %v4928_v28, %s5355_s19 }
0x1350   :  { %v2277_v29 = vpop.permute.xlu1 %2276 }
0x1351   :  { %v2288_v38 = vadd.f32 %v2277_v29, %v2248_v20 }
0x1353   :  { %4929 = vtanh.f32 %v2288_v38  ;;  %2486 = vst [vmem:[#allocation1] sm:$0xff] %v2288_v38 }
0x1358   :  { %v2283_v50 = vpop.permute.xlu1 %2282 }
0x1359   :  { %v4930_v30 = vpop.eup %4929  ;;  %v2291_v51 = vadd.f32 %v2283_v50, %v2251_v46  ;;  %v431_v50 = vrot.slane %v6088_v0, 6 }
0x135a   :  { %v6148_v26 = vld [vmem:[#allocation1 + $0x7] ss:$9 sm:$0xff]  ;;  %2300 = vrot.lane.b32.xlu2 %v4930_v30, %s5355_s19  ;;  %v437_v30 = vrot.slane %v6090_v58, 5 }
0x135b   :  { %2489 = vst [vmem:[#allocation1] sm:$0xff] %v2289_v35  ;;  %4931 = vtanh.f32 %v2291_v51 }
0x1361   :  { %v4932_v62 = vpop.eup %4931 }
0x1362   :  { %v6151_v32 = vld [vmem:[#allocation1 + $0x7] ss:$9 sm:$0xff]  ;;  %2306 = vrot.lane.b32.xlu2 %v4932_v62, %s5355_s19 }
0x1363   :  { %2491 = vst [vmem:[#allocation1] sm:$0xff] %v2290_v27 }
0x136a   :  { %v6154_v18 = vld [vmem:[#allocation1 + $0x7] ss:$9 sm:$0xff] }
0x136b   :  { %2493 = vst [vmem:[#allocation1] sm:$0xff] %v2291_v51 }
0x13b4   :  { %v2301_v48 = vpop.permute.xlu2 %2300 }
0x13b5   :  { %v6157_v25 = vmul.f32 %v2301_v48, %v6111_v19  ;;  %v2303_v11 = vpop.permute.xlu0 %2302 }
0x13b6   :  { %v2305_v7 = vpop.permute.xlu1 %2304  ;;  %v6160_v17 = vmul.f32 %v2303_v11, %v6115_v45 }
0x13b7   :  { %7070 = vst [vmem:[#allocation33_spill] sm:$0xff] %v6157_v25  ;;  %v2337_v53 = vpack.c.bf16 %v6157_v25, %v6157_v25  ;;  %v6165_v31 = vmul.f32 %v2305_v7, %v6119_v21 }
0x13b8   :  { %v2338_v43 = vpack.c.bf16 %v6160_v17, %v6160_v17 }
0x13b9   :  { %v2345_v63 = vunpack.c.l.b16 %v2337_v53  ;;  %v2339_v19 = vpack.c.bf16 %v6165_v31, %v6165_v31 }
0x13ba   :  { %v2346_v52 = vunpack.c.l.b16 %v2338_v43 }
0x13bb   :  { %v2347_v34 = vunpack.c.l.b16 %v2339_v19  ;;  %v2349_v1 = vrot.slane %v2345_v63, 7 }
0x13bc   :  { %v2307_v35 = vpop.permute.xlu2 %2306  ;;  %v2350_v27 = vrot.slane %v2346_v52, 6 }
0x13bd   :  { %v6172_v45 = vmul.f32 %v2307_v35, %v6123_v8  ;;  %v2352_v21 = vrot.slane %v2347_v34, 5  ;;  %v425_v8 = vrot.slane %v6086_v60, 7 }
0x13be   :  { %v2351_v36 = vsel %vm702_vm6, %v2350_v27, %v2349_v1 }
0x13bf   :  { %7071 = vst [vmem:[#allocation34_spill] sm:$0xff] %v6172_v45  ;;  %v2340_v14 = vpack.c.bf16 %v6172_v45, %v6172_v45  ;;  %v2353_v29 = vsel %vm7072_vm11, %v2352_v21, %v2351_v36 }
0x13c1   :  { %v2348_v28 = vunpack.c.l.b16 %v2340_v14 }
0x13c3   :  { %v2354_v20 = vrot.slane %v2348_v28, 4 }
0x13c5   :  { %v2355_v38 = vsel %vm7073_vm0, %v2354_v20, %v2353_v29 }
0x13c6   :  { %v2356_v6 = vpack.c.b16 %v2355_v38, %v2355_v38 }
0x13c8   :  { %2357 = vrot.lane.b32.xlu0 %v2356_v6, %s5368_s6 }
0x143a   :  { %v2358_v46 = vpop.permute.xlu0 %2357 }
0x143b   :  { %4611 = vmatmul.msk.bf16.vlgmr.msra.gmra.mxu2 %vm7074_vm7, %v2358_v46 }
0x14be   :  { %v2383_v51 = vpop.f32.mrf.mxu2 }
0x14bf   :  { %v2388_v62 = vrot.slane %v2383_v51, 1  ;;  %v2389_v5 = vrot.slane %v2383_v51, 2  ;;  %v2390_v42 = vrot.slane %v2383_v51, 3  ;;  %v2394_v48 = vadd.f32 %v2383_v51, %v6086_v60 }
0x14c1   :  { %v2395_v11 = vadd.f32 %v2388_v62, %v425_v8  ;;  %v2396_v7 = vadd.f32 %v2389_v5, %v431_v50  ;;  %v2397_v53 = vadd.f32 %v2390_v42, %v437_v30  ;;  %v4612_v43 = vmul.f32 -1.442695, %v2394_v48 }
0x14c3   :  { %4933 = vpow2.f32 %v4612_v43  ;;  %v4613_v63 = vmul.f32 -1.442695, %v2395_v11  ;;  %v4614_v19 = vmul.f32 -1.442695, %v2396_v7  ;;  %v4615_v52 = vmul.f32 -1.442695, %v2397_v53 }
0x14c5   :  { %4935 = vpow2.f32 %v4613_v63 }
0x14c6   :  { %4937 = vpow2.f32 %v4614_v19  ;;  %v2385_v34 = vpop.f32.mrf.mxu2 }
0x14c7   :  { %4939 = vpow2.f32 %v4615_v52 }
0x14c9   :  { %v4934_v35 = vpop.eup %4933 }
0x14ca   :  { %v2410_v1 = vadd.f32 1.0, %v4934_v35 }
0x14cb   :  { %v4936_v27 = vpop.eup %4935 }
0x14cc   :  { %v4938_v14 = vpop.eup %4937  ;;  %v2411_v21 = vadd.f32 1.0, %v4936_v27  ;;  %4941 = vrcp.f32 %v2410_v1  ;;  %v2423_v29 = vand.u32 2147483647, %v2410_v1  ;;  %v2425_v38 = vand.u32 2147483648, %v2410_v1 }
0x14cd   :  { %v4940_v28 = vpop.eup %4939  ;;  %v2412_v36 = vadd.f32 1.0, %v4938_v14  ;;  %vm2419_vm8 = vweird.f32 %v2410_v1 }
0x14ce   :  { %v6185_v20 = vadd.f32 1.0, %v4940_v28  ;;  %4943 = vrcp.f32 %v2411_v21  ;;  %vm6188_vm9 = vcmp.eq.f32.partialorder %v2423_v29, 8.507059e+37  ;;  %v2426_v62 = vor.u32 1.1754944e-38, %v2425_v38 }
0x14cf   :  { %4945 = vrcp.f32 %v2412_v36  ;;  %vm2434_vm12 = vweird.f32 %v2411_v21  ;;  %vm2449_vm13 = vweird.f32 %v2412_v36  ;;  %v2453_v11 = vand.u32 2147483647, %v2412_v36 }
0x14d0   :  { %4947 = vrcp.f32 %v6185_v20  ;;  %v2455_v7 = vand.u32 2147483648, %v2412_v36  ;;  %v2438_v52 = vand.u32 2147483647, %v2411_v21  ;;  %v2440_v34 = vand.u32 2147483648, %v2411_v21 }
0x14d1   :  { %vm2464_vm1 = vweird.f32 %v6185_v20  ;;  %v2468_v29 = vand.u32 2147483647, %v6185_v20  ;;  %v2470_v38 = vand.u32 2147483648, %v6185_v20  ;;  %vm2454_vm0 = vcmp.eq.f32.partialorder %v2453_v11, 8.507059e+37 }
0x14d2   :  { %v4942_v6 = vpop.eup %4941  ;;  %vm2439_vm11 = vcmp.eq.f32.partialorder %v2438_v52, 8.507059e+37 }
0x14d3   :  { %v2415_v46 = vmul.f32 %v4942_v6, %v2410_v1  ;;  %vm2420_vm15 = vweird.f32 %v4942_v6  ;;  %v2441_v1 = vor.u32 1.1754944e-38, %v2440_v34 }
0x14d4   :  { %v4944_v8 = vpop.eup %4943  ;;  %vm2421_vm4 = vmor %vm2419_vm8, %vm2420_vm15  ;;  %vm2469_vm8 = vcmp.eq.f32.partialorder %v2468_v29, 8.507059e+37 }
0x14d5   :  { %v4946_v30 = vpop.eup %4945  ;;  %v2416_v51 = vsub.f32 1.0, %v2415_v46  ;;  %v2430_v5 = vmul.f32 %v4944_v8, %v2411_v21  ;;  %vm2435_vm3 = vweird.f32 %v4944_v8 }
0x14d6   :  { %v4948_v42 = vpop.eup %4947  ;;  %v2445_v48 = vmul.f32 %v4946_v30, %v2412_v36  ;;  %vm2450_vm5 = vweird.f32 %v4946_v30  ;;  %vm2436_vm14 = vmor %vm2434_vm12, %vm2435_vm3  ;;  %vm7081_vm12 = vcmask 1043459  }
0x14d7   :  { %v2417_v53 = vmul.f32 %v4942_v6, %v2416_v51  ;;  %v2431_v43 = vsub.f32 1.0, %v2430_v5  ;;  %v2460_v63 = vmul.f32 %v4948_v42, %v6185_v20  ;;  %vm2465_vm10 = vweird.f32 %v4948_v42  ;;  %vm2451_vm2 = vmor %vm2449_vm13, %vm2450_vm5 }
0x14d8   :  { %v2446_v19 = vsub.f32 1.0, %v2445_v48  ;;  %vm2466_vm7 = vmor %vm2464_vm1, %vm2465_vm10  ;;  %vm7082_vm13 = vcmask 261120  }
0x14d9   :  { %v2418_v35 = vadd.f32 %v4942_v6, %v2417_v53  ;;  %v2432_v27 = vmul.f32 %v4944_v8, %v2431_v43  ;;  %v2461_v14 = vsub.f32 1.0, %v2460_v63  ;;  %v2456_v43 = vor.u32 1.1754944e-38, %v2455_v7 }
0x14da   :  { %v2447_v28 = vmul.f32 %v4946_v30, %v2446_v19 }
0x14db   :  { %v2422_v46 = vsel %vm2421_vm4, %v4942_v6, %v2418_v35  ;;  %v2433_v51 = vadd.f32 %v4944_v8, %v2432_v27  ;;  %v2462_v5 = vmul.f32 %v4948_v42, %v2461_v14  ;;  %v2471_v14 = vor.u32 1.1754944e-38, %v2470_v38 }
0x14dc   :  { %v6199_v48 = vsel %vm6188_vm9, %v2426_v62, %v2422_v46  ;;  %v2448_v53 = vadd.f32 %v4946_v30, %v2447_v28  ;;  %vm7080_vm9 = vcmask 1042434  }
0x14dd   :  { %v2474_v63 = vmul.f32 2.0, %v6199_v48  ;;  %v2437_v19 = vsel %vm2436_vm14, %v4944_v8, %v2433_v51  ;;  %v2463_v45 = vadd.f32 %v4948_v42, %v2462_v5 }
0x14de   :  { %v2452_v6 = vsel %vm2451_vm2, %v4946_v30, %v2448_v53  ;;  %v2442_v35 = vsel %vm2439_vm11, %v2441_v1, %v2437_v19  ;;  %v2494_v19 = vld [vmem:[#allocation1 + $0x7] ss:$9 sm:$0xff] }
0x14df   :  { %v4616_v50 = vadd.f32 -1.0, %v2474_v63  ;;  %v2457_v62 = vsel %vm2454_vm0, %v2456_v43, %v2452_v6  ;;  %v2475_v27 = vmul.f32 2.0, %v2442_v35  ;;  %v2467_v7 = vsel %vm2466_vm7, %v4948_v42, %v2463_v45 }
0x14e0   :  { %v2476_v21 = vmul.f32 2.0, %v2457_v62  ;;  %v2472_v8 = vsel %vm2469_vm8, %v2471_v14, %v2467_v7  ;;  %v2500_v51 = vmul.f32 %v6151_v32, %v2442_v35  ;;  %v2501_v5 = vmul.f32 %v6154_v18, %v2457_v62 }
0x14e1   :  { %2507 = vrot.lane.b32.xlu0 %v4616_v50, %s5355_s19  ;;  %v4617_v34 = vadd.f32 -1.0, %v2475_v27  ;;  %v2477_v30 = vmul.f32 2.0, %v2472_v8  ;;  %v2502_v6 = vmul.f32 %v2494_v19, %v2472_v8  ;;  %v2499_v18 = vmul.f32 %v6148_v26, %v6199_v48 }
0x14e2   :  { %v4618_v36 = vadd.f32 -1.0, %v2476_v21 }
0x14e3   :  { %2509 = vrot.lane.b32.xlu1 %v4617_v34, %s5355_s19  ;;  %v4619_v11 = vadd.f32 -1.0, %v2477_v30 }
0x14e4   :  { %2511 = vrot.lane.b32.xlu2 %v4618_v36, %s5355_s19 }
0x14eb   :  { %2513 = vrot.lane.b32.xlu1 %v4619_v11, %s5355_s19 }
0x153e   :  { %v2512_v20 = vpop.permute.xlu2 %2511 }
0x153f   :  { %v2521_v52 = vmul.f32 %v2512_v20, %v2457_v62 }
0x1541   :  { %2531 = vrot.lane.b32.xlu0 %v2521_v52, %s5368_s6 }
0x1553   :  { %v2508_v45 = vpop.permute.xlu0 %2507 }
0x1554   :  { %v2519_v42 = vmul.f32 %v2508_v45, %v6199_v48 }
0x1555   :  { %v2510_v28 = vpop.permute.xlu1 %2509 }
0x1556   :  { %v2520_v38 = vmul.f32 %v2510_v28, %v2442_v35  ;;  %2527 = vrot.lane.b32.xlu1 %v2519_v42, %s5368_s6 }
0x1558   :  { %2529 = vrot.lane.b32.xlu2 %v2520_v38, %s5368_s6 }
0x155d   :  { %v2514_v29 = vpop.permute.xlu1 %2513 }
0x155e   :  { %v2522_v46 = vmul.f32 %v2514_v29, %v2472_v8 }
0x1560   :  { %2533 = vrot.lane.b32.xlu2 %v2522_v46, %s5368_s6 }
0x15b2   :  { %v2530_v53 = vpop.permute.xlu2 %2529 }
0x15b3   :  { %v2532_v43 = vpop.permute.xlu0 %2531  ;;  %v6217_v1 = vadd.f32 %v2530_v53, %v2500_v51 }
0x15b4   :  { %v6219_v63 = vadd.f32 %v2532_v43, %v2501_v5 }
0x15b5   :  { %4949 = vtanh.f32 %v6217_v1 }
0x15b6   :  { %4951 = vtanh.f32 %v6219_v63 }
0x15ba   :  { %v2534_v50 = vpop.permute.xlu2 %2533 }
0x15bb   :  { %v4950_v27 = vpop.eup %4949  ;;  %v6223_v7 = vadd.f32 %v2534_v50, %v2502_v6 }
0x15bc   :  { %v4952_v21 = vpop.eup %4951  ;;  %2553 = vrot.lane.b32.xlu0 %v4950_v27, %s5355_s19 }
0x15bd   :  { %4953 = vtanh.f32 %v6223_v7  ;;  %2555 = vrot.lane.b32.xlu1 %v4952_v21, %s5355_s19 }
0x15c3   :  { %v4954_v32 = vpop.eup %4953 }
0x15c4   :  { %2557 = vrot.lane.b32.xlu0 %v4954_v32, %s5355_s19 }
0x15c8   :  { %v2528_v14 = vpop.permute.xlu1 %2527 }
0x15c9   :  { %v6231_v34 = vadd.f32 %v2528_v14, %v2499_v18  ;;  %v432_v18 = vrot.slane %v6088_v0, 7  ;;  %v438_v14 = vrot.slane %v6090_v58, 6 }
0x15cb   :  { %4955 = vtanh.f32 %v6231_v34 }
0x15d1   :  { %v4956_v36 = vpop.eup %4955 }
0x15d2   :  { %2551 = vrot.lane.b32.xlu2 %v4956_v36, %s5355_s19 }
0x162c   :  { %v2552_v30 = vpop.permute.xlu2 %2551 }
0x162d   :  { %v6240_v42 = vmul.f32 %v2552_v30, %v6199_v48 }
0x162e   :  { %v2554_v11 = vpop.permute.xlu0 %2553 }
0x162f   :  { %v6235_v20 = vmul.f32 %v2554_v11, %v2442_v35  ;;  %v2556_v52 = vpop.permute.xlu1 %2555  ;;  %7078 = vst [vmem:[#allocation36_spill] sm:$0xff] %v6240_v42  ;;  %v2591_v29 = vpack.c.bf16 %v6240_v42, %v6240_v42 }
0x1630   :  { %v6237_v45 = vmul.f32 %v2556_v52, %v2457_v62 }
0x1631   :  { %v2592_v26 = vpack.c.bf16 %v6235_v20, %v6235_v20  ;;  %v2599_v62 = vunpack.c.l.b16 %v2591_v29 }
0x1632   :  { %7077 = vst [vmem:[#allocation35_spill] sm:$0xff] %v6237_v45  ;;  %v2593_v28 = vpack.c.bf16 %v6237_v45, %v6237_v45 }
0x1633   :  { %v2600_v38 = vunpack.c.l.b16 %v2592_v26 }
0x1634   :  { %v2601_v46 = vunpack.c.l.b16 %v2593_v28 }
0x1635   :  { %v2603_v35 = vrot.slane %v2600_v38, 7 }
0x1636   :  { %v2558_v51 = vpop.permute.xlu0 %2557  ;;  %v2605_v53 = vrot.slane %v2601_v46, 6 }
0x1637   :  { %v6248_v5 = vmul.f32 %v2558_v51, %v2472_v8  ;;  %v2604_v19 = vsel %vm702_vm6, %v2603_v35, %v2599_v62  ;;  %v419_v8 = vrot.slane %v6086_v60, 1 }
0x1638   :  { %v2606_v50 = vsel %vm7080_vm9, %v2605_v53, %v2604_v19 }
0x1639   :  { %7079 = vst [vmem:[#allocation37_spill] sm:$0xff] %v6248_v5  ;;  %v2594_v48 = vpack.c.bf16 %v6248_v5, %v6248_v5 }
0x163b   :  { %v2602_v43 = vunpack.c.l.b16 %v2594_v48 }
0x163d   :  { %v2607_v6 = vrot.slane %v2602_v43, 5 }
0x163f   :  { %v2608_v27 = vsel %vm7081_vm12, %v2607_v6, %v2606_v50 }
0x1640   :  { %v2609_v21 = vpack.c.b16 %v2608_v27, %v2608_v27 }
0x1642   :  { %2610 = vrot.lane.b32.xlu1 %v2609_v21, %s5368_s6 }
0x16b4   :  { %v2611_v32 = vpop.permute.xlu1 %2610 }
0x16b5   :  { %4620 = vmatmul.msk.bf16.vlgmr.msrb.gmra.mxu3 %vm7082_vm13, %v2611_v32 }
0x1738   :  { %v2624_v36 = vpop.f32.mrf.mxu3 }
0x1739   :  { %v2629_v30 = vrot.slane %v2624_v36, 1  ;;  %v2630_v11 = vrot.slane %v2624_v36, 2  ;;  %v2631_v52 = vrot.slane %v2624_v36, 3  ;;  %v2635_v26 = vadd.f32 %v2624_v36, %v419_v8 }
0x173b   :  { %v2636_v28 = vadd.f32 %v2629_v30, %v6088_v0  ;;  %v2637_v38 = vadd.f32 %v2630_v11, %v432_v18  ;;  %v2638_v29 = vadd.f32 %v2631_v52, %v438_v14  ;;  %v4621_v46 = vmul.f32 -1.442695, %v2635_v26 }
0x173d   :  { %4957 = vpow2.f32 %v4621_v46  ;;  %v4622_v51 = vmul.f32 -1.442695, %v2636_v28  ;;  %v4623_v35 = vmul.f32 -1.442695, %v2637_v38  ;;  %v4624_v62 = vmul.f32 -1.442695, %v2638_v29 }
0x173f   :  { %4959 = vpow2.f32 %v4622_v51 }
0x1740   :  { %4961 = vpow2.f32 %v4623_v35  ;;  %v2626_v48 = vpop.f32.mrf.mxu3 }
0x1741   :  { %4963 = vpow2.f32 %v4624_v62 }
0x1743   :  { %v4958_v53 = vpop.eup %4957 }
0x1744   :  { %v2651_v43 = vadd.f32 1.0, %v4958_v53 }
0x1745   :  { %v4960_v19 = vpop.eup %4959 }
0x1746   :  { %v4962_v6 = vpop.eup %4961  ;;  %v2652_v50 = vadd.f32 1.0, %v4960_v19  ;;  %4965 = vrcp.f32 %v2651_v43  ;;  %v2664_v8 = vand.u32 2147483647, %v2651_v43  ;;  %v2666_v18 = vand.u32 2147483648, %v2651_v43 }
0x1747   :  { %v4964_v27 = vpop.eup %4963  ;;  %v2653_v21 = vadd.f32 1.0, %v4962_v6  ;;  %vm2660_vm15 = vweird.f32 %v2651_v43 }
0x1748   :  { %v6261_v32 = vadd.f32 1.0, %v4964_v27  ;;  %4967 = vrcp.f32 %v2652_v50  ;;  %vm6264_vm1 = vcmp.eq.f32.partialorder %v2664_v8, 8.507059e+37  ;;  %v2667_v28 = vor.u32 1.1754944e-38, %v2666_v18 }
0x1749   :  { %4969 = vrcp.f32 %v2653_v21  ;;  %vm2675_vm3 = vweird.f32 %v2652_v50  ;;  %vm2690_vm4 = vweird.f32 %v2653_v21  ;;  %v2694_v51 = vand.u32 2147483647, %v2653_v21 }
0x174a   :  { %4971 = vrcp.f32 %v6261_v32  ;;  %v2696_v35 = vand.u32 2147483648, %v2653_v21  ;;  %v2679_v6 = vand.u32 2147483647, %v2652_v50  ;;  %v2681_v27 = vand.u32 2147483648, %v2652_v50 }
0x174b   :  { %vm2705_vm10 = vweird.f32 %v6261_v32  ;;  %v2709_v22 = vand.u32 2147483647, %v6261_v32  ;;  %vm2695_vm12 = vcmp.eq.f32.partialorder %v2694_v51, 8.507059e+37 }
0x174c   :  { %v4966_v14 = vpop.eup %4965  ;;  %vm2680_vm9 = vcmp.eq.f32.partialorder %v2679_v6, 8.507059e+37 }
0x174d   :  { %v2656_v36 = vmul.f32 %v4966_v14, %v2651_v43  ;;  %vm2661_vm5 = vweird.f32 %v4966_v14  ;;  %v2682_v43 = vor.u32 1.1754944e-38, %v2681_v27 }
0x174e   :  { %v4968_v30 = vpop.eup %4967  ;;  %vm2662_vm2 = vmor %vm2660_vm15, %vm2661_vm5  ;;  %vm2710_vm15 = vcmp.eq.f32.partialorder %v2709_v22, 8.507059e+37 }
0x174f   :  { %v4970_v52 = vpop.eup %4969  ;;  %v2657_v26 = vsub.f32 1.0, %v2656_v36  ;;  %v2671_v38 = vmul.f32 %v4968_v30, %v2652_v50  ;;  %vm2676_vm14 = vweird.f32 %v4968_v30 }
0x1750   :  { %v4972_v29 = vpop.eup %4971  ;;  %v2686_v46 = vmul.f32 %v4970_v52, %v2653_v21  ;;  %vm2691_vm11 = vweird.f32 %v4970_v52  ;;  %vm2677_vm7 = vmor %vm2675_vm3, %vm2676_vm14  ;;  %vm7088_vm3 = vcmask 1043459  }
0x1751   :  { %v2658_v62 = vmul.f32 %v4966_v14, %v2657_v26  ;;  %v2672_v48 = vsub.f32 1.0, %v2671_v38  ;;  %v2701_v53 = vmul.f32 %v4972_v29, %v6261_v32  ;;  %v2711_v26 = vand.u32 2147483648, %v6261_v32  ;;  %vm2692_vm8 = vmor %vm2690_vm4, %vm2691_vm11 }
0x1752   :  { %v2687_v19 = vsub.f32 1.0, %v2686_v46  ;;  %vm2706_vm0 = vweird.f32 %v4972_v29  ;;  %vm7089_vm4 = vcmask 261120  }
0x1753   :  { %v2659_v8 = vadd.f32 %v4966_v14, %v2658_v62  ;;  %v2673_v36 = vmul.f32 %v4968_v30, %v2672_v48  ;;  %v2702_v18 = vsub.f32 1.0, %v2701_v53  ;;  %v2697_v48 = vor.u32 1.1754944e-38, %v2696_v35  ;;  %vm2707_vm13 = vmor %vm2705_vm10, %vm2706_vm0 }
0x1754   :  { %v2688_v5 = vmul.f32 %v4970_v52, %v2687_v19 }
0x1755   :  { %v2663_v38 = vsel %vm2662_vm2, %v4966_v14, %v2659_v8  ;;  %v2674_v57 = vadd.f32 %v4968_v30, %v2673_v36  ;;  %v2703_v13 = vmul.f32 %v4972_v29, %v2702_v18  ;;  %v2712_v36 = vor.u32 1.1754944e-38, %v2711_v26 }
0x1756   :  { %v6275_v46 = vsel %vm6264_vm1, %v2667_v28, %v2663_v38  ;;  %v2689_v62 = vadd.f32 %v4970_v52, %v2688_v5  ;;  %vm7087_vm1 = vcmask 1042434  }
0x1757   :  { %v2715_v53 = vmul.f32 2.0, %v6275_v46  ;;  %v2678_v19 = vsel %vm2677_vm7, %v4968_v30, %v2674_v57  ;;  %v2704_v3 = vadd.f32 %v4972_v29, %v2703_v13  ;;  %v2723_v26 = vmul.f32 %v6275_v46, %v6231_v34 }
0x1758   :  { %v2693_v14 = vsel %vm2692_vm8, %v4970_v52, %v2689_v62  ;;  %v2683_v8 = vsel %vm2680_vm9, %v2682_v43, %v2678_v19 }
0x1759   :  { %v4625_v11 = vadd.f32 -1.0, %v2715_v53  ;;  %v2698_v28 = vsel %vm2695_vm12, %v2697_v48, %v2693_v14  ;;  %v2716_v5 = vmul.f32 2.0, %v2683_v8  ;;  %v2708_v35 = vsel %vm2707_vm13, %v4972_v29, %v2704_v3 }
0x175a   :  { %v2717_v50 = vmul.f32 2.0, %v2698_v28  ;;  %v2713_v57 = vsel %vm2710_vm15, %v2712_v36, %v2708_v35  ;;  %v2724_v48 = vmul.f32 %v2683_v8, %v6217_v1  ;;  %v2725_v35 = vmul.f32 %v2698_v28, %v6219_v63 }
0x175b   :  { %2731 = vrot.lane.b32.xlu1 %v4625_v11, %s5355_s19  ;;  %v4626_v27 = vadd.f32 -1.0, %v2716_v5  ;;  %v2718_v13 = vmul.f32 2.0, %v2713_v57  ;;  %v2726_v14 = vmul.f32 %v2713_v57, %v6223_v7 }
0x175c   :  { %v4627_v21 = vadd.f32 -1.0, %v2717_v50 }
0x175d   :  { %2733 = vrot.lane.b32.xlu2 %v4626_v27, %s5355_s19  ;;  %v4628_v30 = vadd.f32 -1.0, %v2718_v13 }
0x175e   :  { %2735 = vrot.lane.b32.xlu0 %v4627_v21, %s5355_s19 }
0x1765   :  { %2737 = vrot.lane.b32.xlu2 %v4628_v30, %s5355_s19 }
0x17b7   :  { %v2734_v32 = vpop.permute.xlu2 %2733 }
0x17b8   :  { %v2744_v52 = vmul.f32 %v2734_v32, %v2683_v8 }
0x17ba   :  { %2753 = vrot.lane.b32.xlu0 %v2744_v52, %s5368_s6 }
0x17bf   :  { %v2738_v3 = vpop.permute.xlu2 %2737 }
0x17c0   :  { %v2746_v29 = vmul.f32 %v2738_v3, %v2713_v57 }
0x17c2   :  { %2757 = vrot.lane.b32.xlu0 %v2746_v29, %s5368_s6 }
0x17cd   :  { %v2732_v51 = vpop.permute.xlu1 %2731 }
0x17ce   :  { %v2743_v22 = vmul.f32 %v2732_v51, %v6275_v46 }
0x17d0   :  { %v2736_v6 = vpop.permute.xlu0 %2735  ;;  %2751 = vrot.lane.b32.xlu2 %v2743_v22, %s5368_s6 }
0x17d1   :  { %v2745_v18 = vmul.f32 %v2736_v6, %v2698_v28 }
0x17d3   :  { %2755 = vrot.lane.b32.xlu1 %v2745_v18, %s5368_s6 }
0x182a   :  { %v2752_v38 = vpop.permute.xlu2 %2751 }
0x182b   :  { %v6293_v62 = vadd.f32 %v2752_v38, %v2723_v26 }
0x182c   :  { %v2754_v43 = vpop.permute.xlu0 %2753 }
0x182d   :  { %4973 = vtanh.f32 %v6293_v62  ;;  %v6297_v53 = vadd.f32 %v2754_v43, %v2724_v48 }
0x182f   :  { %4975 = vtanh.f32 %v6297_v53 }
0x1833   :  { %v4974_v19 = vpop.eup %4973 }
0x1834   :  { %v2758_v11 = vpop.permute.xlu0 %2757  ;;  %2775 = vrot.lane.b32.xlu0 %v4974_v19, %s5355_s19 }
0x1835   :  { %v4976_v5 = vpop.eup %4975  ;;  %v6302_v34 = vadd.f32 %v2758_v11, %v2726_v14 }
0x1836   :  { %2777 = vrot.lane.b32.xlu1 %v4976_v5, %s5355_s19 }
0x1837   :  { %4977 = vtanh.f32 %v6302_v34 }
0x183d   :  { %v4978_v1 = vpop.eup %4977 }
0x183e   :  { %2781 = vrot.lane.b32.xlu1 %v4978_v1, %s5355_s19  ;;  %v426_v1 = vrot.slane %v6088_v0, 1 }
0x1845   :  { %v2756_v50 = vpop.permute.xlu1 %2755 }
0x1846   :  { %v6308_v36 = vadd.f32 %v2756_v50, %v2725_v35  ;;  %v439_v35 = vrot.slane %v6090_v58, 7 }
0x1848   :  { %4979 = vtanh.f32 %v6308_v36 }
0x184e   :  { %v4980_v7 = vpop.eup %4979 }
0x184f   :  { %2779 = vrot.lane.b32.xlu2 %v4980_v7, %s5355_s19 }
0x18a6   :  { %v2776_v27 = vpop.permute.xlu0 %2775 }
0x18a7   :  { %v6317_v52 = vmul.f32 %v2776_v27, %v6275_v46 }
0x18a8   :  { %v2778_v21 = vpop.permute.xlu1 %2777 }
0x18a9   :  { %v6312_v13 = vmul.f32 %v2778_v21, %v2683_v8  ;;  %v2780_v30 = vpop.permute.xlu2 %2779  ;;  %7085 = vst [vmem:[#allocation38_spill] sm:$0xff] %v6317_v52  ;;  %v2815_v51 = vpack.c.bf16 %v6317_v52, %v6317_v52 }
0x18aa   :  { %v6314_v32 = vmul.f32 %v2780_v30, %v2698_v28 }
0x18ab   :  { %v2816_v63 = vpack.c.bf16 %v6312_v13, %v6312_v13  ;;  %v2823_v28 = vunpack.c.l.b16 %v2815_v51 }
0x18ac   :  { %v2817_v3 = vpack.c.bf16 %v6314_v32, %v6314_v32 }
0x18ad   :  { %v2824_v29 = vunpack.c.l.b16 %v2816_v63 }
0x18ae   :  { %v2825_v22 = vunpack.c.l.b16 %v2817_v3 }
0x18af   :  { %v2827_v8 = vrot.slane %v2824_v29, 7 }
0x18b0   :  { %v2782_v6 = vpop.permute.xlu1 %2781  ;;  %v2829_v26 = vrot.slane %v2825_v22, 6 }
0x18b1   :  { %v6325_v18 = vmul.f32 %v2782_v6, %v2713_v57  ;;  %v2828_v38 = vsel %vm702_vm6, %v2827_v8, %v2823_v28  ;;  %v420_v57 = vrot.slane %v6086_v60, 2 }
0x18b2   :  { %v2830_v19 = vsel %vm7087_vm1, %v2829_v26, %v2828_v38 }
0x18b3   :  { %7086 = vst [vmem:[#allocation39_spill] sm:$0xff] %v6325_v18  ;;  %v2818_v46 = vpack.c.bf16 %v6325_v18, %v6325_v18 }
0x18b5   :  { %v2826_v48 = vunpack.c.l.b16 %v2818_v46 }
0x18b7   :  { %v2831_v43 = vrot.slane %v2826_v48, 5 }
0x18b9   :  { %v2832_v14 = vsel %vm7088_vm3, %v2831_v43, %v2830_v19 }
0x18ba   :  { %v2833_v11 = vpack.c.b16 %v2832_v14, %v2832_v14 }
0x18bc   :  { %2834 = vrot.lane.b32.xlu2 %v2833_v11, %s5368_s6 }
0x1916   :  { %v2835_v5 = vpop.permute.xlu2 %2834 }
0x1917   :  { %4629 = vmatmul.msk.bf16.vlgmr.msrb.gmra.mxu0 %vm7089_vm4, %v2835_v5 }
0x1994   :  { %v2848_v50 = vpop.f32.mrf.mxu0 }
0x1995   :  { %v2853_v7 = vrot.slane %v2848_v50, 1  ;;  %v2854_v27 = vrot.slane %v2848_v50, 2  ;;  %v2855_v21 = vrot.slane %v2848_v50, 3  ;;  %v2859_v30 = vadd.f32 %v2848_v50, %v420_v57 }
0x1997   :  { %v2860_v63 = vadd.f32 %v2853_v7, %v426_v1  ;;  %v2861_v3 = vadd.f32 %v2854_v27, %v6090_v58  ;;  %v2862_v29 = vadd.f32 %v2855_v21, %v439_v35  ;;  %v4630_v51 = vmul.f32 -1.442695, %v2859_v30 }
0x1999   :  { %4981 = vpow2.f32 %v4630_v51  ;;  %v4631_v22 = vmul.f32 -1.442695, %v2860_v63  ;;  %v4632_v6 = vmul.f32 -1.442695, %v2861_v3  ;;  %v4633_v8 = vmul.f32 -1.442695, %v2862_v29 }
0x199b   :  { %4983 = vpow2.f32 %v4631_v22 }
0x199c   :  { %4985 = vpow2.f32 %v4632_v6  ;;  %v2850_v28 = vpop.f32.mrf.mxu0 }
0x199d   :  { %4987 = vpow2.f32 %v4633_v8 }
0x199f   :  { %v4982_v46 = vpop.eup %4981 }
0x19a0   :  { %v2875_v26 = vadd.f32 1.0, %v4982_v46 }
0x19a1   :  { %v4984_v38 = vpop.eup %4983 }
0x19a2   :  { %v4986_v48 = vpop.eup %4985  ;;  %v2876_v43 = vadd.f32 1.0, %v4984_v38  ;;  %4989 = vrcp.f32 %v2875_v26  ;;  %v2888_v5 = vand.u32 2147483647, %v2875_v26  ;;  %v2890_v57 = vand.u32 2147483648, %v2875_v26 }
0x19a3   :  { %v4988_v19 = vpop.eup %4987  ;;  %v2877_v14 = vadd.f32 1.0, %v4986_v48  ;;  %vm2884_vm5 = vweird.f32 %v2875_v26 }
0x19a4   :  { %v6338_v11 = vadd.f32 1.0, %v4988_v19  ;;  %4991 = vrcp.f32 %v2876_v43  ;;  %vm6341_vm10 = vcmp.eq.f32.partialorder %v2888_v5, 8.507059e+37  ;;  %v2891_v30 = vor.u32 1.1754944e-38, %v2890_v57 }
0x19a5   :  { %4993 = vrcp.f32 %v2877_v14  ;;  %vm2899_vm14 = vweird.f32 %v2876_v43  ;;  %vm2914_vm2 = vweird.f32 %v2877_v14  ;;  %v2918_v51 = vand.u32 2147483647, %v2877_v14 }
0x19a6   :  { %4995 = vrcp.f32 %v6338_v11  ;;  %v2920_v22 = vand.u32 2147483648, %v2877_v14  ;;  %v2903_v38 = vand.u32 2147483647, %v2876_v43  ;;  %v2905_v48 = vand.u32 2147483648, %v2876_v43 }
0x19a7   :  { %vm2929_vm0 = vweird.f32 %v6338_v11  ;;  %v2933_v18 = vand.u32 2147483647, %v6338_v11  ;;  %vm2919_vm3 = vcmp.eq.f32.partialorder %v2918_v51, 8.507059e+37 }
0x19a8   :  { %v4990_v1 = vpop.eup %4989  ;;  %vm2904_vm1 = vcmp.eq.f32.partialorder %v2903_v38, 8.507059e+37 }
0x19a9   :  { %v2880_v35 = vmul.f32 %v4990_v1, %v2875_v26  ;;  %vm2885_vm11 = vweird.f32 %v4990_v1  ;;  %v2906_v26 = vor.u32 1.1754944e-38, %v2905_v48 }
0x19aa   :  { %v4992_v50 = vpop.eup %4991  ;;  %vm2886_vm8 = vmor %vm2884_vm5, %vm2885_vm11  ;;  %vm2934_vm5 = vcmp.eq.f32.partialorder %v2933_v18, 8.507059e+37 }
0x19ab   :  { %v4994_v27 = vpop.eup %4993  ;;  %v2881_v21 = vsub.f32 1.0, %v2880_v35  ;;  %v2895_v63 = vmul.f32 %v4992_v50, %v2876_v43  ;;  %vm2900_vm7 = vweird.f32 %v4992_v50 }
0x19ac   :  { %v4996_v3 = vpop.eup %4995  ;;  %v2910_v29 = vmul.f32 %v4994_v27, %v2877_v14  ;;  %vm2915_vm9 = vweird.f32 %v4994_v27  ;;  %vm2901_vm13 = vmor %vm2899_vm14, %vm2900_vm7  ;;  %vm7096_vm14 = vcmask 1043459  }
0x19ad   :  { %v2882_v6 = vmul.f32 %v4990_v1, %v2881_v21  ;;  %v2896_v8 = vsub.f32 1.0, %v2895_v63  ;;  %v2925_v28 = vmul.f32 %v4996_v3, %v6338_v11  ;;  %v2935_v21 = vand.u32 2147483648, %v6338_v11  ;;  %vm2916_vm15 = vmor %vm2914_vm2, %vm2915_vm9 }
0x19ae   :  { %v2911_v46 = vsub.f32 1.0, %v2910_v29  ;;  %vm2930_vm12 = vweird.f32 %v4996_v3  ;;  %vm7097_vm2 = vcmask 261120  }
0x19af   :  { %v2883_v19 = vadd.f32 %v4990_v1, %v2882_v6  ;;  %v2897_v5 = vmul.f32 %v4992_v50, %v2896_v8  ;;  %v2926_v57 = vsub.f32 1.0, %v2925_v28  ;;  %v2921_v8 = vor.u32 1.1754944e-38, %v2920_v22  ;;  %vm2931_vm4 = vmor %vm2929_vm0, %vm2930_vm12 }
0x19b0   :  { %v2912_v35 = vmul.f32 %v4994_v27, %v2911_v46 }
0x19b1   :  { %v2887_v63 = vsel %vm2886_vm8, %v4990_v1, %v2883_v19  ;;  %v2898_v52 = vadd.f32 %v4992_v50, %v2897_v5  ;;  %v2927_v42 = vmul.f32 %v4996_v3, %v2926_v57  ;;  %v2936_v57 = vor.u32 1.1754944e-38, %v2935_v21 }
0x19b2   :  { %v6352_v29 = vsel %vm6341_vm10, %v2891_v30, %v2887_v63  ;;  %v2913_v6 = vadd.f32 %v4994_v27, %v2912_v35  ;;  %vm7095_vm10 = vcmask 1042434  }
0x19b3   :  { %v2939_v28 = vmul.f32 2.0, %v6352_v29  ;;  %v2902_v46 = vsel %vm2901_vm13, %v4992_v50, %v2898_v52  ;;  %v2928_v25 = vadd.f32 %v4996_v3, %v2927_v42  ;;  %v2947_v21 = vmul.f32 %v6352_v29, %v6293_v62 }
0x19b4   :  { %v2917_v1 = vsel %vm2916_vm15, %v4994_v27, %v2913_v6  ;;  %v2907_v19 = vsel %vm2904_vm1, %v2906_v26, %v2902_v46 }
0x19b5   :  { %v4634_v7 = vadd.f32 -1.0, %v2939_v28  ;;  %v2922_v30 = vsel %vm2919_vm3, %v2921_v8, %v2917_v1  ;;  %v2940_v5 = vmul.f32 2.0, %v2907_v19  ;;  %v2932_v22 = vsel %vm2931_vm4, %v4996_v3, %v2928_v25 }
0x19b6   :  { %v2941_v43 = vmul.f32 2.0, %v2922_v30  ;;  %v2937_v52 = vsel %vm2934_vm5, %v2936_v57, %v2932_v22  ;;  %v2949_v8 = vmul.f32 %v2922_v30, %v6308_v36  ;;  %v2948_v62 = vmul.f32 %v2907_v19, %v6297_v53 }
0x19b7   :  { %2955 = vrot.lane.b32.xlu2 %v4634_v7, %s5355_s19  ;;  %v4635_v48 = vadd.f32 -1.0, %v2940_v5  ;;  %v2942_v42 = vmul.f32 2.0, %v2937_v52  ;;  %v2950_v36 = vmul.f32 %v2937_v52, %v6302_v34 }
0x19b8   :  { %v4636_v14 = vadd.f32 -1.0, %v2941_v43 }
0x19b9   :  { %2957 = vrot.lane.b32.xlu0 %v4635_v48, %s5355_s19  ;;  %v4637_v50 = vadd.f32 -1.0, %v2942_v42 }
0x19ba   :  { %2959 = vrot.lane.b32.xlu1 %v4636_v14, %s5355_s19 }
0x19c1   :  { %2961 = vrot.lane.b32.xlu0 %v4637_v50, %s5355_s19 }
0x1a11   :  { %v2956_v11 = vpop.permute.xlu2 %2955 }
0x1a12   :  { %v2967_v27 = vmul.f32 %v2956_v11, %v6352_v29 }
0x1a14   :  { %2975 = vrot.lane.b32.xlu0 %v2967_v27, %s5368_s6 }
0x1a2b   :  { %v2958_v25 = vpop.permute.xlu0 %2957 }
0x1a2c   :  { %v2960_v3 = vpop.permute.xlu1 %2959  ;;  %v2968_v51 = vmul.f32 %v2958_v25, %v2907_v19 }
0x1a2d   :  { %v2969_v38 = vmul.f32 %v2960_v3, %v2922_v30 }
0x1a2e   :  { %2977 = vrot.lane.b32.xlu1 %v2968_v51, %s5368_s6 }
0x1a2f   :  { %2979 = vrot.lane.b32.xlu2 %v2969_v38, %s5368_s6 }
0x1a33   :  { %v2962_v18 = vpop.permute.xlu0 %2961 }
0x1a34   :  { %v2970_v35 = vmul.f32 %v2962_v18, %v2937_v52 }
0x1a36   :  { %2981 = vrot.lane.b32.xlu1 %v2970_v35, %s5368_s6 }
0x1a86   :  { %v2976_v63 = vpop.permute.xlu0 %2975 }
0x1a87   :  { %v6370_v6 = vadd.f32 %v2976_v63, %v2947_v21 }
0x1a89   :  { %4997 = vtanh.f32 %v6370_v6  ;;  %v2980_v26 = vpop.permute.xlu2 %2979 }
0x1a8a   :  { %v6374_v28 = vadd.f32 %v2980_v26, %v2949_v8 }
0x1a8c   :  { %4999 = vtanh.f32 %v6374_v28 }
0x1a8f   :  { %v4998_v46 = vpop.eup %4997 }
0x1a90   :  { %2999 = vrot.lane.b32.xlu1 %v4998_v46, %s5355_s19 }
0x1a92   :  { %v5000_v1 = vpop.eup %4999 }
0x1a93   :  { %3003 = vrot.lane.b32.xlu0 %v5000_v1, %s5355_s19 }
0x1aa0   :  { %v2978_v7 = vpop.permute.xlu1 %2977 }
0x1aa1   :  { %v6380_v5 = vadd.f32 %v2978_v7, %v2948_v62 }
0x1aa3   :  { %5001 = vtanh.f32 %v6380_v5 }
0x1aa8   :  { %v2982_v22 = vpop.permute.xlu1 %2981 }
0x1aa9   :  { %v5002_v43 = vpop.eup %5001  ;;  %v6384_v57 = vadd.f32 %v2982_v22, %v2950_v36  ;;  %v427_v36 = vrot.slane %v6088_v0, 2  ;;  %v433_v22 = vrot.slane %v6090_v58, 1 }
0x1aaa   :  { %3001 = vrot.lane.b32.xlu2 %v5002_v43, %s5355_s19 }
0x1aab   :  { %5003 = vtanh.f32 %v6384_v57 }
0x1ab1   :  { %v5004_v48 = vpop.eup %5003 }
0x1ab2   :  { %3005 = vrot.lane.b32.xlu2 %v5004_v48, %s5355_s19 }
0x1b02   :  { %v3000_v14 = vpop.permute.xlu1 %2999 }
0x1b03   :  { %v6394_v34 = vmul.f32 %v3000_v14, %v6352_v29 }
0x1b04   :  { %v3002_v53 = vpop.permute.xlu2 %3001 }
0x1b05   :  { %v6389_v42 = vmul.f32 %v3002_v53, %v2907_v19  ;;  %v3004_v50 = vpop.permute.xlu0 %3003  ;;  %7093 = vst [vmem:[#allocation41_spill] sm:$0xff] %v6394_v34  ;;  %v3039_v51 = vpack.c.bf16 %v6394_v34, %v6394_v34 }
0x1b06   :  { %v6391_v11 = vmul.f32 %v3004_v50, %v2922_v30 }
0x1b07   :  { %v3040_v27 = vpack.c.bf16 %v6389_v42, %v6389_v42  ;;  %v3047_v30 = vunpack.c.l.b16 %v3039_v51 }
0x1b08   :  { %7092 = vst [vmem:[#allocation40_spill] sm:$0xff] %v6391_v11  ;;  %v3041_v25 = vpack.c.bf16 %v6391_v11, %v6391_v11 }
0x1b09   :  { %v3048_v3 = vunpack.c.l.b16 %v3040_v27 }
0x1b0a   :  { %v3049_v38 = vunpack.c.l.b16 %v3041_v25 }
0x1b0b   :  { %v3051_v19 = vrot.slane %v3048_v3, 7 }
0x1b0c   :  { %v3006_v18 = vpop.permute.xlu2 %3005  ;;  %v3053_v21 = vrot.slane %v3049_v38, 6 }
0x1b0d   :  { %v6402_v35 = vmul.f32 %v3006_v18, %v2937_v52  ;;  %v3052_v63 = vsel %vm702_vm6, %v3051_v19, %v3047_v30  ;;  %v421_v52 = vrot.slane %v6086_v60, 3 }
0x1b0e   :  { %v3054_v46 = vsel %vm7095_vm10, %v3053_v21, %v3052_v63 }
0x1b0f   :  { %7094 = vst [vmem:[#allocation42_spill] sm:$0xff] %v6402_v35  ;;  %v3042_v29 = vpack.c.bf16 %v6402_v35, %v6402_v35 }
0x1b11   :  { %v3050_v8 = vunpack.c.l.b16 %v3042_v29 }
0x1b13   :  { %v3055_v26 = vrot.slane %v3050_v8, 5 }
0x1b15   :  { %v3056_v1 = vsel %vm7096_vm14, %v3055_v26, %v3054_v46 }
0x1b16   :  { %v3057_v62 = vpack.c.b16 %v3056_v1, %v3056_v1 }
0x1b18   :  { %3058 = vrot.lane.b32.xlu0 %v3057_v62, %s5368_s6 }
0x1b8a   :  { %v3059_v7 = vpop.permute.xlu0 %3058 }
0x1b8b   :  { %4638 = vmatmul.msk.bf16.vlgmr.msra.gmra.mxu1 %vm7097_vm2, %v3059_v7 }
0x1c08   :  { %v3072_v43 = vpop.f32.mrf.mxu1 }
0x1c09   :  { %v3077_v48 = vrot.slane %v3072_v43, 1  ;;  %v3078_v14 = vrot.slane %v3072_v43, 2  ;;  %v3079_v53 = vrot.slane %v3072_v43, 3  ;;  %v3083_v50 = vadd.f32 %v3072_v43, %v421_v52 }
0x1c0b   :  { %v3084_v27 = vadd.f32 %v3077_v48, %v427_v36  ;;  %v3085_v25 = vadd.f32 %v3078_v14, %v433_v22  ;;  %v3086_v3 = vadd.f32 %v3079_v53, %v6092_v40  ;;  %v4639_v51 = vmul.f32 -1.442695, %v3083_v50 }
0x1c0d   :  { %5005 = vpow2.f32 %v4639_v51  ;;  %v4640_v38 = vmul.f32 -1.442695, %v3084_v27  ;;  %v4641_v18 = vmul.f32 -1.442695, %v3085_v25  ;;  %v4642_v19 = vmul.f32 -1.442695, %v3086_v3 }
0x1c0f   :  { %5007 = vpow2.f32 %v4640_v38 }
0x1c10   :  { %5009 = vpow2.f32 %v4641_v18  ;;  %v3074_v30 = vpop.f32.mrf.mxu1 }
0x1c11   :  { %5011 = vpow2.f32 %v4642_v19 }
0x1c13   :  { %v5006_v29 = vpop.eup %5005 }
0x1c14   :  { %v3099_v21 = vadd.f32 1.0, %v5006_v29 }
0x1c15   :  { %v5008_v63 = vpop.eup %5007 }
0x1c16   :  { %v5010_v8 = vpop.eup %5009  ;;  %v3100_v26 = vadd.f32 1.0, %v5008_v63  ;;  %5013 = vrcp.f32 %v3099_v21  ;;  %v3112_v7 = vand.u32 2147483647, %v3099_v21  ;;  %v3114_v52 = vand.u32 2147483648, %v3099_v21 }
0x1c17   :  { %v5012_v46 = vpop.eup %5011  ;;  %v3101_v1 = vadd.f32 1.0, %v5010_v8  ;;  %vm3108_vm11 = vweird.f32 %v3099_v21 }
0x1c18   :  { %v6415_v62 = vadd.f32 1.0, %v5012_v46  ;;  %5015 = vrcp.f32 %v3100_v26  ;;  %vm6418_vm0 = vcmp.eq.f32.partialorder %v3112_v7, 8.507059e+37  ;;  %v3115_v50 = vor.u32 1.1754944e-38, %v3114_v52 }
0x1c19   :  { %5017 = vrcp.f32 %v3101_v1  ;;  %vm3123_vm7 = vweird.f32 %v3100_v26  ;;  %vm3138_vm8 = vweird.f32 %v3101_v1  ;;  %v3142_v51 = vand.u32 2147483647, %v3101_v1 }
0x1c1a   :  { %5019 = vrcp.f32 %v6415_v62  ;;  %v3144_v38 = vand.u32 2147483648, %v3101_v1  ;;  %v3127_v63 = vand.u32 2147483647, %v3100_v26  ;;  %v3129_v8 = vand.u32 2147483648, %v3100_v26 }
0x1c1b   :  { %vm3153_vm12 = vweird.f32 %v6415_v62  ;;  %v3157_v35 = vand.u32 2147483647, %v6415_v62  ;;  %vm3143_vm14 = vcmp.eq.f32.partialorder %v3142_v51, 8.507059e+37 }
0x1c1c   :  { %v5014_v36 = vpop.eup %5013  ;;  %vm3128_vm10 = vcmp.eq.f32.partialorder %v3127_v63, 8.507059e+37 }
0x1c1d   :  { %v3104_v22 = vmul.f32 %v5014_v36, %v3099_v21  ;;  %vm3109_vm9 = vweird.f32 %v5014_v36  ;;  %v3130_v21 = vor.u32 1.1754944e-38, %v3129_v8 }
0x1c1e   :  { %v5016_v43 = vpop.eup %5015  ;;  %vm3110_vm15 = vmor %vm3108_vm11, %vm3109_vm9  ;;  %vm3158_vm11 = vcmp.eq.f32.partialorder %v3157_v35, 8.507059e+37 }
0x1c1f   :  { %v5018_v14 = vpop.eup %5017  ;;  %v3105_v53 = vsub.f32 1.0, %v3104_v22  ;;  %v3119_v27 = vmul.f32 %v5016_v43, %v3100_v26  ;;  %vm3124_vm13 = vweird.f32 %v5016_v43 }
0x1c20   :  { %v5020_v25 = vpop.eup %5019  ;;  %v3134_v3 = vmul.f32 %v5018_v14, %v3101_v1  ;;  %vm3139_vm1 = vweird.f32 %v5018_v14  ;;  %vm3125_vm4 = vmor %vm3123_vm7, %vm3124_vm13  ;;  %vm7104_vm7 = vcmask 1043459  }
0x1c21   :  { %v3106_v18 = vmul.f32 %v5014_v36, %v3105_v53  ;;  %v3120_v19 = vsub.f32 1.0, %v3119_v27  ;;  %v3149_v30 = vmul.f32 %v5020_v25, %v6415_v62  ;;  %v3159_v53 = vand.u32 2147483648, %v6415_v62  ;;  %vm3140_vm5 = vmor %vm3138_vm8, %vm3139_vm1 }
0x1c22   :  { %v3135_v29 = vsub.f32 1.0, %v3134_v3  ;;  %vm3154_vm3 = vweird.f32 %v5020_v25  ;;  %vm7105_vm8 = vcmask 261120  }
0x1c23   :  { %v3107_v46 = vadd.f32 %v5014_v36, %v3106_v18  ;;  %v3121_v7 = vmul.f32 %v5016_v43, %v3120_v19  ;;  %v3150_v52 = vsub.f32 1.0, %v3149_v30  ;;  %v3145_v19 = vor.u32 1.1754944e-38, %v3144_v38  ;;  %vm3155_vm2 = vmor %vm3153_vm12, %vm3154_vm3 }
0x1c24   :  { %v3136_v22 = vmul.f32 %v5018_v14, %v3135_v29 }
0x1c25   :  { %v3111_v27 = vsel %vm3110_vm15, %v5014_v36, %v3107_v46  ;;  %v3122_v34 = vadd.f32 %v5016_v43, %v3121_v7  ;;  %v3151_v11 = vmul.f32 %v5020_v25, %v3150_v52  ;;  %v3160_v52 = vor.u32 1.1754944e-38, %v3159_v53 }
0x1c26   :  { %v6429_v3 = vsel %vm6418_vm0, %v3115_v50, %v3111_v27  ;;  %v3137_v18 = vadd.f32 %v5018_v14, %v3136_v22  ;;  %vm7103_vm0 = vcmask 1042434  }
0x1c27   :  { %v3163_v30 = vmul.f32 2.0, %v6429_v3  ;;  %v3126_v29 = vsel %vm3125_vm4, %v5016_v43, %v3122_v34  ;;  %v3152_v45 = vadd.f32 %v5020_v25, %v3151_v11 }
0x1c28   :  { %v3141_v36 = vsel %vm3140_vm5, %v5018_v14, %v3137_v18  ;;  %v3131_v46 = vsel %vm3128_vm10, %v3130_v21, %v3126_v29 }
0x1c29   :  { %v4643_v48 = vadd.f32 -1.0, %v3163_v30  ;;  %v3146_v50 = vsel %vm3143_vm14, %v3145_v19, %v3141_v36  ;;  %v3164_v7 = vmul.f32 2.0, %v3131_v46  ;;  %v3156_v38 = vsel %vm3155_vm2, %v5020_v25, %v3152_v45 }
0x1c2a   :  { %v3165_v26 = vmul.f32 2.0, %v3146_v50  ;;  %v3161_v34 = vsel %vm3158_vm11, %v3160_v52, %v3156_v38  ;;  %v3172_v53 = vmul.f32 %v3131_v46, %v6380_v5  ;;  %v3173_v27 = vmul.f32 %v3146_v50, %v6374_v28 }
0x1c2b   :  { %3179 = vrot.lane.b32.xlu0 %v4643_v48, %s5355_s19  ;;  %v4644_v8 = vadd.f32 -1.0, %v3164_v7  ;;  %v3166_v11 = vmul.f32 2.0, %v3161_v34  ;;  %v3174_v29 = vmul.f32 %v3161_v34, %v6384_v57  ;;  %v3171_v5 = vmul.f32 %v6429_v3, %v6370_v6 }
0x1c2c   :  { %v4645_v1 = vadd.f32 -1.0, %v3165_v26 }
0x1c2d   :  { %3181 = vrot.lane.b32.xlu1 %v4644_v8, %s5355_s19  ;;  %v4646_v43 = vadd.f32 -1.0, %v3166_v11 }
0x1c2e   :  { %3183 = vrot.lane.b32.xlu2 %v4645_v1, %s5355_s19 }
0x1c35   :  { %3185 = vrot.lane.b32.xlu1 %v4646_v43, %s5355_s19 }
0x1c88   :  { %v3184_v62 = vpop.permute.xlu2 %3183 }
0x1c89   :  { %v3193_v14 = vmul.f32 %v3184_v62, %v3146_v50 }
0x1c8b   :  { %3203 = vrot.lane.b32.xlu0 %v3193_v14, %s5368_s6 }
0x1c9d   :  { %v3180_v45 = vpop.permute.xlu0 %3179 }
0x1c9e   :  { %v3191_v25 = vmul.f32 %v3180_v45, %v6429_v3 }
0x1c9f   :  { %v3182_v51 = vpop.permute.xlu1 %3181 }
0x1ca0   :  { %v3192_v63 = vmul.f32 %v3182_v51, %v3131_v46  ;;  %3199 = vrot.lane.b32.xlu1 %v3191_v25, %s5368_s6 }
0x1ca2   :  { %3201 = vrot.lane.b32.xlu2 %v3192_v63, %s5368_s6 }
0x1ca7   :  { %v3186_v35 = vpop.permute.xlu1 %3185 }
0x1ca8   :  { %v3194_v22 = vmul.f32 %v3186_v35, %v3161_v34 }
0x1caa   :  { %3205 = vrot.lane.b32.xlu2 %v3194_v22, %s5368_s6 }
0x1cfc   :  { %v3202_v18 = vpop.permute.xlu2 %3201 }
0x1cfd   :  { %v3204_v19 = vpop.permute.xlu0 %3203  ;;  %v6447_v21 = vadd.f32 %v3202_v18, %v3172_v53 }
0x1cfe   :  { %v6449_v30 = vadd.f32 %v3204_v19, %v3173_v27 }
0x1cff   :  { %5021 = vtanh.f32 %v6447_v21 }
0x1d00   :  { %5023 = vtanh.f32 %v6449_v30 }
0x1d04   :  { %v3206_v36 = vpop.permute.xlu2 %3205 }
0x1d05   :  { %v5022_v48 = vpop.eup %5021  ;;  %v6454_v7 = vadd.f32 %v3206_v36, %v3174_v29 }
0x1d06   :  { %v5024_v38 = vpop.eup %5023  ;;  %3225 = vrot.lane.b32.xlu0 %v5022_v48, %s5355_s19 }
0x1d07   :  { %5025 = vtanh.f32 %v6454_v7  ;;  %3227 = vrot.lane.b32.xlu1 %v5024_v38, %s5355_s19 }
0x1d0d   :  { %v5026_v28 = vpop.eup %5025 }
0x1d0e   :  { %3229 = vrot.lane.b32.xlu0 %v5026_v28, %s5355_s19  ;;  %v440_v28 = vrot.slane %v6092_v40, 1 }
0x1d12   :  { %v3200_v26 = vpop.permute.xlu1 %3199 }
0x1d13   :  { %v6462_v52 = vadd.f32 %v3200_v26, %v3171_v5  ;;  %v428_v5 = vrot.slane %v6088_v0, 3  ;;  %v434_v26 = vrot.slane %v6090_v58, 2 }
0x1d15   :  { %5027 = vtanh.f32 %v6462_v52 }
0x1d1b   :  { %v5028_v57 = vpop.eup %5027 }
0x1d1c   :  { %3223 = vrot.lane.b32.xlu2 %v5028_v57, %s5355_s19 }
0x1d76   :  { %v3224_v8 = vpop.permute.xlu2 %3223 }
0x1d77   :  { %v6471_v14 = vmul.f32 %v3224_v8, %v6429_v3 }
0x1d78   :  { %v3226_v1 = vpop.permute.xlu0 %3225 }
0x1d79   :  { %v6466_v11 = vmul.f32 %v3226_v1, %v3131_v46  ;;  %v3228_v43 = vpop.permute.xlu1 %3227  ;;  %7101 = vst [vmem:[#allocation44_spill] sm:$0xff] %v6471_v14  ;;  %v3263_v51 = vpack.c.bf16 %v6471_v14, %v6471_v14 }
0x1d7a   :  { %v6468_v62 = vmul.f32 %v3228_v43, %v3146_v50 }
0x1d7b   :  { %v3264_v6 = vpack.c.bf16 %v6466_v11, %v6466_v11  ;;  %v3271_v50 = vunpack.c.l.b16 %v3263_v51 }
0x1d7c   :  { %7100 = vst [vmem:[#allocation43_spill] sm:$0xff] %v6468_v62  ;;  %v3265_v45 = vpack.c.bf16 %v6468_v62, %v6468_v62 }
0x1d7d   :  { %v3272_v25 = vunpack.c.l.b16 %v3264_v6 }
0x1d7e   :  { %v3273_v63 = vunpack.c.l.b16 %v3265_v45 }
0x1d7f   :  { %v3275_v46 = vrot.slane %v3272_v25, 7 }
0x1d80   :  { %v3230_v35 = vpop.permute.xlu0 %3229  ;;  %v3277_v53 = vrot.slane %v3273_v63, 6 }
0x1d81   :  { %v6479_v22 = vmul.f32 %v3230_v35, %v3161_v34  ;;  %v3276_v27 = vsel %vm702_vm6, %v3275_v46, %v3271_v50  ;;  %v422_v34 = vrot.slane %v6086_v60, 4 }
0x1d82   :  { %v3278_v29 = vsel %vm7103_vm0, %v3277_v53, %v3276_v27 }
0x1d83   :  { %7102 = vst [vmem:[#allocation45_spill] sm:$0xff] %v6479_v22  ;;  %v3266_v3 = vpack.c.bf16 %v6479_v22, %v6479_v22 }
0x1d85   :  { %v3274_v18 = vunpack.c.l.b16 %v3266_v3 }
0x1d87   :  { %v3279_v19 = vrot.slane %v3274_v18, 5 }
0x1d89   :  { %v3280_v36 = vsel %vm7104_vm7, %v3279_v19, %v3278_v29 }
0x1d8a   :  { %v3281_v48 = vpack.c.b16 %v3280_v36, %v3280_v36 }
0x1d8c   :  { %3282 = vrot.lane.b32.xlu1 %v3281_v48, %s5368_s6 }
0x1dfe   :  { %v3283_v38 = vpop.permute.xlu1 %3282 }
0x1dff   :  { %4647 = vmatmul.msk.bf16.vlgmr.msrb.gmra.mxu2 %vm7105_vm8, %v3283_v38 }
0x1e82   :  { %v3296_v57 = vpop.f32.mrf.mxu2 }
0x1e83   :  { %v3301_v8 = vrot.slane %v3296_v57, 1  ;;  %v3302_v1 = vrot.slane %v3296_v57, 2  ;;  %v3303_v43 = vrot.slane %v3296_v57, 3  ;;  %v3307_v6 = vadd.f32 %v3296_v57, %v422_v34 }
0x1e85   :  { %v3308_v45 = vadd.f32 %v3301_v8, %v428_v5  ;;  %v3309_v25 = vadd.f32 %v3302_v1, %v434_v26  ;;  %v3310_v51 = vadd.f32 %v3303_v43, %v440_v28  ;;  %v4648_v63 = vmul.f32 -1.442695, %v3307_v6 }
0x1e87   :  { %5029 = vpow2.f32 %v4648_v63  ;;  %v4649_v35 = vmul.f32 -1.442695, %v3308_v45  ;;  %v4650_v46 = vmul.f32 -1.442695, %v3309_v25  ;;  %v4651_v50 = vmul.f32 -1.442695, %v3310_v51 }
0x1e89   :  { %5031 = vpow2.f32 %v4649_v35 }
0x1e8a   :  { %5033 = vpow2.f32 %v4650_v46  ;;  %v3298_v3 = vpop.f32.mrf.mxu2 }
0x1e8b   :  { %5035 = vpow2.f32 %v4651_v50 }
0x1e8d   :  { %v5030_v53 = vpop.eup %5029 }
0x1e8e   :  { %v3323_v27 = vadd.f32 1.0, %v5030_v53 }
0x1e8f   :  { %v5032_v18 = vpop.eup %5031 }
0x1e90   :  { %v5034_v19 = vpop.eup %5033  ;;  %v3324_v29 = vadd.f32 1.0, %v5032_v18  ;;  %5037 = vrcp.f32 %v3323_v27  ;;  %v3336_v34 = vand.u32 2147483647, %v3323_v27  ;;  %v3338_v28 = vand.u32 2147483648, %v3323_v27 }
0x1e91   :  { %v5036_v36 = vpop.eup %5035  ;;  %v3325_v48 = vadd.f32 1.0, %v5034_v19  ;;  %vm3332_vm9 = vweird.f32 %v3323_v27 }
0x1e92   :  { %v6492_v38 = vadd.f32 1.0, %v5036_v36  ;;  %5039 = vrcp.f32 %v3324_v29  ;;  %vm6495_vm12 = vcmp.eq.f32.partialorder %v3336_v34, 8.507059e+37  ;;  %v3339_v6 = vor.u32 1.1754944e-38, %v3338_v28 }
0x1e93   :  { %5041 = vrcp.f32 %v3325_v48  ;;  %vm3347_vm13 = vweird.f32 %v3324_v29  ;;  %vm3362_vm15 = vweird.f32 %v3325_v48  ;;  %v3366_v63 = vand.u32 2147483647, %v3325_v48 }
0x1e94   :  { %5043 = vrcp.f32 %v6492_v38  ;;  %v3368_v35 = vand.u32 2147483648, %v3325_v48  ;;  %v3351_v18 = vand.u32 2147483647, %v3324_v29  ;;  %v3353_v19 = vand.u32 2147483648, %v3324_v29 }
0x1e95   :  { %vm3377_vm3 = vweird.f32 %v6492_v38  ;;  %v3381_v22 = vand.u32 2147483647, %v6492_v38  ;;  %vm3367_vm7 = vcmp.eq.f32.partialorder %v3366_v63, 8.507059e+37 }
0x1e96   :  { %v5038_v5 = vpop.eup %5037  ;;  %vm3352_vm0 = vcmp.eq.f32.partialorder %v3351_v18, 8.507059e+37 }
0x1e97   :  { %v3328_v26 = vmul.f32 %v5038_v5, %v3323_v27  ;;  %vm3333_vm1 = vweird.f32 %v5038_v5  ;;  %v3354_v27 = vor.u32 1.1754944e-38, %v3353_v19 }
0x1e98   :  { %v5040_v57 = vpop.eup %5039  ;;  %vm3334_vm5 = vmor %vm3332_vm9, %vm3333_vm1  ;;  %vm3382_vm9 = vcmp.eq.f32.partialorder %v3381_v22, 8.507059e+37 }
0x1e99   :  { %v5042_v1 = vpop.eup %5041  ;;  %v3329_v43 = vsub.f32 1.0, %v3328_v26  ;;  %v3343_v45 = vmul.f32 %v5040_v57, %v3324_v29  ;;  %vm3348_vm4 = vweird.f32 %v5040_v57 }
0x1e9a   :  { %v5044_v25 = vpop.eup %5043  ;;  %v3358_v51 = vmul.f32 %v5042_v1, %v3325_v48  ;;  %vm3363_vm10 = vweird.f32 %v5042_v1  ;;  %vm3349_vm2 = vmor %vm3347_vm13, %vm3348_vm4  ;;  %vm7111_vm13 = vcmask 1043459  }
0x1e9b   :  { %v3330_v46 = vmul.f32 %v5038_v5, %v3329_v43  ;;  %v3344_v50 = vsub.f32 1.0, %v3343_v45  ;;  %v3373_v3 = vmul.f32 %v5044_v25, %v6492_v38  ;;  %v3383_v43 = vand.u32 2147483648, %v6492_v38  ;;  %vm3364_vm11 = vmor %vm3362_vm15, %vm3363_vm10 }
0x1e9c   :  { %v3359_v53 = vsub.f32 1.0, %v3358_v51  ;;  %vm3378_vm14 = vweird.f32 %v5044_v25  ;;  %vm7112_vm15 = vcmask 261120  }
0x1e9d   :  { %v3331_v36 = vadd.f32 %v5038_v5, %v3330_v46  ;;  %v3345_v34 = vmul.f32 %v5040_v57, %v3344_v50  ;;  %v3374_v28 = vsub.f32 1.0, %v3373_v3  ;;  %v3369_v50 = vor.u32 1.1754944e-38, %v3368_v35  ;;  %vm3379_vm8 = vmor %vm3377_vm3, %vm3378_vm14 }
0x1e9e   :  { %v3360_v26 = vmul.f32 %v5042_v1, %v3359_v53 }
0x1e9f   :  { %v3335_v45 = vsel %vm3334_vm5, %v5038_v5, %v3331_v36  ;;  %v3346_v14 = vadd.f32 %v5040_v57, %v3345_v34  ;;  %v3375_v62 = vmul.f32 %v5044_v25, %v3374_v28  ;;  %v3384_v28 = vor.u32 1.1754944e-38, %v3383_v43 }
0x1ea0   :  { %v6506_v51 = vsel %vm6495_vm12, %v3339_v6, %v3335_v45  ;;  %v3361_v46 = vadd.f32 %v5042_v1, %v3360_v26  ;;  %vm7110_vm12 = vcmask 1042434  }
0x1ea1   :  { %v3387_v3 = vmul.f32 2.0, %v6506_v51  ;;  %v3350_v53 = vsel %vm3349_vm2, %v5040_v57, %v3346_v14  ;;  %v3376_v55 = vadd.f32 %v5044_v25, %v3375_v62  ;;  %v3395_v43 = vmul.f32 %v6506_v51, %v6462_v52 }
0x1ea2   :  { %v3365_v5 = vsel %vm3364_vm11, %v5042_v1, %v3361_v46  ;;  %v3355_v36 = vsel %vm3352_vm0, %v3354_v27, %v3350_v53 }
0x1ea3   :  { %v4652_v8 = vadd.f32 -1.0, %v3387_v3  ;;  %v3370_v6 = vsel %vm3367_vm7, %v3369_v50, %v3365_v5  ;;  %v3388_v34 = vmul.f32 2.0, %v3355_v36  ;;  %v3380_v35 = vsel %vm3379_vm8, %v5044_v25, %v3376_v55 }
0x1ea4   :  { %v3389_v29 = vmul.f32 2.0, %v3370_v6  ;;  %v3385_v14 = vsel %vm3382_vm9, %v3384_v28, %v3380_v35  ;;  %v3396_v50 = vmul.f32 %v3355_v36, %v6447_v21  ;;  %v3397_v35 = vmul.f32 %v3370_v6, %v6449_v30 }
0x1ea5   :  { %3403 = vrot.lane.b32.xlu1 %v4652_v8, %s5355_s19  ;;  %v4653_v19 = vadd.f32 -1.0, %v3388_v34  ;;  %v3390_v62 = vmul.f32 2.0, %v3385_v14  ;;  %v3398_v5 = vmul.f32 %v3385_v14, %v6454_v7 }
0x1ea6   :  { %v4654_v48 = vadd.f32 -1.0, %v3389_v29 }
0x1ea7   :  { %3405 = vrot.lane.b32.xlu2 %v4653_v19, %s5355_s19  ;;  %v4655_v57 = vadd.f32 -1.0, %v3390_v62 }
0x1ea8   :  { %3407 = vrot.lane.b32.xlu0 %v4654_v48, %s5355_s19 }
0x1eaf   :  { %3409 = vrot.lane.b32.xlu2 %v4655_v57, %s5355_s19 }
0x1f01   :  { %v3406_v38 = vpop.permute.xlu2 %3405 }
0x1f02   :  { %v3416_v1 = vmul.f32 %v3406_v38, %v3355_v36 }
0x1f04   :  { %3425 = vrot.lane.b32.xlu0 %v3416_v1, %s5368_s6 }
0x1f09   :  { %v3410_v55 = vpop.permute.xlu2 %3409 }
0x1f0a   :  { %v3418_v25 = vmul.f32 %v3410_v55, %v3385_v14 }
0x1f0c   :  { %3429 = vrot.lane.b32.xlu0 %v3418_v25, %s5368_s6 }
0x1f17   :  { %v3404_v63 = vpop.permute.xlu1 %3403 }
0x1f18   :  { %v3415_v22 = vmul.f32 %v3404_v63, %v6506_v51 }
0x1f1a   :  { %v3408_v18 = vpop.permute.xlu0 %3407  ;;  %3423 = vrot.lane.b32.xlu2 %v3415_v22, %s5368_s6 }
0x1f1b   :  { %v3417_v26 = vmul.f32 %v3408_v18, %v3370_v6 }
0x1f1d   :  { %3427 = vrot.lane.b32.xlu1 %v3417_v26, %s5368_s6 }
0x1f74   :  { %v3424_v45 = vpop.permute.xlu2 %3423 }
0x1f75   :  { %v6524_v46 = vadd.f32 %v3424_v45, %v3395_v43 }
0x1f76   :  { %v3426_v27 = vpop.permute.xlu0 %3425 }
0x1f77   :  { %5045 = vtanh.f32 %v6524_v46  ;;  %v6528_v3 = vadd.f32 %v3426_v27, %v3396_v50 }
0x1f79   :  { %5047 = vtanh.f32 %v6528_v3 }
0x1f7d   :  { %v5046_v53 = vpop.eup %5045 }
0x1f7e   :  { %v3430_v8 = vpop.permute.xlu0 %3429  ;;  %3447 = vrot.lane.b32.xlu0 %v5046_v53, %s5355_s19 }
0x1f7f   :  { %v5048_v34 = vpop.eup %5047  ;;  %v6533_v52 = vadd.f32 %v3430_v8, %v3398_v5 }
0x1f80   :  { %3449 = vrot.lane.b32.xlu1 %v5048_v34, %s5355_s19 }
0x1f81   :  { %5049 = vtanh.f32 %v6533_v52 }
0x1f87   :  { %v5050_v21 = vpop.eup %5049 }
0x1f88   :  { %3453 = vrot.lane.b32.xlu1 %v5050_v21, %s5355_s19  ;;  %v441_v21 = vrot.slane %v6092_v40, 2 }
0x1f8f   :  { %v3428_v29 = vpop.permute.xlu1 %3427 }
0x1f90   :  { %v6539_v28 = vadd.f32 %v3428_v29, %v3397_v35  ;;  %v429_v35 = vrot.slane %v6088_v0, 4  ;;  %v435_v29 = vrot.slane %v6090_v58, 3 }
0x1f92   :  { %5051 = vtanh.f32 %v6539_v28 }
0x1f98   :  { %v5052_v7 = vpop.eup %5051 }
0x1f99   :  { %3451 = vrot.lane.b32.xlu2 %v5052_v7, %s5355_s19 }
0x1ff0   :  { %v3448_v19 = vpop.permute.xlu0 %3447 }
0x1ff1   :  { %v6548_v1 = vmul.f32 %v3448_v19, %v6506_v51 }
0x1ff2   :  { %v3450_v48 = vpop.permute.xlu1 %3449 }
0x1ff3   :  { %v6543_v62 = vmul.f32 %v3450_v48, %v3355_v36  ;;  %v3452_v57 = vpop.permute.xlu2 %3451  ;;  %7108 = vst [vmem:[#allocation46_spill] sm:$0xff] %v6548_v1  ;;  %v3487_v63 = vpack.c.bf16 %v6548_v1, %v6548_v1 }
0x1ff4   :  { %v6545_v38 = vmul.f32 %v3452_v57, %v3370_v6 }
0x1ff5   :  { %v3488_v30 = vpack.c.bf16 %v6543_v62, %v6543_v62  ;;  %v3495_v6 = vunpack.c.l.b16 %v3487_v63 }
0x1ff6   :  { %v3489_v55 = vpack.c.bf16 %v6545_v38, %v6545_v38 }
0x1ff7   :  { %v3496_v25 = vunpack.c.l.b16 %v3488_v30 }
0x1ff8   :  { %v3497_v22 = vunpack.c.l.b16 %v3489_v55 }
0x1ff9   :  { %v3499_v36 = vrot.slane %v3496_v25, 7 }
0x1ffa   :  { %v3454_v18 = vpop.permute.xlu1 %3453  ;;  %v3501_v43 = vrot.slane %v3497_v22, 6 }
0x1ffb   :  { %v6556_v26 = vmul.f32 %v3454_v18, %v3385_v14  ;;  %v3500_v45 = vsel %vm702_vm6, %v3499_v36, %v3495_v6  ;;  %v423_v14 = vrot.slane %v6086_v60, 5 }
0x1ffc   :  { %v3502_v53 = vsel %vm7110_vm12, %v3501_v43, %v3500_v45 }
0x1ffd   :  { %7109 = vst [vmem:[#allocation47_spill] sm:$0xff] %v6556_v26  ;;  %v3490_v51 = vpack.c.bf16 %v6556_v26, %v6556_v26 }
0x1fff   :  { %v3498_v50 = vunpack.c.l.b16 %v3490_v51 }
0x2001   :  { %v3503_v27 = vrot.slane %v3498_v50, 5 }
0x2003   :  { %v3504_v5 = vsel %vm7111_vm13, %v3503_v27, %v3502_v53 }
0x2004   :  { %v3505_v8 = vpack.c.b16 %v3504_v5, %v3504_v5 }
0x2006   :  { %3506 = vrot.lane.b32.xlu2 %v3505_v8, %s5368_s6 }
0x2060   :  { %v3507_v34 = vpop.permute.xlu2 %3506 }
0x2061   :  { %4656 = vmatmul.msk.bf16.vlgmr.msra.gmra.mxu3 %vm7112_vm15, %v3507_v34 }
0x20e4   :  { %v3520_v7 = vpop.f32.mrf.mxu3 }
0x20e5   :  { %v3525_v19 = vrot.slane %v3520_v7, 1  ;;  %v3526_v48 = vrot.slane %v3520_v7, 2  ;;  %v3527_v57 = vrot.slane %v3520_v7, 3  ;;  %v3531_v30 = vadd.f32 %v3520_v7, %v423_v14 }
0x20e7   :  { %v3532_v55 = vadd.f32 %v3525_v19, %v429_v35  ;;  %v3533_v25 = vadd.f32 %v3526_v48, %v435_v29  ;;  %v3534_v63 = vadd.f32 %v3527_v57, %v441_v21  ;;  %v4657_v22 = vmul.f32 -1.442695, %v3531_v30 }
0x20e9   :  { %5053 = vpow2.f32 %v4657_v22  ;;  %v4658_v18 = vmul.f32 -1.442695, %v3532_v55  ;;  %v4659_v36 = vmul.f32 -1.442695, %v3533_v25  ;;  %v4660_v6 = vmul.f32 -1.442695, %v3534_v63 }
0x20eb   :  { %5055 = vpow2.f32 %v4658_v18 }
0x20ec   :  { %5057 = vpow2.f32 %v4659_v36  ;;  %v3522_v51 = vpop.f32.mrf.mxu3 }
0x20ed   :  { %5059 = vpow2.f32 %v4660_v6 }
0x20ef   :  { %v5054_v43 = vpop.eup %5053 }
0x20f0   :  { %v3547_v45 = vadd.f32 1.0, %v5054_v43 }
0x20f1   :  { %v5056_v50 = vpop.eup %5055 }
0x20f2   :  { %v5058_v27 = vpop.eup %5057  ;;  %v3548_v53 = vadd.f32 1.0, %v5056_v50  ;;  %5061 = vrcp.f32 %v3547_v45  ;;  %v3560_v14 = vand.u32 2147483647, %v3547_v45  ;;  %v3562_v21 = vand.u32 2147483648, %v3547_v45 }
0x20f3   :  { %v5060_v5 = vpop.eup %5059  ;;  %v3549_v8 = vadd.f32 1.0, %v5058_v27  ;;  %vm3556_vm1 = vweird.f32 %v3547_v45 }
0x20f4   :  { %v6569_v34 = vadd.f32 1.0, %v5060_v5  ;;  %5063 = vrcp.f32 %v3548_v53  ;;  %vm6572_vm3 = vcmp.eq.f32.partialorder %v3560_v14, 8.507059e+37  ;;  %v3563_v30 = vor.u32 1.1754944e-38, %v3562_v21 }
0x20f5   :  { %5065 = vrcp.f32 %v3549_v8  ;;  %vm3571_vm4 = vweird.f32 %v3548_v53  ;;  %vm3586_vm5 = vweird.f32 %v3549_v8  ;;  %v3590_v22 = vand.u32 2147483647, %v3549_v8 }
0x20f6   :  { %5067 = vrcp.f32 %v6569_v34  ;;  %v3592_v18 = vand.u32 2147483648, %v3549_v8  ;;  %v3575_v50 = vand.u32 2147483647, %v3548_v53  ;;  %v3577_v27 = vand.u32 2147483648, %v3548_v53 }
0x20f7   :  { %vm3601_vm14 = vweird.f32 %v6569_v34  ;;  %v3605_v26 = vand.u32 2147483647, %v6569_v34  ;;  %vm3591_vm13 = vcmp.eq.f32.partialorder %v3590_v22, 8.507059e+37 }
0x20f8   :  { %v5062_v35 = vpop.eup %5061  ;;  %vm3576_vm12 = vcmp.eq.f32.partialorder %v3575_v50, 8.507059e+37 }
0x20f9   :  { %v3552_v29 = vmul.f32 %v5062_v35, %v3547_v45  ;;  %vm3557_vm10 = vweird.f32 %v5062_v35  ;;  %v3578_v45 = vor.u32 1.1754944e-38, %v3577_v27 }
0x20fa   :  { %v5064_v7 = vpop.eup %5063  ;;  %vm3558_vm11 = vmor %vm3556_vm1, %vm3557_vm10  ;;  %vm3606_vm1 = vcmp.eq.f32.partialorder %v3605_v26, 8.507059e+37  ;;  %vm7115_vm10 = vcmask 1042434  }
0x20fb   :  { %v5066_v48 = vpop.eup %5065  ;;  %v3553_v57 = vsub.f32 1.0, %v3552_v29  ;;  %v3567_v55 = vmul.f32 %v5064_v7, %v3548_v53  ;;  %vm3572_vm2 = vweird.f32 %v5064_v7 }
0x20fc   :  { %v5068_v25 = vpop.eup %5067  ;;  %v3582_v63 = vmul.f32 %v5066_v48, %v3549_v8  ;;  %vm3587_vm0 = vweird.f32 %v5066_v48  ;;  %vm3573_vm8 = vmor %vm3571_vm4, %vm3572_vm2  ;;  %vm1389_vm4 = vcmask 257027   ;;  %vm2096_vm2 = vcmask 260102  }
0x20fd   :  { %v3554_v36 = vmul.f32 %v5062_v35, %v3553_v57  ;;  %v3568_v6 = vsub.f32 1.0, %v3567_v55  ;;  %v3597_v51 = vmul.f32 %v5068_v25, %v6569_v34  ;;  %v3607_v57 = vand.u32 2147483648, %v6569_v34  ;;  %vm3588_vm9 = vmor %vm3586_vm5, %vm3587_vm0 }
0x20fe   :  { %v3583_v43 = vsub.f32 1.0, %v3582_v63  ;;  %vm3602_vm7 = vweird.f32 %v5068_v25  ;;  %vm921_vm5 = vcmask 254977   ;;  %vm7009_vm0 = vcmask 256002  }
0x20ff   :  { %v3555_v5 = vadd.f32 %v5062_v35, %v3554_v36  ;;  %v3569_v14 = vmul.f32 %v5064_v7, %v3568_v6  ;;  %v3598_v21 = vsub.f32 1.0, %v3597_v51  ;;  %v3593_v6 = vor.u32 1.1754944e-38, %v3592_v18  ;;  %vm3603_vm15 = vmor %vm3601_vm14, %vm3602_vm7 }
0x2100   :  { %v3584_v29 = vmul.f32 %v5066_v48, %v3583_v43  ;;  %vm7116_vm14 = vcmask 1043459   ;;  %vm7117_vm7 = vcmask 261120  }
0x2101   :  { %v3559_v55 = vsel %vm3558_vm11, %v5062_v35, %v3555_v5  ;;  %v3570_v1 = vadd.f32 %v5064_v7, %v3569_v14  ;;  %v3599_v44 = vmul.f32 %v5068_v25, %v3598_v21  ;;  %v3608_v14 = vor.u32 1.1754944e-38, %v3607_v57 }
0x2102   :  { %v6583_v63 = vsel %vm6572_vm3, %v3563_v30, %v3559_v55  ;;  %v3585_v36 = vadd.f32 %v5066_v48, %v3584_v29  ;;  %vm684_vm3 = vcmask 253952   ;;  %vm1624_vm11 = vcmask 258052  }
0x2103   :  { %v3611_v51 = vmul.f32 2.0, %v6583_v63  ;;  %v3574_v43 = vsel %vm3573_vm8, %v5064_v7, %v3570_v1  ;;  %v3600_v37 = vadd.f32 %v5068_v25, %v3599_v44  ;;  %v3619_v57 = vmul.f32 %v6583_v63, %v6524_v46 }
0x2104   :  { %v3589_v35 = vsel %vm3588_vm9, %v5066_v48, %v3585_v36  ;;  %v6588_v5 = vsel %vm3576_vm12, %v3578_v45, %v3574_v43  ;;  %vm1860_vm8 = vcmask 259077   ;;  %vm7010_vm9 = vcmask 1043456   ;;  %vm7118_vm12 = vmmov %vm7117_vm7 }
0x2105   :  { %v4661_v19 = vadd.f32 -1.0, %v3611_v51  ;;  %v3594_v30 = vsel %vm3591_vm13, %v3593_v6, %v3589_v35  ;;  %v3612_v53 = vmul.f32 2.0, %v6588_v5  ;;  %v3604_v18 = vsel %vm3603_vm15, %v5068_v25, %v3600_v37 }
0x2106   :  { %v3613_v27 = vmul.f32 2.0, %v3594_v30  ;;  %v6594_v44 = vsel %vm3606_vm1, %v3608_v14, %v3604_v18  ;;  %v3621_v6 = vmul.f32 %v3594_v30, %v6539_v28  ;;  %v3620_v46 = vmul.f32 %v6588_v5, %v6528_v3 }
0x2107   :  { %3627 = vrot.lane.b32.xlu2 %v4661_v19, %s5355_s19  ;;  %v4662_v8 = vadd.f32 -1.0, %v3612_v53  ;;  %v3614_v34 = vmul.f32 2.0, %v6594_v44  ;;  %v3622_v53 = vmul.f32 %v6594_v44, %v6533_v52 }
0x2108   :  { %v4663_v1 = vadd.f32 -1.0, %v3613_v27 }
0x2109   :  { %3629 = vrot.lane.b32.xlu0 %v4662_v8, %s5355_s19  ;;  %v4664_v7 = vadd.f32 -1.0, %v3614_v34 }
0x210a   :  { %3631 = vrot.lane.b32.xlu1 %v4663_v1, %s5355_s19 }
0x2111   :  { %3633 = vrot.lane.b32.xlu0 %v4664_v7, %s5355_s19 }
0x2161   :  { %v3628_v48 = vpop.permute.xlu2 %3627 }
0x2162   :  { %v3639_v37 = vmul.f32 %v3628_v48, %v6583_v63 }
0x2164   :  { %3647 = vrot.lane.b32.xlu0 %v3639_v37, %s5368_s6 }
0x217b   :  { %v3630_v25 = vpop.permute.xlu0 %3629 }
0x217c   :  { %v3632_v22 = vpop.permute.xlu1 %3631  ;;  %v3640_v26 = vmul.f32 %v3630_v25, %v6588_v5 }
0x217d   :  { %v3641_v50 = vmul.f32 %v3632_v22, %v3594_v30 }
0x217e   :  { %3649 = vrot.lane.b32.xlu1 %v3640_v26, %s5368_s6 }
0x217f   :  { %3651 = vrot.lane.b32.xlu2 %v3641_v50, %s5368_s6 }
0x2183   :  { %v3634_v21 = vpop.permute.xlu0 %3633 }
0x2184   :  { %v3642_v29 = vmul.f32 %v3634_v21, %v6594_v44 }
0x2186   :  { %3653 = vrot.lane.b32.xlu1 %v3642_v29, %s5368_s6 }
0x21d6   :  { %v3648_v55 = vpop.permute.xlu0 %3647 }
0x21d7   :  { %v6609_v36 = vadd.f32 %v3648_v55, %v3619_v57 }
0x21d9   :  { %5069 = vtanh.f32 %v6609_v36  ;;  %v3652_v45 = vpop.permute.xlu2 %3651 }
0x21da   :  { %v6613_v51 = vadd.f32 %v3652_v45, %v3621_v6 }
0x21dc   :  { %5071 = vtanh.f32 %v6613_v51 }
0x21df   :  { %v5070_v43 = vpop.eup %5069 }
0x21e0   :  { %3671 = vrot.lane.b32.xlu1 %v5070_v43, %s5355_s19 }
0x21e2   :  { %v5072_v35 = vpop.eup %5071 }
0x21e3   :  { %3675 = vrot.lane.b32.xlu0 %v5072_v35, %s5355_s19 }
0x21e8   :  { %674 = vrot.lane.b32.xlu1 %v5560_v10, %s5368_s6 }
0x21f0   :  { %v3650_v28 = vpop.permute.xlu1 %3649  ;;  %1379 = vrot.lane.b32.xlu1 %v5787_v56, %s5368_s6 }
0x21f1   :  { %v6624_v19 = vadd.f32 %v3650_v28, %v3620_v46 }
0x21f3   :  { %5073 = vtanh.f32 %v6624_v19 }
0x21f8   :  { %v3654_v18 = vpop.permute.xlu1 %3653  ;;  %2086 = vrot.lane.b32.xlu1 %v6053_v16, %s5368_s6 }
0x21f9   :  { %v5074_v27 = vpop.eup %5073  ;;  %v6631_v10 = vadd.f32 %v3654_v18, %v3622_v53 }
0x21fa   :  { %3673 = vrot.lane.b32.xlu2 %v5074_v27, %s5355_s19 }
0x21fb   :  { %5075 = vtanh.f32 %v6631_v10 }
0x2201   :  { %v5076_v3 = vpop.eup %5075 }
0x2202   :  { %3677 = vrot.lane.b32.xlu2 %v5076_v3, %s5355_s19  ;;  %v424_v3 = vrot.slane %v6086_v60, 6 }
0x220a   :  { %911 = vrot.lane.b32.xlu2 %v5644_v41, %s5368_s6 }
0x2212   :  { %1614 = vrot.lane.b32.xlu2 %v5874_v54, %s5368_s6 }
0x221a   :  { %2322 = vrot.lane.b32.xlu2 %v6160_v17, %s5368_s6 }
0x2222   :  { %1147 = vrot.lane.b32.xlu2 %v5722_v4, %s5368_s6 }
0x2252   :  { %v3672_v56 = vpop.permute.xlu1 %3671 }
0x2253   :  { %v6650_v1 = vmul.f32 %v3672_v56, %v6583_v63  ;;  %v442_v56 = vrot.slane %v6092_v40, 3 }
0x2254   :  { %v3674_v16 = vpop.permute.xlu2 %3673 }
0x2255   :  { %v6645_v52 = vmul.f32 %v3674_v16, %v6588_v5  ;;  %v3676_v14 = vpop.permute.xlu0 %3675  ;;  %v3711_v34 = vpack.c.bf16 %v6650_v1, %v6650_v1  ;;  %v430_v16 = vrot.slane %v6088_v0, 5 }
0x2256   :  { %v6647_v8 = vmul.f32 %v3676_v14, %v3594_v30  ;;  %v436_v14 = vrot.slane %v6090_v58, 4 }
0x2257   :  { %v3712_v41 = vpack.c.bf16 %v6645_v52, %v6645_v52  ;;  %v3719_v48 = vunpack.c.l.b16 %v3711_v34 }
0x2258   :  { %v3713_v54 = vpack.c.bf16 %v6647_v8, %v6647_v8 }
0x2259   :  { %v3720_v17 = vunpack.c.l.b16 %v3712_v41 }
0x225a   :  { %v675_v4 = vpop.permute.xlu1 %674  ;;  %v3721_v5 = vunpack.c.l.b16 %v3713_v54 }
0x225b   :  { %686 = vst.msk [vmem:[#allocation2 + $0x8] sm:$0x1] %vm684_vm3, %v675_v4  ;;  %v3723_v7 = vrot.slane %v3720_v17, 7 }
0x225c   :  { %v3678_v30 = vpop.permute.xlu2 %3677  ;;  %v3725_v25 = vrot.slane %v3721_v5, 6 }
0x225d   :  { %v6660_v63 = vmul.f32 %v3678_v30, %v6594_v44  ;;  %v3724_v22 = vsel %vm702_vm6, %v3723_v7, %v3719_v48  ;;  %vm7011_vm6 = vcmask 261127  }
0x225e   :  { %v3726_v29 = vsel %vm7115_vm10, %v3725_v25, %v3724_v22 }
0x225f   :  { %v3714_v37 = vpack.c.bf16 %v6660_v63, %v6660_v63 }
0x2261   :  { %v3722_v26 = vunpack.c.l.b16 %v3714_v37 }
0x2262   :  { %v1380_v50 = vpop.permute.xlu1 %1379 }
0x2263   :  { %v3727_v21 = vrot.slane %v3722_v26, 5  ;;  %1391 = vst.msk [vmem:[#allocation2 + $0x8] sm:$0x8] %vm1389_vm4, %v1380_v50 }
0x2264   :  { %v912_v57 = vpop.permute.xlu2 %911 }
0x2265   :  { %923 = vst.msk [vmem:[#allocation2 + $0x8] sm:$0x2] %vm921_vm5, %v912_v57  ;;  %v3728_v44 = vsel %vm7116_vm14, %v3727_v21, %v3726_v29 }
0x2266   :  { %v3729_v55 = vpack.c.b16 %v3728_v44, %v3728_v44 }
0x2268   :  { %3730 = vrot.lane.b32.xlu0 %v3729_v55, %s5368_s6 }
0x226a   :  { %v2087_v6 = vpop.permute.xlu1 %2086 }
0x226b   :  { %2098 = vst.msk [vmem:[#allocation2 + $0x8] sm:$0x40] %vm2096_vm2, %v2087_v6 }
0x226c   :  { %v1615_v45 = vpop.permute.xlu2 %1614 }
0x226d   :  { %1626 = vst.msk [vmem:[#allocation2 + $0x8] sm:$0x10] %vm1624_vm11, %v1615_v45 }
0x2270   :  { %1145 = vrot.lane.b32.xlu0 %v5712_v2, %s5368_s6 }
0x2274   :  { %v2323_v43 = vpop.permute.xlu2 %2322 }
0x2275   :  { %2334 = vst.msk [vmem:[#allocation2 + $0x8] sm:$0x80] %vm7011_vm6, %v2323_v43 }
0x2278   :  { %1850 = vrot.lane.b32.xlu0 %v5961_v47, %s5368_s6 }
0x227c   :  { %v1148_v35 = vpop.permute.xlu2 %1147 }
0x227d   :  { %1158 = vst.msk [vmem:[#allocation2 + $0x10] sm:$0x4] %vm7009_vm0, %v1148_v35 }
0x2280   :  { %676 = vrot.lane.b32.xlu0 %v5573_v23, %s5368_s6 }
0x22da   :  { %v3731_v46 = vpop.permute.xlu0 %3730 }
0x22db   :  { %4665 = vmatmul.msk.bf16.vlgmr.msra.gmra.mxu0 %vm7117_vm7, %v3731_v46 }
0x22e2   :  { %v1146_v28 = vpop.permute.xlu0 %1145 }
0x22e3   :  { %1157 = vst.msk [vmem:[#allocation2 + $0x8] sm:$0x4] %vm7009_vm0, %v1146_v28 }
0x22ea   :  { %v1851_v2 = vpop.permute.xlu0 %1850 }
0x22eb   :  { %1862 = vst.msk [vmem:[#allocation2 + $0x8] sm:$0x20] %vm1860_vm8, %v1851_v2 }
0x22f2   :  { %v677_v53 = vpop.permute.xlu0 %676  ;;  %v3936_v18 = vld [vmem:[#allocation2 + $0x8] sm:$0xff] }
0x22f3   :  { %687 = vst.msk [vmem:[#allocation2 + $0x10] sm:$0x1] %vm684_vm3, %v677_v53  ;;  %v3948_v47 = vpack.c.bf16 %v3936_v18, %v3936_v18 }
0x22f5   :  { %v3974_v27 = vsel %vm7118_vm12, %v3948_v47, 0  ;;  %v4099_v23 = vsel %vm7010_vm9, %v3948_v47, 0 }
0x22f6   :  { %3983 = vmatpush.bf16.xpose.msra.mxu2 %v3974_v27 }
0x22fe   :  { %4108 = vmatpush.bf16.msrb.mxu2 %v4099_v23 }
0x2358   :  { %v3744_v41 = vpop.f32.mrf.mxu0 }
0x2359   :  { %v3749_v54 = vrot.slane %v3744_v41, 1  ;;  %v3750_v17 = vrot.slane %v3744_v41, 2  ;;  %v3751_v4 = vrot.slane %v3744_v41, 3  ;;  %v3755_v34 = vadd.f32 %v3744_v41, %v424_v3 }
0x235b   :  { %v3756_v5 = vadd.f32 %v3749_v54, %v430_v16  ;;  %v3757_v30 = vadd.f32 %v3750_v17, %v436_v14  ;;  %v3758_v7 = vadd.f32 %v3751_v4, %v442_v56  ;;  %v4666_v48 = vmul.f32 -1.442695, %v3755_v34 }
0x235d   :  { %5077 = vpow2.f32 %v4666_v48  ;;  %v4667_v37 = vmul.f32 -1.442695, %v3756_v5  ;;  %v4668_v25 = vmul.f32 -1.442695, %v3757_v30  ;;  %v4669_v60 = vmul.f32 -1.442695, %v3758_v7 }
0x235f   :  { %5079 = vpow2.f32 %v4667_v37 }
0x2360   :  { %5081 = vpow2.f32 %v4668_v25  ;;  %v3746_v40 = vpop.f32.mrf.mxu0 }
0x2361   :  { %5083 = vpow2.f32 %v4669_v60 }
0x2363   :  { %v5078_v22 = vpop.eup %5077 }
0x2364   :  { %v3771_v0 = vadd.f32 1.0, %v5078_v22 }
0x2365   :  { %v5080_v58 = vpop.eup %5079 }
0x2366   :  { %v5082_v26 = vpop.eup %5081  ;;  %v3772_v50 = vadd.f32 1.0, %v5080_v58  ;;  %5085 = vrcp.f32 %v3771_v0  ;;  %v3786_v46 = vand.u32 2147483648, %v3771_v0  ;;  %v3784_v53 = vand.u32 2147483647, %v3771_v0 }
0x2367   :  { %v3773_v21 = vadd.f32 1.0, %v5082_v26  ;;  %v5084_v29 = vpop.eup %5083  ;;  %vm3780_vm15 = vweird.f32 %v3771_v0 }
0x2368   :  { %5087 = vrcp.f32 %v3772_v50  ;;  %v6690_v44 = vadd.f32 1.0, %v5084_v29  ;;  %v3801_v23 = vand.u32 2147483648, %v3772_v50  ;;  %v3799_v16 = vand.u32 2147483647, %v3772_v50 }
0x2369   :  { %5089 = vrcp.f32 %v3773_v21  ;;  %v3816_v27 = vand.u32 2147483648, %v3773_v21  ;;  %v3787_v14 = vor.u32 1.1754944e-38, %v3786_v46  ;;  %v3814_v54 = vand.u32 2147483647, %v3773_v21 }
0x236a   :  { %5091 = vrcp.f32 %v6690_v44  ;;  %vm3785_vm7 = vcmp.eq.f32.partialorder %v3784_v53, 8.507059e+37  ;;  %vm3795_vm12 = vweird.f32 %v3772_v50  ;;  %vm3810_vm0 = vweird.f32 %v3773_v21 }
0x236b   :  { %v3802_v7 = vor.u32 1.1754944e-38, %v3801_v23  ;;  %v3817_v37 = vor.u32 1.1754944e-38, %v3816_v27  ;;  %v3469_v23 = vperm.slane %v6545_v38, 0 }
0x236c   :  { %v5086_v57 = vpop.eup %5085 }
0x236d   :  { %v3776_v55 = vmul.f32 %v5086_v57, %v3771_v0  ;;  %vm3781_vm13 = vweird.f32 %v5086_v57 }
0x236e   :  { %v5088_v6 = vpop.eup %5087  ;;  %vm3782_vm10 = vmor %vm3780_vm15, %vm3781_vm13  ;;  %vm3800_vm13 = vcmp.eq.f32.partialorder %v3799_v16, 8.507059e+37  ;;  %vm3815_vm15 = vcmp.eq.f32.partialorder %v3814_v54, 8.507059e+37 }
0x236f   :  { %v5090_v45 = vpop.eup %5089  ;;  %v3777_v43 = vsub.f32 1.0, %v3776_v55  ;;  %v3791_v35 = vmul.f32 %v5088_v6, %v3772_v50  ;;  %vm3796_vm1 = vweird.f32 %v5088_v6 }
0x2370   :  { %v3806_v28 = vmul.f32 %v5090_v45, %v3773_v21  ;;  %vm3811_vm14 = vweird.f32 %v5090_v45  ;;  %v5092_v34 = vpop.eup %5091  ;;  %vm3797_vm9 = vmor %vm3795_vm12, %vm3796_vm1  ;;  %vm7129_vm12 = vcmask 256002  }
0x2371   :  { %v3778_v2 = vmul.f32 %v5086_v57, %v3777_v43  ;;  %v3792_v18 = vsub.f32 1.0, %v3791_v35  ;;  %vm3812_vm6 = vmor %vm3810_vm0, %vm3811_vm14  ;;  %v3821_v26 = vmul.f32 %v5092_v34, %v6690_v44  ;;  %vm3825_vm0 = vweird.f32 %v6690_v44 }
0x2372   :  { %v3807_v47 = vsub.f32 1.0, %v3806_v28  ;;  %v3829_v43 = vand.u32 2147483647, %v6690_v44  ;;  %vm7127_vm14 = vcmask 261120  }
0x2373   :  { %v3779_v3 = vadd.f32 %v5086_v57, %v3778_v2  ;;  %v3793_v56 = vmul.f32 %v5088_v6, %v3792_v18  ;;  %v3244_v2 = vperm.slane %v6466_v11, 0 }
0x2374   :  { %v3808_v41 = vmul.f32 %v5090_v45, %v3807_v47  ;;  %vm3830_vm1 = vcmp.eq.f32.partialorder %v3829_v43, 8.507059e+37  ;;  %v2797_v47 = vperm.slane %v6314_v32, 0 }
0x2375   :  { %v3783_v17 = vsel %vm3782_vm10, %v5086_v57, %v3779_v3  ;;  %v3794_v4 = vadd.f32 %v5088_v6, %v3793_v56  ;;  %v3822_v57 = vsub.f32 1.0, %v3821_v26  ;;  %v7120_v56 = vld [vmem:[#allocation30_spill] sm:$0xff]  ;;  %vm7123_vm10 = vcmask 261127  }
0x2376   :  { %v6693_v5 = vsel %vm3785_vm7, %v3787_v14, %v3783_v17  ;;  %v3809_v30 = vadd.f32 %v5090_v45, %v3808_v41  ;;  %v7121_v14 = vld [vmem:[#allocation28_spill] sm:$0xff]  ;;  %v7122_v17 = vld [vmem:[#allocation35_spill] sm:$0xff]  ;;  %vm7128_vm7 = vcmask 1043456  }
0x2377   :  { %v3835_v48 = vmul.f32 2.0, %v6693_v5  ;;  %v3798_v25 = vsel %vm3797_vm9, %v5088_v6, %v3794_v4  ;;  %v3823_v55 = vmul.f32 %v5092_v34, %v3822_v57  ;;  %v2573_v4 = vperm.slane %v7122_v17, 0  ;;  %v7141_v17 = vld [vmem:[#allocation32_spill] sm:$0xff] }
0x2378   :  { %v3813_v60 = vsel %vm3812_vm6, %v5090_v45, %v3809_v30  ;;  %v6697_v40 = vsel %vm3800_vm13, %v3802_v7, %v3798_v25  ;;  %vm3826_vm6 = vweird.f32 %v5092_v34  ;;  %v3831_v45 = vand.u32 2147483648, %v6690_v44  ;;  %v7125_v7 = vld [vmem:[#allocation40_spill] sm:$0xff]  ;;  %vm7139_vm13 = vmmov %vm7123_vm10 }
0x2379   :  { %v4670_v22 = vadd.f32 -1.0, %v3835_v48  ;;  %v6699_v0 = vsel %vm3815_vm15, %v3817_v37, %v3813_v60  ;;  %v3836_v58 = vmul.f32 2.0, %v6697_v40  ;;  %v3824_v6 = vadd.f32 %v5092_v34, %v3823_v55  ;;  %vm3827_vm9 = vmor %vm3825_vm0, %vm3826_vm6  ;;  %v7126_v60 = vld [vmem:[#allocation43_spill] sm:$0xff] }
0x237a   :  { %v3837_v50 = vmul.f32 2.0, %v6699_v0  ;;  %v3832_v46 = vor.u32 1.1754944e-38, %v3831_v45  ;;  %v2796_v44 = vperm.slane %v6312_v13, 0  ;;  %v3021_v48 = vperm.slane %v7125_v7, 0  ;;  %v7143_v7 = vld [vmem:[#allocation39_spill] sm:$0xff]  ;;  %vm7144_vm15 = vmmov %vm7127_vm14 }
0x237b   :  { %3851 = vrot.lane.b32.xlu0 %v4670_v22, %s5355_s19  ;;  %v4671_v21 = vadd.f32 -1.0, %v3836_v58  ;;  %v3828_v35 = vsel %vm3827_vm9, %v5092_v34, %v3824_v6  ;;  %v7124_v34 = vld [vmem:[#allocation33_spill] sm:$0xff]  ;;  %v3245_v22 = vperm.slane %v7126_v60, 0  ;;  %vm7145_vm6 = vmmov %vm7128_vm7  ;;  %v7146_v60 = vld [vmem:[#allocation47_spill] sm:$0xff] }
0x237c   :  { %v4672_v29 = vadd.f32 -1.0, %v3837_v50  ;;  %vm7151_vm0 = vmmov %vm7129_vm12 }
0x237d   :  { %3853 = vrot.lane.b32.xlu1 %v4671_v21, %s5355_s19  ;;  %v3844_v21 = vmul.f32 %v6697_v40, %v6624_v19  ;;  %v7130_v19 = vld [vmem:[#allocation36_spill] sm:$0xff] }
0x237e   :  { %3855 = vrot.lane.b32.xlu2 %v4672_v29, %s5355_s19  ;;  %v3845_v29 = vmul.f32 %v6699_v0, %v6613_v51  ;;  %v2571_v51 = vperm.slane %v7130_v19, 0 }
0x2383   :  { %1381 = vrot.lane.b32.xlu0 %v5791_v59, %s5368_s6  ;;  %v6719_v59 = vsel %vm3830_vm1, %v3832_v46, %v3828_v35 }
0x2385   :  { %913 = vrot.lane.b32.xlu1 %v5641_v39, %s5368_s6  ;;  %v2572_v39 = vperm.slane %v6235_v20, 0 }
0x2386   :  { %1852 = vrot.lane.b32.xlu2 %v5965_v33, %s5368_s6  ;;  %v3838_v33 = vmul.f32 2.0, %v6719_v59 }
0x2388   :  { %v4673_v28 = vadd.f32 -1.0, %v3838_v33 }
0x238b   :  { %2088 = vrot.lane.b32.xlu0 %v6058_v49, %s5368_s6  ;;  %v3468_v49 = vperm.slane %v6543_v62, 0 }
0x238d   :  { %1616 = vrot.lane.b32.xlu1 %v5878_v24, %s5368_s6  ;;  %v3020_v24 = vperm.slane %v6389_v42, 0 }
0x238e   :  { %2577 = vrot.lane.b32.xlu2 %v2572_v39, %s5368_s6 }
0x2393   :  { %2801 = vrot.lane.b32.xlu0 %v2796_v44, %s5368_s6  ;;  %v3693_v44 = vperm.slane %v6647_v8, 0 }
0x2395   :  { %3857 = vrot.lane.b32.xlu1 %v4673_v28, %s5355_s19 }
0x2396   :  { %3249 = vrot.lane.b32.xlu2 %v3244_v2, %s5368_s6  ;;  %v3843_v2 = vmul.f32 %v6693_v5, %v6609_v36 }
0x239b   :  { %3473 = vrot.lane.b32.xlu0 %v3468_v49, %s5368_s6 }
0x239d   :  { %2324 = vrot.lane.b32.xlu1 %v6165_v31, %s5368_s6 }
0x23a3   :  { %672 = vrot.lane.b32.xlu0 %v5563_v12, %s5368_s6 }
0x23a5   :  { %3025 = vrot.lane.b32.xlu1 %v3020_v24, %s5368_s6 }
0x23d8   :  { %v3856_v20 = vpop.permute.xlu2 %3855 }
0x23d9   :  { %v3865_v13 = vmul.f32 %v3856_v20, %v6699_v0  ;;  %v3846_v20 = vmul.f32 %v6719_v59, %v6631_v10 }
0x23db   :  { %3875 = vrot.lane.b32.xlu0 %v3865_v13, %s5368_s6  ;;  %v7131_v13 = vld [vmem:[#allocation44_spill] sm:$0xff] }
0x23e0   :  { %v1853_v11 = vpop.permute.xlu2 %1852 }
0x23e1   :  { %1863 = vst.msk [vmem:[#allocation2 + $0x10] sm:$0x20] %vm1860_vm8, %v1853_v11  ;;  %v3243_v11 = vperm.slane %v7131_v13, 0 }
0x23e3   :  { %1377 = vrot.lane.b32.xlu0 %v5785_v15, %s5368_s6 }
0x23e8   :  { %v2578_v62 = vpop.permute.xlu2 %2577 }
0x23e9   :  { %2588 = vst.msk [vmem:[#allocation3 + $0x8] sm:$0x1] %vm684_vm3, %v2578_v62  ;;  %v7132_v62 = vld [vmem:[#allocation38_spill] sm:$0xff] }
0x23eb   :  { %2084 = vrot.lane.b32.xlu0 %v6050_v9, %s5368_s6  ;;  %v3692_v9 = vperm.slane %v6645_v52, 0  ;;  %v7119_v52 = vld [vmem:[#allocation24_spill] sm:$0xff] }
0x23ed   :  { %v3852_v12 = vpop.permute.xlu0 %3851 }
0x23ee   :  { %v3863_v31 = vmul.f32 %v3852_v12, %v6693_v5  ;;  %v2795_v12 = vperm.slane %v7132_v62, 0 }
0x23ef   :  { %v3854_v42 = vpop.permute.xlu1 %3853 }
0x23f0   :  { %v3250_v53 = vpop.permute.xlu2 %3249  ;;  %v3864_v18 = vmul.f32 %v3854_v42, %v6697_v40  ;;  %3871 = vrot.lane.b32.xlu1 %v3863_v31, %s5368_s6 }
0x23f1   :  { %3260 = vst.msk [vmem:[#allocation3 + $0xb] sm:$0x1] %vm684_vm3, %v3250_v53 }
0x23f2   :  { %3873 = vrot.lane.b32.xlu2 %v3864_v18, %s5368_s6 }
0x23f3   :  { %2803 = vrot.lane.b32.xlu0 %v2797_v47, %s5368_s6  ;;  %v7133_v47 = vld [vmem:[#allocation46_spill] sm:$0xff] }
0x23f5   :  { %v1382_v15 = vpop.permute.xlu0 %1381 }
0x23f6   :  { %1392 = vst.msk [vmem:[#allocation2 + $0x10] sm:$0x8] %vm1389_vm4, %v1382_v15  ;;  %v3467_v15 = vperm.slane %v7133_v47, 0 }
0x23f7   :  { %v914_v27 = vpop.permute.xlu1 %913 }
0x23f8   :  { %924 = vst.msk [vmem:[#allocation2 + $0x10] sm:$0x2] %vm921_vm5, %v914_v27  ;;  %3697 = vrot.lane.b32.xlu1 %v3692_v9, %s5368_s6  ;;  %v7134_v27 = vld [vmem:[#allocation41_spill] sm:$0xff] }
0x23fa   :  { %1143 = vrot.lane.b32.xlu2 %v5710_v61, %s5368_s6 }
0x23fb   :  { %3475 = vrot.lane.b32.xlu0 %v3469_v23, %s5368_s6  ;;  %v3019_v23 = vperm.slane %v7134_v27, 0 }
0x23fd   :  { %v2089_v32 = vpop.permute.xlu0 %2088 }
0x23fe   :  { %2099 = vst.msk [vmem:[#allocation2 + $0x10] sm:$0x40] %vm2096_vm2, %v2089_v32 }
0x23ff   :  { %v1617_v3 = vpop.permute.xlu1 %1616 }
0x2400   :  { %1627 = vst.msk [vmem:[#allocation2 + $0x10] sm:$0x10] %vm1624_vm11, %v1617_v3  ;;  %909 = vrot.lane.b32.xlu1 %v7119_v52, %s5368_s6  ;;  %v7135_v52 = vld [vmem:[#allocation26_spill] sm:$0xff] }
0x2402   :  { %1848 = vrot.lane.b32.xlu2 %v7120_v56, %s5368_s6  ;;  %v7136_v56 = vld [vmem:[#allocation23_spill] sm:$0xff] }
0x2405   :  { %v2802_v16 = vpop.permute.xlu0 %2801 }
0x2406   :  { %2812 = vst.msk [vmem:[#allocation3 + $0x9] sm:$0x1] %vm684_vm3, %v2802_v16  ;;  %v3691_v16 = vperm.slane %v6650_v1, 0 }
0x2407   :  { %v3858_v38 = vpop.permute.xlu1 %3857 }
0x2408   :  { %v3866_v61 = vmul.f32 %v3858_v38, %v6719_v59  ;;  %1612 = vrot.lane.b32.xlu1 %v7121_v14, %s5368_s6  ;;  %v7138_v14 = vld [vmem:[#allocation27_spill] sm:$0xff] }
0x240a   :  { %3877 = vrot.lane.b32.xlu2 %v3866_v61, %s5368_s6  ;;  %v7137_v61 = vld [vmem:[#allocation31_spill] sm:$0xff] }
0x240d   :  { %v3474_v41 = vpop.permute.xlu0 %3473 }
0x240e   :  { %3484 = vst.msk [vmem:[#allocation3 + $0xc] sm:$0x1] %vm684_vm3, %v3474_v41 }
0x240f   :  { %v2325_v54 = vpop.permute.xlu1 %2324 }
0x2410   :  { %2335 = vst.msk [vmem:[#allocation2 + $0x10] sm:$0x80] %vm7123_vm10, %v2325_v54  ;;  %2320 = vrot.lane.b32.xlu1 %v7124_v34, %s5368_s6  ;;  %v7140_v54 = vld [vmem:[#allocation25_spill] sm:$0xff] }
0x2412   :  { %2579 = vrot.lane.b32.xlu2 %v2573_v4, %s5368_s6 }
0x2415   :  { %v673_v30 = vpop.permute.xlu0 %672 }
0x2416   :  { %685 = vst.msk [vmem:[#allocation2] sm:$0x1] %vm684_vm3, %v673_v30  ;;  %v7142_v30 = vld [vmem:[#allocation29_spill] sm:$0xff] }
0x2417   :  { %v3026_v37 = vpop.permute.xlu1 %3025  ;;  %v3937_v25 = vld [vmem:[#allocation2 + $0x10] sm:$0xff] }
0x2418   :  { %3036 = vst.msk [vmem:[#allocation3 + $0xa] sm:$0x1] %vm684_vm3, %v3026_v37  ;;  %3027 = vrot.lane.b32.xlu1 %v3021_v48, %s5368_s6  ;;  %v3949_v58 = vpack.c.bf16 %v3937_v25, %v3937_v25  ;;  %v2798_v48 = vperm.slane %v7143_v7, 0 }
0x241a   :  { %3251 = vrot.lane.b32.xlu2 %v3245_v22, %s5368_s6  ;;  %v3993_v26 = vsel %vm7127_vm14, %v3949_v58, 0  ;;  %v4117_v50 = vsel %vm7128_vm7, %v3949_v58, 0  ;;  %v3470_v22 = vperm.slane %v7146_v60, 0 }
0x241b   :  { %4002 = vmatpush.bf16.xpose.msrb.mxu3 %v3993_v26 }
0x2423   :  { %4126 = vmatpush.bf16.msra.mxu3 %v4117_v50 }
0x244c   :  { %v3874_v57 = vpop.permute.xlu2 %3873 }
0x244d   :  { %v3876_v55 = vpop.permute.xlu0 %3875  ;;  %v3884_v6 = vadd.f32 %v3874_v57, %v3844_v21 }
0x244e   :  { %v3885_v45 = vadd.f32 %v3876_v55, %v3845_v29 }
0x244f   :  { %5093 = vtanh.f32 %v3884_v6 }
0x2450   :  { %5095 = vtanh.f32 %v3885_v45 }
0x2454   :  { %v1144_v43 = vpop.permute.xlu2 %1143 }
0x2455   :  { %v5094_v35 = vpop.eup %5093  ;;  %v1378_v46 = vpop.permute.xlu0 %1377  ;;  %1156 = vst.msk [vmem:[#allocation2] sm:$0x4] %vm7129_vm12, %v1144_v43 }
0x2456   :  { %v5096_v39 = vpop.eup %5095  ;;  %1390 = vst.msk [vmem:[#allocation2] sm:$0x8] %vm1389_vm4, %v1378_v46  ;;  %3897 = vrot.lane.b32.xlu0 %v5094_v35, %s5355_s19  ;;  %v7147_v35 = vld [vmem:[#allocation37_spill] sm:$0xff] }
0x2457   :  { %3899 = vrot.lane.b32.xlu1 %v5096_v39, %s5355_s19  ;;  %v2574_v46 = vperm.slane %v7147_v35, 0 }
0x245c   :  { %v1849_v33 = vpop.permute.xlu2 %1848 }
0x245d   :  { %v2085_v28 = vpop.permute.xlu0 %2084  ;;  %1861 = vst.msk [vmem:[#allocation2] sm:$0x20] %vm1860_vm8, %v1849_v33 }
0x245e   :  { %2097 = vst.msk [vmem:[#allocation2] sm:$0x40] %vm2096_vm2, %v2085_v28  ;;  %2575 = vrot.lane.b32.xlu0 %v2571_v51, %s5368_s6 }
0x245f   :  { %3699 = vrot.lane.b32.xlu1 %v3693_v44, %s5368_s6  ;;  %v7149_v44 = vld [vmem:[#allocation34_spill] sm:$0xff] }
0x2462   :  { %v3872_v49 = vpop.permute.xlu1 %3871 }
0x2463   :  { %v3883_v24 = vadd.f32 %v3872_v49, %v3843_v2 }
0x2464   :  { %v3878_v8 = vpop.permute.xlu2 %3877 }
0x2465   :  { %5097 = vtanh.f32 %v3883_v24  ;;  %v2804_v31 = vpop.permute.xlu0 %2803  ;;  %v3886_v42 = vadd.f32 %v3878_v8, %v3846_v20  ;;  %v7150_v20 = vld [vmem:[#allocation42_spill] sm:$0xff] }
0x2466   :  { %2813 = vst.msk [vmem:[#allocation3 + $0x11] sm:$0x1] %vm684_vm3, %v2804_v31  ;;  %3247 = vrot.lane.b32.xlu0 %v3243_v11, %s5368_s6  ;;  %v3022_v13 = vperm.slane %v7150_v20, 0 }
0x2467   :  { %5099 = vtanh.f32 %v3886_v42  ;;  %2799 = vrot.lane.b32.xlu1 %v2795_v12, %s5368_s6 }
0x246a   :  { %v3698_v36 = vpop.permute.xlu1 %3697 }
0x246b   :  { %v5098_v53 = vpop.eup %5097  ;;  %3708 = vst.msk [vmem:[#allocation3 + $0xd] sm:$0x1] %vm684_vm3, %v3698_v36 }
0x246c   :  { %v2580_v10 = vpop.permute.xlu2 %2579  ;;  %3895 = vrot.lane.b32.xlu2 %v5098_v53, %s5355_s19 }
0x246d   :  { %v5100_v18 = vpop.eup %5099  ;;  %v3476_v9 = vpop.permute.xlu0 %3475  ;;  %2589 = vst.msk [vmem:[#allocation3 + $0x10] sm:$0x1] %vm684_vm3, %v2580_v10 }
0x246e   :  { %3485 = vst.msk [vmem:[#allocation3 + $0x14] sm:$0x1] %vm684_vm3, %v3476_v9  ;;  %3901 = vrot.lane.b32.xlu0 %v5100_v18, %s5355_s19 }
0x246f   :  { %3471 = vrot.lane.b32.xlu1 %v3467_v15, %s5368_s6 }
0x2472   :  { %v910_v32 = vpop.permute.xlu1 %909 }
0x2473   :  { %922 = vst.msk [vmem:[#allocation2] sm:$0x2] %vm921_vm5, %v910_v32 }
0x2474   :  { %v3252_v3 = vpop.permute.xlu2 %3251  ;;  %3023 = vrot.lane.b32.xlu2 %v3019_v23, %s5368_s6 }
0x2475   :  { %3261 = vst.msk [vmem:[#allocation3 + $0x13] sm:$0x1] %vm684_vm3, %v3252_v3 }
0x2476   :  { %1149 = vrot.lane.b32.xlu0 %v7135_v52, %s5368_s6 }
0x2477   :  { %678 = vrot.lane.b32.xlu1 %v7136_v56, %s5368_s6 }
0x247a   :  { %v1613_v38 = vpop.permute.xlu1 %1612 }
0x247b   :  { %1625 = vst.msk [vmem:[#allocation2] sm:$0x10] %vm1624_vm11, %v1613_v38 }
0x247c   :  { %3695 = vrot.lane.b32.xlu2 %v3691_v16, %s5368_s6 }
0x247e   :  { %1854 = vrot.lane.b32.xlu0 %v7137_v61, %s5368_s6 }
0x247f   :  { %1383 = vrot.lane.b32.xlu1 %v7138_v14, %s5368_s6 }
0x2482   :  { %v2321_v41 = vpop.permute.xlu1 %2320 }
0x2483   :  { %2333 = vst.msk [vmem:[#allocation2] sm:$0x80] %vm7139_vm13, %v2321_v41 }
0x2484   :  { %915 = vrot.lane.b32.xlu2 %v7140_v54, %s5368_s6 }
0x2487   :  { %2090 = vrot.lane.b32.xlu1 %v7141_v17, %s5368_s6 }
0x248a   :  { %v3028_v1 = vpop.permute.xlu1 %3027  ;;  %v3935_v4 = vld [vmem:[#allocation2] sm:$0xff] }
0x248b   :  { %3037 = vst.msk [vmem:[#allocation3 + $0x12] sm:$0x1] %vm684_vm3, %v3028_v1  ;;  %v3947_v34 = vpack.c.bf16 %v3935_v4, %v3935_v4 }
0x248c   :  { %1618 = vrot.lane.b32.xlu2 %v7142_v30, %s5368_s6 }
0x248d   :  { %v3955_v37 = vsel %vm7144_vm15, %v3947_v34, 0  ;;  %v4081_v25 = vsel %vm7145_vm6, %v3947_v34, 0 }
0x248e   :  { %3964 = vmatpush.bf16.xpose.msrb.mxu1 %v3955_v37 }
0x248f   :  { %2805 = vrot.lane.b32.xlu1 %v2798_v48, %s5368_s6 }
0x2496   :  { %4090 = vmatpush.bf16.msra.mxu1 %v4081_v25 }
0x2497   :  { %3477 = vrot.lane.b32.xlu1 %v3470_v22, %s5368_s6 }
0x24c6   :  { %v3896_v58 = vpop.permute.xlu2 %3895 }
0x24c7   :  { %v3907_v26 = vmul.f32 %v3896_v58, %v6693_v5 }
0x24c8   :  { %v3898_v50 = vpop.permute.xlu0 %3897 }
0x24c9   :  { %v3915_v21 = vperm.slane %v3907_v26, 0  ;;  %v3908_v29 = vmul.f32 %v3898_v50, %v6697_v40  ;;  %v3900_v57 = vpop.permute.xlu1 %3899 }
0x24ca   :  { %v3909_v45 = vmul.f32 %v3900_v57, %v6699_v0  ;;  %v7148_v0 = vld [vmem:[#allocation45_spill] sm:$0xff] }
0x24cb   :  { %v3916_v55 = vperm.slane %v3908_v29, 0  ;;  %3919 = vrot.lane.b32.xlu0 %v3915_v21, %s5368_s6  ;;  %v3246_v51 = vperm.slane %v7148_v0, 0 }
0x24cc   :  { %v3917_v40 = vperm.slane %v3909_v45, 0 }
0x24cd   :  { %3921 = vrot.lane.b32.xlu2 %v3916_v55, %s5368_s6 }
0x24ce   :  { %v3024_v6 = vpop.permute.xlu2 %3023 }
0x24cf   :  { %3035 = vst.msk [vmem:[#allocation3 + $0x2] sm:$0x1] %vm684_vm3, %v3024_v6 }
0x24d0   :  { %v2576_v43 = vpop.permute.xlu0 %2575 }
0x24d1   :  { %2587 = vst.msk [vmem:[#allocation3] sm:$0x1] %vm684_vm3, %v2576_v43  ;;  %v3700_v5 = vpop.permute.xlu1 %3699 }
0x24d2   :  { %3709 = vst.msk [vmem:[#allocation3 + $0x15] sm:$0x1] %vm684_vm3, %v3700_v5 }
0x24d3   :  { %2581 = vrot.lane.b32.xlu0 %v2574_v46, %s5368_s6 }
0x24d5   :  { %3923 = vrot.lane.b32.xlu2 %v3917_v40, %s5368_s6 }
0x24d6   :  { %v3696_v39 = vpop.permute.xlu2 %3695 }
0x24d7   :  { %3707 = vst.msk [vmem:[#allocation3 + $0x5] sm:$0x1] %vm684_vm3, %v3696_v39 }
0x24d8   :  { %v3248_v19 = vpop.permute.xlu0 %3247 }
0x24d9   :  { %3259 = vst.msk [vmem:[#allocation3 + $0x3] sm:$0x1] %vm684_vm3, %v3248_v19  ;;  %v2800_v33 = vpop.permute.xlu1 %2799 }
0x24da   :  { %2811 = vst.msk [vmem:[#allocation3 + $0x1] sm:$0x1] %vm684_vm3, %v2800_v33 }
0x24db   :  { %3253 = vrot.lane.b32.xlu0 %v3246_v51, %s5368_s6 }
0x24dd   :  { %2326 = vrot.lane.b32.xlu2 %v7149_v44, %s5368_s6 }
0x24de   :  { %v916_v28 = vpop.permute.xlu2 %915 }
0x24df   :  { %925 = vst.msk [vmem:[#allocation2 + $0x18] sm:$0x2] %vm921_vm5, %v916_v28  ;;  %vm7153_vm5 = vmmov %vm7123_vm10  ;;  %vm4027_vm10 = vcmask 63488  }
0x24e0   :  { %v3902_v2 = vpop.permute.xlu0 %3901 }
0x24e1   :  { %v3910_v49 = vmul.f32 %v3902_v2, %v6719_v59  ;;  %v3472_v24 = vpop.permute.xlu1 %3471  ;;  %v3694_v59 = vperm.slane %v6660_v63, 0 }
0x24e2   :  { %3483 = vst.msk [vmem:[#allocation3 + $0x4] sm:$0x1] %vm684_vm3, %v3472_v24 }
0x24e3   :  { %v3918_v11 = vperm.slane %v3910_v49, 0 }
0x24e5   :  { %3925 = vrot.lane.b32.xlu0 %v3918_v11, %s5368_s6  ;;  %3029 = vrot.lane.b32.xlu2 %v3022_v13, %s5368_s6 }
0x24e6   :  { %v1619_v8 = vpop.permute.xlu2 %1618 }
0x24e7   :  { %1628 = vst.msk [vmem:[#allocation2 + $0x18] sm:$0x10] %vm1624_vm11, %v1619_v8 }
0x24e8   :  { %v1150_v62 = vpop.permute.xlu0 %1149 }
0x24e9   :  { %1159 = vst.msk [vmem:[#allocation2 + $0x18] sm:$0x4] %vm7151_vm0, %v1150_v62  ;;  %v679_v12 = vpop.permute.xlu1 %678 }
0x24ea   :  { %688 = vst.msk [vmem:[#allocation2 + $0x18] sm:$0x1] %vm684_vm3, %v679_v12 }
0x24ed   :  { %3701 = vrot.lane.b32.xlu2 %v3694_v59, %s5368_s6 }
0x24f0   :  { %v1855_v31 = vpop.permute.xlu0 %1854 }
0x24f1   :  { %1864 = vst.msk [vmem:[#allocation2 + $0x18] sm:$0x20] %vm1860_vm8, %v1855_v31  ;;  %v1384_v42 = vpop.permute.xlu1 %1383  ;;  %vm7156_vm8 = vmmov %vm7145_vm6 }
0x24f2   :  { %1393 = vst.msk [vmem:[#allocation2 + $0x18] sm:$0x8] %vm1389_vm4, %v1384_v42  ;;  %vm7152_vm4 = vmmov %vm7127_vm14 }
0x24f9   :  { %v2091_v36 = vpop.permute.xlu1 %2090 }
0x24fa   :  { %2100 = vst.msk [vmem:[#allocation2 + $0x18] sm:$0x40] %vm2096_vm2, %v2091_v36  ;;  %vm7154_vm2 = vmmov %vm7152_vm4 }
0x24fb   :  { %vm7155_vm11 = vmmov %vm7154_vm2 }
0x24fc   :  { %vm7157_vm9 = vmmov %vm7154_vm2 }
0x24fd   :  { %vm7158_vm1 = vmmov %vm7154_vm2 }
0x24fe   :  { %vm7159_vm14 = vmmov %vm7158_vm1 }
0x24ff   :  { %vm7160_vm7 = vmmov %vm7158_vm1 }
0x2500   :  { %vm7161_vm12 = vmmov %vm7158_vm1 }
0x2501   :  { %v2806_v53 = vpop.permute.xlu1 %2805  ;;  %vm7162_vm13 = vmmov %vm7158_vm1 }
0x2502   :  { %2814 = vst.msk [vmem:[#allocation3 + $0x19] sm:$0x1] %vm684_vm3, %v2806_v53  ;;  %vm7163_vm15 = vmmov %vm7158_vm1 }
0x2503   :  { %vm7164_vm6 = vmmov %vm7158_vm1 }
0x2509   :  { %v3478_v10 = vpop.permute.xlu1 %3477 }
0x250a   :  { %3486 = vst.msk [vmem:[#allocation3 + $0x1c] sm:$0x1] %vm684_vm3, %v3478_v10 }
0x2527   :  { %v3922_v18 = vpop.permute.xlu2 %3921 }
0x2528   :  { %3932 = vst.msk [vmem:[#allocation3 + $0xe] sm:$0x1] %vm684_vm3, %v3922_v18 }
0x252f   :  { %v3924_v63 = vpop.permute.xlu2 %3923  ;;  %v6880_v47 = vld [vmem:[#allocation3 + $0x8] sm:$0x7f] }
0x2530   :  { %3933 = vst.msk [vmem:[#allocation3 + $0x16] sm:$0x1] %vm684_vm3, %v3924_v63  ;;  %v3944_v15 = vpack.c.bf16 %v6880_v47, %v6880_v47 }
0x2532   :  { %4675 = vmatmul.msk.bf16.vlgmr.msra.gmra.mxu2 %vm7152_vm4, %v3944_v15 }
0x2537   :  { %v2327_v9 = vpop.permute.xlu2 %2326  ;;  %v6886_v27 = vld [vmem:[#allocation3 + $0x10] sm:$0x7f] }
0x2538   :  { %2336 = vst.msk [vmem:[#allocation2 + $0x18] sm:$0x80] %vm7153_vm5, %v2327_v9  ;;  %v3945_v23 = vpack.c.bf16 %v6886_v27, %v6886_v27 }
0x253a   :  { %4676 = vmatmul.msk.bf16.vlgmr.msrb.gmra.mxu3 %vm7154_vm2, %v3945_v23 }
0x253d   :  { %v3920_v32 = vpop.permute.xlu0 %3919 }
0x253e   :  { %3931 = vst.msk [vmem:[#allocation3 + $0x6] sm:$0x1] %vm684_vm3, %v3920_v32 }
0x253f   :  { %v3030_v3 = vpop.permute.xlu2 %3029  ;;  %v3938_v52 = vld [vmem:[#allocation2 + $0x18] sm:$0xff] }
0x2540   :  { %3038 = vst.msk [vmem:[#allocation3 + $0x1a] sm:$0x1] %vm684_vm3, %v3030_v3  ;;  %v3950_v56 = vpack.c.bf16 %v3938_v52, %v3938_v52 }
0x2542   :  { %v4012_v16 = vsel %vm7155_vm11, %v3950_v56, 0  ;;  %v4135_v38 = vsel %vm7156_vm8, %v3950_v56, 0 }
0x2543   :  { %4021 = vmatpush.bf16.xpose.msrb.mxu0 %v4012_v16 }
0x2545   :  { %v2582_v61 = vpop.permute.xlu0 %2581  ;;  %v6896_v14 = vld [vmem:[#allocation3] sm:$0x7f] }
0x2546   :  { %2590 = vst.msk [vmem:[#allocation3 + $0x18] sm:$0x1] %vm684_vm3, %v2582_v61  ;;  %v3943_v41 = vpack.c.bf16 %v6896_v14, %v6896_v14 }
0x2547   :  { %v3702_v54 = vpop.permute.xlu2 %3701 }
0x2548   :  { %3710 = vst.msk [vmem:[#allocation3 + $0x1d] sm:$0x1] %vm684_vm3, %v3702_v54  ;;  %4674 = vmatmul.msk.bf16.vlgmr.msrb.gmra.mxu1 %vm7157_vm9, %v3943_v41 }
0x254b   :  { %4144 = vmatpush.bf16.msra.mxu0 %v4135_v38 }
0x254d   :  { %v3254_v17 = vpop.permute.xlu0 %3253 }
0x254e   :  { %3262 = vst.msk [vmem:[#allocation3 + $0x1b] sm:$0x1] %vm684_vm3, %v3254_v17  ;;  %v4717_v17 = vld [vmem:[#allocation14 + $0x8] sm:$0xff] }
0x254f   :  { %4365 = vmatpush.bf16.msra.mxu2 %v4717_v17  ;;  %v4721_v17 = vld [vmem:[#allocation17 + $0x8] sm:$0xff] }
0x2550   :  { %4412 = vmatpush.bf16.msrb.mxu3 %v4721_v17 }
0x2557   :  { %v3926_v1 = vpop.permute.xlu0 %3925 }
0x2558   :  { %3934 = vst.msk [vmem:[#allocation3 + $0x1e] sm:$0x1] %vm684_vm3, %v3926_v1  ;;  %vm4076_vm3 = vcmask 64512  }
0x255f   :  { %v6905_v4 = vld [vmem:[#allocation3 + $0x18] sm:$0x7f] }
0x2560   :  { %v3946_v34 = vpack.c.bf16 %v6905_v4, %v6905_v4 }
0x2562   :  { %4677 = vmatmul.msk.bf16.vlgmr.msrb.gmra.mxu0 %vm7158_vm1, %v3946_v34  ;;  %v4716_v34 = vld [vmem:[#allocation14] sm:$0xff] }
0x2563   :  { %4366 = vmatpush.bf16.msra.mxu2 %v4716_v34 }
0x25b5   :  { %v3985_v30 = vpop.f32.mrf.mxu2 }
0x25b6   :  { %v4031_v7 = vsel %vm4027_vm10, %v3985_v30, -inf }
0x25b7   :  { %4032 = vmax.xlane.f32.xlu1 %v4031_v7 }
0x25bd   :  { %v3987_v48 = vpop.f32.mrf.mxu2  ;;  %v4004_v37 = vpop.f32.mrf.mxu3 }
0x25be   :  { %v4034_v25 = vsel %vm4027_vm10, %v4004_v37, -inf }
0x25bf   :  { %4035 = vmax.xlane.f32.xlu0 %v4034_v25 }
0x25c5   :  { %v3966_v60 = vpop.f32.mrf.mxu1  ;;  %v4006_v22 = vpop.f32.mrf.mxu3 }
0x25c6   :  { %v4028_v58 = vsel %vm4027_vm10, %v3966_v60, -inf }
0x25c7   :  { %4029 = vmax.xlane.f32.xlu2 %v4028_v58 }
0x25cd   :  { %v3968_v26 = vpop.f32.mrf.mxu1 }
0x25df   :  { %v4023_v50 = vpop.f32.mrf.mxu0 }
0x25e0   :  { %v4037_v21 = vsel %vm4027_vm10, %v4023_v50, -inf }
0x25e1   :  { %4038 = vmax.xlane.f32.xlu2 %v4037_v21 }
0x25e7   :  { %v4025_v29 = vpop.f32.mrf.mxu0 }
0x262a   :  { %v4033_v57 = vpop.xlane.xlu1 %4032 }
0x262b   :  { %v4041_v55 = vsub.f32 %v3985_v30, %v4033_v57 }
0x262d   :  { %v4046_v6 = vmul.f32 1.442695, %v4041_v55 }
0x262f   :  { %5101 = vpow2.f32 %v4046_v6 }
0x2632   :  { %v4036_v45 = vpop.xlane.xlu0 %4035 }
0x2633   :  { %v4042_v43 = vsub.f32 %v4004_v37, %v4036_v45 }
0x2635   :  { %v5102_v35 = vpop.eup %5101  ;;  %v4048_v46 = vmul.f32 1.442695, %v4042_v43 }
0x2636   :  { %v4055_v5 = vsel %vm4027_vm10, %v5102_v35, 0.0 }
0x2637   :  { %5103 = vpow2.f32 %v4048_v46  ;;  %4056 = vadd.xlane.f32.xlu1 %v4055_v5 }
0x263a   :  { %v4030_v40 = vpop.xlane.xlu2 %4029 }
0x263b   :  { %v4040_v39 = vsub.f32 %v3966_v60, %v4030_v40 }
0x263d   :  { %v5104_v19 = vpop.eup %5103  ;;  %v4044_v0 = vmul.f32 1.442695, %v4040_v39 }
0x263e   :  { %v4058_v51 = vsel %vm4027_vm10, %v5104_v19, 0.0 }
0x263f   :  { %5105 = vpow2.f32 %v4044_v0  ;;  %4059 = vadd.xlane.f32.xlu0 %v4058_v51 }
0x2645   :  { %v5106_v33 = vpop.eup %5105 }
0x2646   :  { %v4052_v44 = vsel %vm4027_vm10, %v5106_v33, 0.0 }
0x2647   :  { %4053 = vadd.xlane.f32.xlu2 %v4052_v44  ;;  %v4231_v44 = vrot.slane %v6896_v14, 1 }
0x2654   :  { %v4039_v28 = vpop.xlane.xlu2 %4038 }
0x2655   :  { %v4043_v2 = vsub.f32 %v4023_v50, %v4039_v28 }
0x2657   :  { %v4050_v49 = vmul.f32 1.442695, %v4043_v2  ;;  %v4232_v2 = vrot.slane %v6896_v14, 2 }
0x2659   :  { %5107 = vpow2.f32 %v4050_v49 }
0x265f   :  { %v5108_v24 = vpop.eup %5107 }
0x2660   :  { %v4061_v20 = vsel %vm4027_vm10, %v5108_v24, 0.0 }
0x2661   :  { %4062 = vadd.xlane.f32.xlu1 %v4061_v20  ;;  %v4719_v20 = vld [vmem:[#allocation15 + $0x8] sm:$0xff] }
0x2662   :  { %4328 = vmatpush.bf16.msrb.mxu1 %v4719_v20 }
0x26aa   :  { %v4057_v13 = vpop.xlane.xlu1 %4056 }
0x26ab   :  { %5109 = vrcp.f32 %v4057_v13  ;;  %v4234_v13 = vrot.slane %v6896_v14, 4 }
0x26b1   :  { %v5110_v11 = vpop.eup %5109 }
0x26b2   :  { %v4069_v8 = vmul.f32 %v5110_v11, %v5102_v35  ;;  %v4060_v62 = vpop.xlane.xlu0 %4059  ;;  %v4235_v11 = vrot.slane %v6896_v14, 5 }
0x26b3   :  { %5111 = vrcp.f32 %v4060_v62  ;;  %v4718_v62 = vld [vmem:[#allocation15] sm:$0xff] }
0x26b4   :  { %v4073_v12 = vpack.c.bf16 %v4069_v8, %v4069_v8  ;;  %v4236_v8 = vrot.slane %v6896_v14, 6  ;;  %4329 = vmatpush.bf16.msrb.mxu1 %v4718_v62 }
0x26b6   :  { %4679 = vmatmul.msk.bf16.vlgmr.msrb.gmra.mxu2 %vm4076_vm3, %v4073_v12  ;;  %v4237_v12 = vrot.slane %v6880_v47, 1 }
0x26b9   :  { %v5112_v59 = vpop.eup %5111 }
0x26ba   :  { %v4070_v31 = vmul.f32 %v5112_v59, %v5104_v19  ;;  %v4054_v42 = vpop.xlane.xlu2 %4053  ;;  %v4238_v59 = vrot.slane %v6880_v47, 2 }
0x26bb   :  { %5113 = vrcp.f32 %v4054_v42  ;;  %v4239_v42 = vrot.slane %v6880_v47, 3 }
0x26bc   :  { %v4074_v36 = vpack.c.bf16 %v4070_v31, %v4070_v31 }
0x26be   :  { %4680 = vmatmul.msk.bf16.vlgmr.msra.gmra.mxu3 %vm4076_vm3, %v4074_v36  ;;  %v4240_v36 = vrot.slane %v6880_v47, 4 }
0x26c1   :  { %v5114_v53 = vpop.eup %5113 }
0x26c2   :  { %v4068_v10 = vmul.f32 %v5114_v53, %v5106_v33  ;;  %v4242_v53 = vrot.slane %v6880_v47, 6 }
0x26c4   :  { %v4072_v18 = vpack.c.bf16 %v4068_v10, %v4068_v10  ;;  %v4243_v10 = vrot.slane %v6886_v27, 1 }
0x26c6   :  { %4678 = vmatmul.msk.bf16.vlgmr.msra.gmra.mxu1 %vm4076_vm3, %v4072_v18  ;;  %v4244_v18 = vrot.slane %v6886_v27, 2 }
0x26d4   :  { %v4063_v63 = vpop.xlane.xlu1 %4062 }
0x26d5   :  { %5115 = vrcp.f32 %v4063_v63  ;;  %v4245_v63 = vrot.slane %v6886_v27, 3 }
0x26db   :  { %v5116_v15 = vpop.eup %5115 }
0x26dc   :  { %v4071_v9 = vmul.f32 %v5116_v15, %v5108_v24  ;;  %v4233_v24 = vrot.slane %v6896_v14, 3 }
0x26de   :  { %v4075_v23 = vpack.c.bf16 %v4071_v9, %v4071_v9  ;;  %v4246_v9 = vrot.slane %v6886_v27, 4 }
0x26e0   :  { %4681 = vmatmul.msk.bf16.vlgmr.msra.gmra.mxu0 %vm4076_vm3, %v4075_v23 }
0x2739   :  { %v4110_v32 = vpop.f32.mrf.mxu2 }
0x273a   :  { %4192 = vst [vmem:[#allocation1 + $0x7] ss:$9 sm:$0xff] %v4110_v32  ;;  %v4160_v48 = vrot.slane %v4110_v32, 1  ;;  %v4161_v37 = vrot.slane %v4110_v32, 2  ;;  %v4162_v60 = vrot.slane %v4110_v32, 3  ;;  %v4163_v22 = vrot.slane %v4110_v32, 4 }
0x273b   :  { %v4164_v58 = vrot.slane %v4110_v32, 5  ;;  %v4165_v26 = vrot.slane %v4110_v32, 6  ;;  %v4247_v32 = vrot.slane %v6886_v27, 5 }
0x2741   :  { %v4112_v3 = vpop.f32.mrf.mxu2  ;;  %v4128_v52 = vpop.f32.mrf.mxu3 }
0x2742   :  { %v4166_v50 = vrot.slane %v4128_v52, 1  ;;  %v4167_v29 = vrot.slane %v4128_v52, 2  ;;  %v4168_v57 = vrot.slane %v4128_v52, 3  ;;  %v4169_v6 = vrot.slane %v4128_v52, 4 }
0x2743   :  { %v4092_v56 = vpop.f32.mrf.mxu1  ;;  %v4170_v43 = vrot.slane %v4128_v52, 5  ;;  %v4171_v35 = vrot.slane %v4128_v52, 6  ;;  %v4249_v3 = vrot.slane %v6905_v4, 1 }
0x2744   :  { %v4154_v16 = vrot.slane %v4092_v56, 1  ;;  %v4155_v38 = vrot.slane %v4092_v56, 2  ;;  %v4156_v61 = vrot.slane %v4092_v56, 3  ;;  %4178 = vst [vmem:[#allocation1] ss:$9 sm:$0xff] %v4092_v56  ;;  %v4157_v41 = vrot.slane %v4092_v56, 4 }
0x2745   :  { %v4158_v54 = vrot.slane %v4092_v56, 5  ;;  %v4159_v1 = vrot.slane %v4092_v56, 6  ;;  %v4251_v56 = vrot.slane %v6905_v4, 3 }
0x2746   :  { %4180 = vst [vmem:[#allocation1 + $0x1] ss:$9 sm:$0xff] %v4154_v16  ;;  %v4252_v16 = vrot.slane %v6905_v4, 4 }
0x2747   :  { %4182 = vst [vmem:[#allocation1 + $0x2] ss:$9 sm:$0xff] %v4155_v38 }
0x2748   :  { %4184 = vst [vmem:[#allocation1 + $0x3] ss:$9 sm:$0xff] %v4156_v61  ;;  %v4254_v61 = vrot.slane %v6905_v4, 6 }
0x2749   :  { %4186 = vst [vmem:[#allocation1 + $0x4] ss:$9 sm:$0xff] %v4157_v41  ;;  %v4130_v30 = vpop.f32.mrf.mxu3 }
0x274a   :  { %4188 = vst [vmem:[#allocation1 + $0x5] ss:$9 sm:$0xff] %v4158_v54 }
0x274b   :  { %4190 = vst [vmem:[#allocation1 + $0x6] ss:$9 sm:$0xff] %v4159_v1  ;;  %v4094_v7 = vpop.f32.mrf.mxu1  ;;  %v4720_v1 = vld [vmem:[#allocation17] sm:$0xff] }
0x274c   :  { %4413 = vmatpush.bf16.msrb.mxu3 %v4720_v1 }
0x2752   :  { %v4193_v25 = vld [vmem:[#allocation1] sm:$0xff] }
0x2753   :  { %4194 = vst [vmem:[#allocation1] ss:$9 sm:$0xff] %v4160_v48 }
0x2754   :  { %4195 = vst [vmem:[#allocation1 + $0x1] ss:$9 sm:$0xff] %v4161_v37 }
0x2755   :  { %4196 = vst [vmem:[#allocation1 + $0x2] ss:$9 sm:$0xff] %v4162_v60 }
0x2756   :  { %4197 = vst [vmem:[#allocation1 + $0x3] ss:$9 sm:$0xff] %v4163_v22 }
0x2757   :  { %4198 = vst [vmem:[#allocation1 + $0x4] ss:$9 sm:$0xff] %v4164_v58 }
0x2758   :  { %4199 = vst [vmem:[#allocation1 + $0x5] ss:$9 sm:$0xff] %v4165_v26 }
0x2759   :  { %4200 = vst [vmem:[#allocation1 + $0x6] ss:$9 sm:$0xff] %v4128_v52  ;;  %v4250_v52 = vrot.slane %v6905_v4, 2 }
0x275a   :  { %4201 = vst [vmem:[#allocation1 + $0x7] ss:$9 sm:$0xff] %v4166_v50 }
0x275d   :  { %v4146_v21 = vpop.f32.mrf.mxu0 }
0x275e   :  { %v4172_v46 = vrot.slane %v4146_v21, 1  ;;  %v4173_v5 = vrot.slane %v4146_v21, 2  ;;  %v4174_v39 = vrot.slane %v4146_v21, 3  ;;  %v4175_v19 = vrot.slane %v4146_v21, 4 }
0x275f   :  { %v4176_v51 = vrot.slane %v4146_v21, 5  ;;  %v4177_v33 = vrot.slane %v4146_v21, 6 }
0x2761   :  { %v4202_v55 = vld [vmem:[#allocation1] sm:$0xff] }
0x2762   :  { %4203 = vst [vmem:[#allocation1] ss:$9 sm:$0xff] %v4167_v29  ;;  %v4221_v45 = vpack.c.bf16 %v4202_v55, %v4193_v25 }
0x2763   :  { %4204 = vst [vmem:[#allocation1 + $0x1] ss:$9 sm:$0xff] %v4168_v57 }
0x2764   :  { %4205 = vst [vmem:[#allocation1 + $0x2] ss:$9 sm:$0xff] %v4169_v6  ;;  %4700 = vmatmul.msk.bf16.vlgmr.msra.gmra.mxu2 %vm7159_vm14, %v4221_v45 }
0x2765   :  { %4206 = vst [vmem:[#allocation1 + $0x3] ss:$9 sm:$0xff] %v4170_v43  ;;  %v4148_v40 = vpop.f32.mrf.mxu0 }
0x2766   :  { %4207 = vst [vmem:[#allocation1 + $0x4] ss:$9 sm:$0xff] %v4171_v35 }
0x2767   :  { %4208 = vst [vmem:[#allocation1 + $0x5] ss:$9 sm:$0xff] %v4146_v21 }
0x2768   :  { %4209 = vst [vmem:[#allocation1 + $0x6] ss:$9 sm:$0xff] %v4172_v46 }
0x2769   :  { %4210 = vst [vmem:[#allocation1 + $0x7] ss:$9 sm:$0xff] %v4173_v5 }
0x2770   :  { %v4211_v0 = vld [vmem:[#allocation1] sm:$0xff] }
0x2771   :  { %4212 = vst [vmem:[#allocation1] ss:$9 sm:$0xff] %v4174_v39 }
0x2772   :  { %4213 = vst [vmem:[#allocation1 + $0x1] ss:$9 sm:$0xff] %v4175_v19 }
0x2773   :  { %4214 = vst [vmem:[#allocation1 + $0x2] ss:$9 sm:$0xff] %v4176_v51 }
0x2774   :  { %4215 = vst [vmem:[#allocation1 + $0x3] ss:$9 sm:$0xff] %v4177_v33 }
0x277b   :  { %v4216_v28 = vld [vmem:[#allocation1] sm:$0xff] }
0x277c   :  { %4255 = vst [vmem:[#allocation1] ss:$9 sm:$0xff] %v6896_v14  ;;  %v4222_v49 = vpack.c.bf16 %v4216_v28, %v4211_v0  ;;  %v4241_v14 = vrot.slane %v6880_v47, 5 }
0x277d   :  { %4257 = vst [vmem:[#allocation1 + $0x1] ss:$9 sm:$0xff] %v4231_v44 }
0x277e   :  { %4259 = vst [vmem:[#allocation1 + $0x2] ss:$9 sm:$0xff] %v4232_v2  ;;  %4701 = vmatmul.msk.bf16.gmra.mxu2 %vm7160_vm7, %v4222_v49 }
0x277f   :  { %4261 = vst [vmem:[#allocation1 + $0x3] ss:$9 sm:$0xff] %v4233_v24 }
0x2780   :  { %4263 = vst [vmem:[#allocation1 + $0x4] ss:$9 sm:$0xff] %v4234_v13 }
0x2781   :  { %4265 = vst [vmem:[#allocation1 + $0x5] ss:$9 sm:$0xff] %v4235_v11 }
0x2782   :  { %4267 = vst [vmem:[#allocation1 + $0x6] ss:$9 sm:$0xff] %v4236_v8 }
0x2783   :  { %4269 = vst [vmem:[#allocation1 + $0x7] ss:$9 sm:$0xff] %v6880_v47  ;;  %v4248_v47 = vrot.slane %v6886_v27, 6 }
0x278a   :  { %v4270_v31 = vld [vmem:[#allocation1] sm:$0xff] }
0x278b   :  { %4271 = vst [vmem:[#allocation1] ss:$9 sm:$0xff] %v4237_v12 }
0x278c   :  { %4272 = vst [vmem:[#allocation1 + $0x1] ss:$9 sm:$0xff] %v4238_v59 }
0x278d   :  { %4273 = vst [vmem:[#allocation1 + $0x2] ss:$9 sm:$0xff] %v4239_v42 }
0x278e   :  { %4274 = vst [vmem:[#allocation1 + $0x3] ss:$9 sm:$0xff] %v4240_v36 }
0x278f   :  { %4275 = vst [vmem:[#allocation1 + $0x4] ss:$9 sm:$0xff] %v4241_v14 }
0x2790   :  { %4276 = vst [vmem:[#allocation1 + $0x5] ss:$9 sm:$0xff] %v4242_v53 }
0x2791   :  { %4277 = vst [vmem:[#allocation1 + $0x6] ss:$9 sm:$0xff] %v6886_v27  ;;  %v4253_v27 = vrot.slane %v6905_v4, 5 }
0x2792   :  { %4278 = vst [vmem:[#allocation1 + $0x7] ss:$9 sm:$0xff] %v4243_v10 }
0x2799   :  { %v4279_v15 = vld [vmem:[#allocation1] sm:$0xff] }
0x279a   :  { %4280 = vst [vmem:[#allocation1] ss:$9 sm:$0xff] %v4244_v18  ;;  %v4298_v23 = vpack.c.bf16 %v4279_v15, %v4270_v31 }
0x279b   :  { %4281 = vst [vmem:[#allocation1 + $0x1] ss:$9 sm:$0xff] %v4245_v63 }
0x279c   :  { %4282 = vst [vmem:[#allocation1 + $0x2] ss:$9 sm:$0xff] %v4246_v9  ;;  %4690 = vmatmul.msk.bf16.vlgmr.msrb.gmra.mxu1 %vm7161_vm12, %v4298_v23 }
0x279d   :  { %4283 = vst [vmem:[#allocation1 + $0x3] ss:$9 sm:$0xff] %v4247_v32 }
0x279e   :  { %4284 = vst [vmem:[#allocation1 + $0x4] ss:$9 sm:$0xff] %v4248_v47 }
0x279f   :  { %4285 = vst [vmem:[#allocation1 + $0x5] ss:$9 sm:$0xff] %v6905_v4 }
0x27a0   :  { %4286 = vst [vmem:[#allocation1 + $0x6] ss:$9 sm:$0xff] %v4249_v3 }
0x27a1   :  { %4287 = vst [vmem:[#allocation1 + $0x7] ss:$9 sm:$0xff] %v4250_v52 }
0x27a8   :  { %v4288_v38 = vld [vmem:[#allocation1] sm:$0xff] }
0x27a9   :  { %4289 = vst [vmem:[#allocation1] ss:$9 sm:$0xff] %v4251_v56 }
0x27aa   :  { %4290 = vst [vmem:[#allocation1 + $0x1] ss:$9 sm:$0xff] %v4252_v16 }
0x27ab   :  { %4291 = vst [vmem:[#allocation1 + $0x2] ss:$9 sm:$0xff] %v4253_v27 }
0x27ac   :  { %4292 = vst [vmem:[#allocation1 + $0x3] ss:$9 sm:$0xff] %v4254_v61 }
0x27b3   :  { %v4293_v41 = vld [vmem:[#allocation1] sm:$0xff] }
0x27b4   :  { %v4299_v54 = vpack.c.bf16 %v4293_v41, %v4288_v38 }
0x27b6   :  { %4691 = vmatmul.msk.bf16.gmra.mxu1 %vm7162_vm13, %v4299_v54 }
0x27e7   :  { %v4368_v34 = vpop.f32.mrf.mxu2 }
0x27ef   :  { %v4370_v48 = vpop.f32.mrf.mxu2 }
0x2801   :  { %v4373_v58 = vpop.f32.mrf.mxu2 }
0x2809   :  { %v4375_v21 = vpop.f32.mrf.mxu2 }
0x2819   :  { %v4331_v30 = vpop.f32.mrf.mxu1 }
0x281a   :  { %v4369_v7 = vadd.f32 %v4368_v34, %v4331_v30 }
0x281c   :  { %5117 = vtanh.f32 %v4369_v7 }
0x2821   :  { %v4333_v37 = vpop.f32.mrf.mxu1 }
0x2822   :  { %v4371_v25 = vadd.f32 %v4370_v48, %v4333_v37  ;;  %v5118_v4 = vpop.eup %5117 }
0x2824   :  { %5119 = vtanh.f32 %v4371_v25 }
0x282a   :  { %v5120_v60 = vpop.eup %5119 }
0x282b   :  { %v4382_v22 = vpack.c.bf16 %v5120_v60, %v5118_v4 }
0x282d   :  { %4710 = vmatmul.msk.bf16.vlgmr.msrb.gmra.mxu3 %vm7163_vm15, %v4382_v22 }
0x2833   :  { %v4336_v26 = vpop.f32.mrf.mxu1 }
0x2834   :  { %v4374_v50 = vadd.f32 %v4373_v58, %v4336_v26 }
0x2836   :  { %5121 = vtanh.f32 %v4374_v50 }
0x283b   :  { %v4338_v29 = vpop.f32.mrf.mxu1 }
0x283c   :  { %v4376_v57 = vadd.f32 %v4375_v21, %v4338_v29  ;;  %v5122_v55 = vpop.eup %5121 }
0x283e   :  { %5123 = vtanh.f32 %v4376_v57 }
0x2844   :  { %v5124_v6 = vpop.eup %5123 }
0x2845   :  { %v4383_v45 = vpack.c.bf16 %v5124_v6, %v5122_v55 }
0x2847   :  { %4711 = vmatmul.msk.bf16.gmra.mxu3 %vm7164_vm6, %v4383_v45 }
0x28b0   :  { %v4415_v43 = vpop.f32.mrf.mxu3 }
0x28b1   :  { %v4429_v35 = vrot.slane %v4415_v43, 1  ;;  %v4430_v46 = vrot.slane %v4415_v43, 2  ;;  %v4431_v5 = vrot.slane %v4415_v43, 3  ;;  %4453 = vst [vmem:[#allocation1] ss:$9 sm:$0xff] %v4415_v43  ;;  %v4432_v40 = vrot.slane %v4415_v43, 4 }
0x28b2   :  { %v4433_v39 = vrot.slane %v4415_v43, 5  ;;  %v4434_v19 = vrot.slane %v4415_v43, 6  ;;  %v4435_v51 = vrot.slane %v4415_v43, 7 }
0x28b3   :  { %4455 = vst [vmem:[#allocation1 + $0x1] ss:$9 sm:$0xff] %v4429_v35 }
0x28b4   :  { %4457 = vst [vmem:[#allocation1 + $0x2] ss:$9 sm:$0xff] %v4430_v46 }
0x28b5   :  { %4459 = vst [vmem:[#allocation1 + $0x3] ss:$9 sm:$0xff] %v4431_v5 }
0x28b6   :  { %4461 = vst [vmem:[#allocation1 + $0x4] ss:$9 sm:$0xff] %v4432_v40 }
0x28b7   :  { %4463 = vst [vmem:[#allocation1 + $0x5] ss:$9 sm:$0xff] %v4433_v39 }
0x28b8   :  { %4465 = vst [vmem:[#allocation1 + $0x6] ss:$9 sm:$0xff] %v4434_v19  ;;  %v4417_v0 = vpop.f32.mrf.mxu3 }
0x28b9   :  { %v4436_v44 = vrot.slane %v4417_v0, 1  ;;  %v4437_v28 = vrot.slane %v4417_v0, 2  ;;  %v4438_v2 = vrot.slane %v4417_v0, 3  ;;  %v4439_v49 = vrot.slane %v4417_v0, 4 }
0x28ba   :  { %v4440_v24 = vrot.slane %v4417_v0, 5  ;;  %v4441_v13 = vrot.slane %v4417_v0, 6  ;;  %v4442_v11 = vrot.slane %v4417_v0, 7 }
0x28bf   :  { %v4466_v33 = vld [vmem:[#allocation1] sm:$0xff] }
0x28c0   :  { %4467 = vst [vmem:[#allocation1] ss:$9 sm:$0xff] %v4435_v51 }
0x28c1   :  { %4495 = vst [vmem:[%s6977_s9] sm:$0x7f] %v4466_v33 }
0x28c2   :  { %4468 = vst [vmem:[#allocation1 + $0x1] ss:$9 sm:$0xff] %v4417_v0 }
0x28c3   :  { %4469 = vst [vmem:[#allocation1 + $0x2] ss:$9 sm:$0xff] %v4436_v44 }
0x28c4   :  { %4470 = vst [vmem:[#allocation1 + $0x3] ss:$9 sm:$0xff] %v4437_v28 }
0x28c5   :  { %4471 = vst [vmem:[#allocation1 + $0x4] ss:$9 sm:$0xff] %v4438_v2 }
0x28c6   :  { %4472 = vst [vmem:[#allocation1 + $0x5] ss:$9 sm:$0xff] %v4439_v49 }
0x28c7   :  { %4473 = vst [vmem:[#allocation1 + $0x6] ss:$9 sm:$0xff] %v4440_v24 }
0x28ca   :  { %v4420_v20 = vpop.f32.mrf.mxu3 }
0x28cb   :  { %v4443_v62 = vrot.slane %v4420_v20, 1  ;;  %v4444_v12 = vrot.slane %v4420_v20, 2  ;;  %v4445_v59 = vrot.slane %v4420_v20, 3  ;;  %v4446_v31 = vrot.slane %v4420_v20, 4 }
0x28cc   :  { %v4449_v42 = vrot.slane %v4420_v20, 7  ;;  %v4447_v53 = vrot.slane %v4420_v20, 5  ;;  %v4448_v10 = vrot.slane %v4420_v20, 6 }
0x28ce   :  { %v4474_v8 = vld [vmem:[#allocation1] sm:$0xff] }
0x28cf   :  { %4475 = vst [vmem:[#allocation1] ss:$9 sm:$0xff] %v4441_v13 }
0x28d0   :  { %4476 = vst [vmem:[#allocation1 + $0x1] ss:$9 sm:$0xff] %v4442_v11 }
0x28d1   :  { %4496 = vst [vmem:[%s6977_s9 + $0x8] sm:$0x7f] %v4474_v8 }
0x28d2   :  { %4477 = vst [vmem:[#allocation1 + $0x2] ss:$9 sm:$0xff] %v4420_v20  ;;  %v4422_v36 = vpop.f32.mrf.mxu3 }
0x28d3   :  { %4478 = vst [vmem:[#allocation1 + $0x3] ss:$9 sm:$0xff] %v4443_v62  ;;  %v4450_v18 = vrot.slane %v4422_v36, 1  ;;  %v4451_v63 = vrot.slane %v4422_v36, 2  ;;  %v4452_v15 = vrot.slane %v4422_v36, 3 }
0x28d4   :  { %4479 = vst [vmem:[#allocation1 + $0x4] ss:$9 sm:$0xff] %v4444_v12 }
0x28d5   :  { %4480 = vst [vmem:[#allocation1 + $0x5] ss:$9 sm:$0xff] %v4445_v59 }
0x28d6   :  { %4481 = vst [vmem:[#allocation1 + $0x6] ss:$9 sm:$0xff] %v4446_v31 }
0x28dd   :  { %v4482_v14 = vld [vmem:[#allocation1] sm:$0xff] }
0x28de   :  { %4485 = vst [vmem:[#allocation1 + $0x2] ss:$9 sm:$0xff] %v4449_v42 }
0x28df   :  { %4497 = vst [vmem:[%s6977_s9 + $0x10] sm:$0x7f] %v4482_v14 }
0x28e0   :  { %4483 = vst [vmem:[#allocation1] ss:$9 sm:$0xff] %v4447_v53 }
0x28e1   :  { %4484 = vst [vmem:[#allocation1 + $0x1] ss:$9 sm:$0xff] %v4448_v10 }
0x28e2   :  { %4486 = vst [vmem:[#allocation1 + $0x3] ss:$9 sm:$0xff] %v4422_v36 }
0x28e3   :  { %4487 = vst [vmem:[#allocation1 + $0x4] ss:$9 sm:$0xff] %v4450_v18 }
0x28e4   :  { %4488 = vst [vmem:[#allocation1 + $0x5] ss:$9 sm:$0xff] %v4451_v63 }
0x28e5   :  { %4489 = vst [vmem:[#allocation1 + $0x6] ss:$9 sm:$0xff] %v4452_v15 }
0x28ec   :  { %v4490_v9 = vld [vmem:[#allocation1] sm:$0xff] }
0x28ed   :  { %4498 = vst [vmem:[%s6977_s9 + $0x18] sm:$0x7f] %v4490_v9 }
0x28ee   :  { %4503 = vsyncpa [#allocation5], 1 }
0x28ef   :  { %4504 = vsyncpa [#allocation7], 1 }
0x28f0   :  { %4505 = vsyncpa [#allocation10], 1 }
0x28f1   :  { %4506 = vsyncpa [#allocation13], 1 }
0x28f2   :  { %4507 = vsyncpa [#allocation16], 1 }

</bundles_post_ra>
